<compile_context>
chip_gen: v6e
topology: v6e:2x2x1
jax: 0.10.0
libtpu: 0.0.40
codegen_flags: <defaults>
</compile_context>

<pallas_src>
import functools

import numpy as np

import jax
import jax.numpy as jnp
from jax.experimental import pallas as pl
from jax.experimental.pallas import tpu as pltpu


PACKED_ORDER = ("w1s_p", "w1t_p", "wr_p", "w_kk", "wc2_p", "cagg", "eagg",
                "wg", "b_edge", "b_gate")


def _silu(x):
    return x * jax.nn.sigmoid(x)


def egcl_kernel(node_ref, edge_ref,
                w1s_ref, w1t_ref, wr_ref, wkk_ref, wc2_ref, cagg_ref, eagg_ref,
                wg_ref, be_ref, bg_ref,
                out_ref, *, F, k, out_w):
    tn = node_ref.shape[0]
    kF = k * F

    def mm(x, w):
        # MXU matmul; weights arrive pre-cast (pack_params), activations are
        # cast to the weight dtype, accumulation is f32.  f32 weights use
        # HIGHEST precision (true f32 passes); bf16 weights are native.
        prec = (jax.lax.Precision.HIGHEST if w.dtype == jnp.float32
                else jax.lax.Precision.DEFAULT)
        return jnp.dot(x.astype(w.dtype), w,
                       preferred_element_type=jnp.float32, precision=prec)

    xn = node_ref[...]                       # [tn, F+3]        h | coord
    xe = edge_ref[...]                       # [tn, kF + 3k]    h[col] | cdiff (packed)
    h_tile = xn[:, :F]                       # [tn, F]
    coord_tile = xn[:, F:F + 3]              # [tn, 3]
    hcol = xe[:, :kF]                        # [tn, kF]
    cd = xe[:, kF:]                          # [tn, 3k]

    be = be_ref[...]                         # [3, kH]  tiled edge biases (f32)
    bg = bg_ref[...]                         # [2, H]   gate biases (f32)

    # ---- edge MLP, lane-packed: one row per node, its k edges side by side.
    # m1[n, j*H+m] = h[n]@W1s + h[col[n,j]]@W1t + radial[n,j]*w1r + b1
    m1 = (mm(h_tile, w1s_ref[...])           # source term (tile(W1s, (1,k)))
          + mm(hcol, w1t_ref[...])           # target term (kron(I_k, W1t))
          + mm(cd * cd, wr_ref[...])         # radial term, kept f32 for accuracy
          + be[0:1, :])
    e1 = _silu(m1)                                          # [tn, kH]
    edge_feat = _silu(mm(e1, wkk_ref[0]) + be[1:2, :])      # [tn, kH]

    # ---- coord_mlp: trans = coord_diff * phi, phi replicated x3 per edge.
    c1 = _silu(mm(edge_feat, wkk_ref[1]) + be[2:3, :])      # [tn, kH]
    phi_rep = mm(c1, wc2_ref[...])                          # [tn, 3k]
    agg_c = mm(cd * phi_rep, cagg_ref[...])                 # [tn, 3]  mean over k (f32)

    # ---- per-node aggregation of edge features (sum over k), as a matmul.
    agg_e = mm(edge_feat, eagg_ref[...])                    # [tn, H]  (f32 selection)

    # ---- node_model (residual=True): h + node_gate(agg) * agg
    g1 = jnp.maximum(mm(agg_e, wg_ref[0]) + bg[0:1, :], 0.0)
    gate = jax.nn.sigmoid(mm(g1, wg_ref[1]) + bg[1:2, :])
    h_new = h_tile + gate * agg_e
    coord_new = coord_tile + agg_c                          # mask=None path

    out = jnp.concatenate([h_new, coord_new], axis=-1)      # [tn, F+3]
    pad_w = out_w - (F + 3)
    if pad_w:
        out = jnp.concatenate(
            [out, jnp.zeros((tn, pad_w), jnp.float32)], axis=-1)
    out_ref[...] = out                                      # lane-dense full store


def _choose_tn(N, k, max_te=2048, min_steps=8):
    """Largest node tile (multiple of 8 dividing N) whose edge tile tn*k stays
    within max_te.  Prefers >= min_steps grid steps (>= 4 per TensorCore on
    v7x's two cores), falls back to >= 2, then to the largest legal tile.
    v5e/v6e (128 MiB VMEM) callers may raise max_te to 4096-8192."""
    cands = [t for t in range(8, N + 1, 8) if N % t == 0 and t * k <= max_te]
    if not cands:
        raise ValueError(f"no valid node tile for N={N}, k={k}")
    for steps in (min_steps, 2):
        ok = [t for t in cands if N // t >= steps]
        if ok:
            return max(ok)
    return max(cands)


def _vmem_limit_bytes(tn, F, k, out_w, pp):
    """Footprint-based VMEM budget (v7x-safe: capped at 32 MiB)."""
    pad = lambda c: -(-c // 128) * 128
    kH = pp["w_kk"].shape[-1]
    io = tn * (pad(F + 3) + pad(k * (F + 3)) + pad(out_w)) * 4   # per-buffer tiles
    params = sum(int(np.prod(v.shape)) * v.dtype.itemsize for v in pp.values())
    tmp = 16 * tn * pad(kH) * 4                                  # lane-padded temporaries
    est = 2 * io + 2 * params + tmp + (2 << 20)
    return int(min(max(est, 8 << 20), 32 << 20))


def pack_params(p, k, matmul_dtype=jnp.float32):
    """Lane-pack the 13 module parameters for the k*H layout.  Weights feeding
    the big matmuls are pre-cast to matmul_dtype; radial / aggregation /
    bias terms stay f32."""
    F, H = p["w1s"].shape
    md = matmul_dtype
    eye_k = jnp.eye(k, dtype=jnp.float32)
    ones3 = jnp.ones((3, 1), jnp.float32)
    return {
        "w1s_p": jnp.tile(p["w1s"], (1, k)).astype(md),                   # [F, kH]
        "w1t_p": jnp.kron(eye_k, p["w1t"]).astype(md),                    # [kF, kH]
        "wr_p": jnp.kron(eye_k, ones3 @ p["w1r"]),                        # [3k, kH] f32
        "w_kk": jnp.stack([jnp.kron(eye_k, p["w2"]),
                           jnp.kron(eye_k, p["wc1"])]).astype(md),        # [2, kH, kH]
        "wc2_p": jnp.kron(eye_k, p["wc2"] @ jnp.ones((1, 3), jnp.float32)
                          ).astype(md),                                   # [kH, 3k]
        "cagg": jnp.kron(jnp.ones((k, 1), jnp.float32),
                         jnp.eye(3, dtype=jnp.float32)) / k,              # [3k, 3] f32
        "eagg": jnp.kron(jnp.ones((k, 1), jnp.float32),
                         jnp.eye(H, dtype=jnp.float32)),                  # [kH, H] f32
        "wg": jnp.stack([p["wg1"], p["wg2"]]).astype(md),                 # [2, H, H]
        "b_edge": jnp.concatenate([jnp.tile(p["b1"], (1, k)),
                                   jnp.tile(p["b2"], (1, k)),
                                   jnp.tile(p["bc1"], (1, k))], axis=0),  # [3, kH] f32
        "b_gate": jnp.concatenate([p["bg1"], p["bg2"]], axis=0),          # [2, H]  f32
    }


def e_gcl_rm_node_forward(h, coord, row, col, params, *, batch_size, k,
                          tn=None, max_te=2048, matmul_dtype=jnp.float32):
    """Returns (h_new, coord_new), matching (h, coord) of the PyTorch forward
    (edge_attr passthrough is None).

    Contract: edges are ordered (batch, node, k) flattened, i.e.
    row == repeat(arange(N), k); each node's k edges are contiguous."""
    N, F = h.shape
    if tn is None:
        tn = _choose_tn(N, k, max_te=max_te)
    assert N % tn == 0 and tn % 8 == 0, "node tile must be a multiple of 8 dividing N"
    out_w = -(-(F + 3) // 128) * 128          # lane-dense output slab width

    # contract check (only when indices are concrete; skipped under tracing)
    try:
        row_np = np.asarray(row)
    except Exception:
        row_np = None
    if row_np is not None and not np.array_equal(
            row_np, np.repeat(np.arange(N, dtype=row_np.dtype), k)):
        raise ValueError("row must equal repeat(arange(N), k): edges ordered (node, k)")

    # glue: data-dependent gather + node-major lane packing (k edges per row).
    # TODO(synk): move this gather into the kernel (scalar-prefetched col +
    # per-batch h/coord slabs resident in VMEM) to kill the E x F HBM stream.
    hcol_p = h[col].reshape(N, k * F)                        # [N, kF]
    cdiff_p = (coord[row] - coord[col]).reshape(N, 3 * k)    # [N, 3k]
    edge_in = jnp.concatenate([hcol_p, cdiff_p], axis=1)     # [N, k*(F+3)]
    node_in = jnp.concatenate([h, coord], axis=1)            # [N, F+3]

    pp = pack_params(params, k, matmul_dtype=matmul_dtype)
    grid = (N // tn,)

    def _const_spec(arr):
        # Constant-index blocks stay resident in VMEM across grid steps.
        z = (0,) * arr.ndim
        return pl.BlockSpec(arr.shape, lambda i, _z=z: _z)

    in_specs = [
        pl.BlockSpec((tn, F + 3), lambda i: (i, 0)),          # node stream
        pl.BlockSpec((tn, k * (F + 3)), lambda i: (i, 0)),    # packed edge stream
    ] + [_const_spec(pp[name]) for name in PACKED_ORDER]

    out_specs = pl.BlockSpec((tn, out_w), lambda i: (i, 0))
    out_shape = jax.ShapeDtypeStruct((N, out_w), jnp.float32)

    kernel = functools.partial(egcl_kernel, F=F, k=k, out_w=out_w)
    out = pl.pallas_call(
        kernel,
        grid=grid,
        in_specs=in_specs,
        out_specs=out_specs,
        out_shape=out_shape,
        compiler_params=pltpu.CompilerParams(
            dimension_semantics=("parallel",),
            vmem_limit_bytes=_vmem_limit_bytes(tn, F, k, out_w, pp)),
    )(node_in, edge_in, *[pp[n] for n in PACKED_ORDER])

    return out[:, :F], out[:, F:F + 3]


def reference_forward(h, coord, row, col, p, *, batch_size, k):
    """Pure-JAX reference mirroring the PyTorch module (defaults)."""
    dot = lambda a, b: jnp.dot(a, b, precision=jax.lax.Precision.HIGHEST)
    cdiff = coord[row] - coord[col]
    radial = jnp.sum(cdiff ** 2, axis=1, keepdims=True)
    src, tgt = h[row], h[col]
    m1 = dot(src, p["w1s"]) + dot(tgt, p["w1t"]) + radial * p["w1r"] + p["b1"]
    e1 = _silu(m1)
    edge_feat = _silu(dot(e1, p["w2"]) + p["b2"])
    c1 = _silu(dot(edge_feat, p["wc1"]) + p["bc1"])
    phi = dot(c1, p["wc2"])
    trans = (cdiff * phi).reshape(batch_size, -1, k, 3)
    agg_c = jnp.mean(trans, axis=2).reshape(-1, 3)
    coord_new = coord + agg_c
    H = edge_feat.shape[-1]
    agg_e = jnp.sum(edge_feat.reshape(batch_size, -1, k, H), axis=2).reshape(-1, H)
    gate = jax.nn.sigmoid(
        dot(jnp.maximum(dot(agg_e, p["wg1"]) + p["bg1"], 0.0), p["wg2"]) + p["bg2"])
    h_new = h + gate * agg_e
    return h_new, coord_new


def make_params(key, input_nf, hidden_nf):
    """Deterministic synthetic params with the module's __init__ shapes.
    edge_mlp: Linear(2*nf + 1, H), Linear(H, H)
    coord_mlp: Linear(H, H), Linear(H, 1, bias=False) xavier gain=0.001
    node_gate: Linear(H, H), Linear(H, H)
    Weights stored [in, out]; biases [1, out]."""
    ks = jax.random.split(key, 16)

    def w(kk, fan_in, fan_out, scale):
        return jax.random.normal(kk, (fan_in, fan_out), jnp.float32) * scale

    H, F = hidden_nf, input_nf
    s1 = 1.0 / np.sqrt(2 * F + 1)
    sh = 1.0 / np.sqrt(H)
    return {
        "w1s": w(ks[0], F, H, s1), "w1t": w(ks[1], F, H, s1),
        "w1r": w(ks[2], 1, H, s1), "b1": w(ks[3], 1, H, s1),
        "w2": w(ks[4], H, H, sh), "b2": w(ks[5], 1, H, sh),
        "wc1": w(ks[6], H, H, sh), "bc1": w(ks[7], 1, H, sh),
        "wc2": w(ks[8], H, 1, 0.001),
        "wg1": w(ks[9], H, H, sh), "bg1": w(ks[10], 1, H, sh),
        "wg2": w(ks[11], H, H, sh), "bg2": w(ks[12], 1, H, sh),
    }


if __name__ == "__main__":
    # small shapes: input_nf = hidden_nf = 32, batch=2, 64 nodes/batch, k=4
    # (k * hidden_nf = 128 lanes -> fully lane-dense packed layout)
    input_nf = hidden_nf = 32
    batch_size, n_per_b, k = 2, 64, 4
    N = batch_size * n_per_b

    key = jax.random.PRNGKey(0)
    kh, kc, kp = jax.random.split(key, 3)
    h = jax.random.normal(kh, (N, input_nf), jnp.float32)
    coord = jax.random.normal(kc, (N, 3), jnp.float32)
    params = make_params(kp, input_nf, hidden_nf)

    # edge_index: for each node, k neighbors within its batch; ordered (batch, node, k)
    row_np = np.repeat(np.arange(N, dtype=np.int32), k)
    col_np = np.empty((N, k), dtype=np.int32)
    for n in range(N):
        b = n // n_per_b
        for j in range(k):
            col_np[n, j] = b * n_per_b + (n % n_per_b + j + 1) % n_per_b
    row = jnp.asarray(row_np)
    col = jnp.asarray(col_np.reshape(-1))

    # f32 path: strict check against the pure-JAX reference.
    h_new, coord_new = e_gcl_rm_node_forward(
        h, coord, row, col, params, batch_size=batch_size, k=k)
    jax.block_until_ready((h_new, coord_new))

    h_ref, coord_ref = reference_forward(
        h, coord, row, col, params, batch_size=batch_size, k=k)
    assert jnp.allclose(h_new, h_ref, atol=1e-4, rtol=1e-4)
    assert jnp.allclose(coord_new, coord_ref, atol=1e-4, rtol=1e-4)

    # bf16-MXU path (v6e/v7x recommendation): coarse sanity check only; this
    # path is not bit-compatible with the f32 reference.
    h_bf, coord_bf = e_gcl_rm_node_forward(
        h, coord, row, col, params, batch_size=batch_size, k=k,
        matmul_dtype=jnp.bfloat16)
    jax.block_until_ready((h_bf, coord_bf))
    h_scale = float(jnp.max(jnp.abs(h_ref))) + 1.0
    c_scale = float(jnp.max(jnp.abs(coord_ref))) + 1.0
    assert float(jnp.max(jnp.abs(h_bf - h_ref))) < 0.05 * h_scale
    assert float(jnp.max(jnp.abs(coord_bf - coord_ref))) < 0.05 * c_scale

    # TODO(synk): attention / normalize / tanh / mask branches of the module are
    # off by default and not implemented in the kernel.
    print("KERNEL_OK")
</pallas_src>

<mosaic_0001>
module attributes {stable_mosaic.version = 11 : i64} {
  func.func @egcl_kernel(%arg0: i32, %arg1: memref<16x35xf32, #tpu.memory_space<vmem>>, %arg2: memref<16x140xf32, #tpu.memory_space<vmem>>, %arg3: memref<32x128xf32, #tpu.memory_space<vmem>>, %arg4: memref<128x128xf32, #tpu.memory_space<vmem>>, %arg5: memref<12x128xf32, #tpu.memory_space<vmem>>, %arg6: memref<2x128x128xf32, #tpu.memory_space<vmem>>, %arg7: memref<128x12xf32, #tpu.memory_space<vmem>>, %arg8: memref<12x3xf32, #tpu.memory_space<vmem>>, %arg9: memref<128x32xf32, #tpu.memory_space<vmem>>, %arg10: memref<2x32x32xf32, #tpu.memory_space<vmem>>, %arg11: memref<3x128xf32, #tpu.memory_space<vmem>>, %arg12: memref<2x32xf32, #tpu.memory_space<vmem>>, %arg13: memref<16x128xf32, #tpu.memory_space<vmem>>) attributes {dimension_semantics = [#tpu.dimension_semantics<parallel>], iteration_bounds = array<i64: 8>, scalar_prefetch = 0 : i64, scratch_operands = 0 : i64, tpu.core_type = #tpu.core_type<tc>, window_params = [{transform_indices = @transform_0, window_bounds = array<i64: 16, 35>}, {transform_indices = @transform_1, window_bounds = array<i64: 16, 140>}, {pipeline_mode = #tpu.pipeline_mode<synchronous>, transform_indices = @transform_2, window_bounds = array<i64: 32, 128>}, {pipeline_mode = #tpu.pipeline_mode<synchronous>, transform_indices = @transform_3, window_bounds = array<i64: 128, 128>}, {pipeline_mode = #tpu.pipeline_mode<synchronous>, transform_indices = @transform_4, window_bounds = array<i64: 12, 128>}, {pipeline_mode = #tpu.pipeline_mode<synchronous>, transform_indices = @transform_5, window_bounds = array<i64: 2, 128, 128>}, {pipeline_mode = #tpu.pipeline_mode<synchronous>, transform_indices = @transform_6, window_bounds = array<i64: 128, 12>}, {pipeline_mode = #tpu.pipeline_mode<synchronous>, transform_indices = @transform_7, window_bounds = array<i64: 12, 3>}, {pipeline_mode = #tpu.pipeline_mode<synchronous>, transform_indices = @transform_8, window_bounds = array<i64: 128, 32>}, {pipeline_mode = #tpu.pipeline_mode<synchronous>, transform_indices = @transform_9, window_bounds = array<i64: 2, 32, 32>}, {pipeline_mode = #tpu.pipeline_mode<synchronous>, transform_indices = @transform_10, window_bounds = array<i64: 3, 128>}, {pipeline_mode = #tpu.pipeline_mode<synchronous>, transform_indices = @transform_11, window_bounds = array<i64: 2, 32>}, {transform_indices = @transform_12, window_bounds = array<i64: 16, 128>}]} {
    %c0 = arith.constant 0 : index
    %c0_0 = arith.constant 0 : index
    %0 = vector.load %arg1[%c0, %c0_0] : memref<16x35xf32, #tpu.memory_space<vmem>>, vector<16x35xf32>
    %c0_1 = arith.constant 0 : index
    %c0_2 = arith.constant 0 : index
    %1 = vector.load %arg2[%c0_1, %c0_2] : memref<16x140xf32, #tpu.memory_space<vmem>>, vector<16x140xf32>
    %2 = vector.extract_strided_slice %0 {offsets = [0, 0], sizes = [16, 32], strides = [1, 1]} : vector<16x35xf32> to vector<16x32xf32>
    %3 = vector.extract_strided_slice %0 {offsets = [0, 32], sizes = [16, 3], strides = [1, 1]} : vector<16x35xf32> to vector<16x3xf32>
    %4 = vector.extract_strided_slice %1 {offsets = [0, 0], sizes = [16, 128], strides = [1, 1]} : vector<16x140xf32> to vector<16x128xf32>
    %5 = vector.extract_strided_slice %1 {offsets = [0, 128], sizes = [16, 12], strides = [1, 1]} : vector<16x140xf32> to vector<16x12xf32>
    %c0_3 = arith.constant 0 : index
    %c0_4 = arith.constant 0 : index
    %6 = vector.load %arg11[%c0_3, %c0_4] : memref<3x128xf32, #tpu.memory_space<vmem>>, vector<3x128xf32>
    %c0_5 = arith.constant 0 : index
    %c0_6 = arith.constant 0 : index
    %7 = vector.load %arg12[%c0_5, %c0_6] : memref<2x32xf32, #tpu.memory_space<vmem>>, vector<2x32xf32>
    %c0_7 = arith.constant 0 : index
    %c0_8 = arith.constant 0 : index
    %8 = vector.load %arg3[%c0_7, %c0_8] : memref<32x128xf32, #tpu.memory_space<vmem>>, vector<32x128xf32>
    %cst = arith.constant dense<0.000000e+00> : vector<16x128xf32>
    %9 = tpu.matmul %2, %8, %cst {dimension_numbers = #tpu.dot_dimension_numbers<[1], [0], [0], [1], [0, 0, 1, 1], [], []>, precision = #tpu.contract_precision<fp32>} : vector<16x32xf32>, vector<32x128xf32>, vector<16x128xf32> -> vector<16x128xf32>
    %c0_9 = arith.constant 0 : index
    %c0_10 = arith.constant 0 : index
    %10 = vector.load %arg4[%c0_9, %c0_10] : memref<128x128xf32, #tpu.memory_space<vmem>>, vector<128x128xf32>
    %cst_11 = arith.constant dense<0.000000e+00> : vector<16x128xf32>
    %11 = tpu.matmul %4, %10, %cst_11 {dimension_numbers = #tpu.dot_dimension_numbers<[1], [0], [0], [1], [0, 0, 1, 1], [], []>, precision = #tpu.contract_precision<fp32>} : vector<16x128xf32>, vector<128x128xf32>, vector<16x128xf32> -> vector<16x128xf32>
    %12 = arith.addf %9, %11 : vector<16x128xf32>
    %13 = arith.mulf %5, %5 : vector<16x12xf32>
    %c0_12 = arith.constant 0 : index
    %c0_13 = arith.constant 0 : index
    %14 = vector.load %arg5[%c0_12, %c0_13] : memref<12x128xf32, #tpu.memory_space<vmem>>, vector<12x128xf32>
    %cst_14 = arith.constant dense<0.000000e+00> : vector<16x128xf32>
    %15 = tpu.matmul %13, %14, %cst_14 {dimension_numbers = #tpu.dot_dimension_numbers<[1], [0], [0], [1], [0, 0, 1, 1], [], []>, precision = #tpu.contract_precision<fp32>} : vector<16x12xf32>, vector<12x128xf32>, vector<16x128xf32> -> vector<16x128xf32>
    %16 = arith.addf %12, %15 : vector<16x128xf32>
    %17 = vector.extract_strided_slice %6 {offsets = [0, 0], sizes = [1, 128], strides = [1, 1]} : vector<3x128xf32> to vector<1x128xf32>
    %18 = vector.broadcast %17 : vector<1x128xf32> to vector<16x128xf32>
    %19 = arith.addf %16, %18 : vector<16x128xf32>
    %20 = arith.negf %19 : vector<16x128xf32>
    %21 = math.exp %20 : vector<16x128xf32>
    %cst_15 = arith.constant 1.000000e+00 : f32
    %22 = vector.broadcast %cst_15 : f32 to vector<16x128xf32>
    %23 = arith.addf %22, %21 : vector<16x128xf32>
    %24 = arith.divf %22, %23 : vector<16x128xf32>
    %25 = arith.mulf %19, %24 : vector<16x128xf32>
    %c0_16 = arith.constant 0 : index
    %c0_17 = arith.constant 0 : index
    %c0_18 = arith.constant 0 : index
    %26 = vector.load %arg6[%c0_16, %c0_17, %c0_18] : memref<2x128x128xf32, #tpu.memory_space<vmem>>, vector<1x128x128xf32>
    %27 = vector.shape_cast %26 : vector<1x128x128xf32> to vector<128x128xf32>
    %cst_19 = arith.constant dense<0.000000e+00> : vector<16x128xf32>
    %28 = tpu.matmul %25, %27, %cst_19 {dimension_numbers = #tpu.dot_dimension_numbers<[1], [0], [0], [1], [0, 0, 1, 1], [], []>, precision = #tpu.contract_precision<fp32>} : vector<16x128xf32>, vector<128x128xf32>, vector<16x128xf32> -> vector<16x128xf32>
    %29 = vector.extract_strided_slice %6 {offsets = [1, 0], sizes = [1, 128], strides = [1, 1]} : vector<3x128xf32> to vector<1x128xf32>
    %30 = vector.broadcast %29 : vector<1x128xf32> to vector<16x128xf32>
    %31 = arith.addf %28, %30 : vector<16x128xf32>
    %32 = arith.negf %31 : vector<16x128xf32>
    %33 = math.exp %32 : vector<16x128xf32>
    %cst_20 = arith.constant 1.000000e+00 : f32
    %34 = vector.broadcast %cst_20 : f32 to vector<16x128xf32>
    %35 = arith.addf %34, %33 : vector<16x128xf32>
    %36 = arith.divf %34, %35 : vector<16x128xf32>
    %37 = arith.mulf %31, %36 : vector<16x128xf32>
    %c1 = arith.constant 1 : index
    %c0_21 = arith.constant 0 : index
    %c0_22 = arith.constant 0 : index
    %38 = vector.load %arg6[%c1, %c0_21, %c0_22] : memref<2x128x128xf32, #tpu.memory_space<vmem>>, vector<1x128x128xf32>
    %39 = vector.shape_cast %38 : vector<1x128x128xf32> to vector<128x128xf32>
    %cst_23 = arith.constant dense<0.000000e+00> : vector<16x128xf32>
    %40 = tpu.matmul %37, %39, %cst_23 {dimension_numbers = #tpu.dot_dimension_numbers<[1], [0], [0], [1], [0, 0, 1, 1], [], []>, precision = #tpu.contract_precision<fp32>} : vector<16x128xf32>, vector<128x128xf32>, vector<16x128xf32> -> vector<16x128xf32>
    %41 = vector.extract_strided_slice %6 {offsets = [2, 0], sizes = [1, 128], strides = [1, 1]} : vector<3x128xf32> to vector<1x128xf32>
    %42 = vector.broadcast %41 : vector<1x128xf32> to vector<16x128xf32>
    %43 = arith.addf %40, %42 : vector<16x128xf32>
    %44 = arith.negf %43 : vector<16x128xf32>
    %45 = math.exp %44 : vector<16x128xf32>
    %cst_24 = arith.constant 1.000000e+00 : f32
    %46 = vector.broadcast %cst_24 : f32 to vector<16x128xf32>
    %47 = arith.addf %46, %45 : vector<16x128xf32>
    %48 = arith.divf %46, %47 : vector<16x128xf32>
    %49 = arith.mulf %43, %48 : vector<16x128xf32>
    %c0_25 = arith.constant 0 : index
    %c0_26 = arith.constant 0 : index
    %50 = vector.load %arg7[%c0_25, %c0_26] : memref<128x12xf32, #tpu.memory_space<vmem>>, vector<128x12xf32>
    %cst_27 = arith.constant dense<0.000000e+00> : vector<16x12xf32>
    %51 = tpu.matmul %49, %50, %cst_27 {dimension_numbers = #tpu.dot_dimension_numbers<[1], [0], [0], [1], [0, 0, 1, 1], [], []>, precision = #tpu.contract_precision<fp32>} : vector<16x128xf32>, vector<128x12xf32>, vector<16x12xf32> -> vector<16x12xf32>
    %52 = arith.mulf %5, %51 : vector<16x12xf32>
    %c0_28 = arith.constant 0 : index
    %c0_29 = arith.constant 0 : index
    %53 = vector.load %arg8[%c0_28, %c0_29] : memref<12x3xf32, #tpu.memory_space<vmem>>, vector<12x3xf32>
    %cst_30 = arith.constant dense<0.000000e+00> : vector<16x3xf32>
    %54 = tpu.matmul %52, %53, %cst_30 {dimension_numbers = #tpu.dot_dimension_numbers<[1], [0], [0], [1], [0, 0, 1, 1], [], []>, precision = #tpu.contract_precision<fp32>} : vector<16x12xf32>, vector<12x3xf32>, vector<16x3xf32> -> vector<16x3xf32>
    %c0_31 = arith.constant 0 : index
    %c0_32 = arith.constant 0 : index
    %55 = vector.load %arg9[%c0_31, %c0_32] : memref<128x32xf32, #tpu.memory_space<vmem>>, vector<128x32xf32>
    %cst_33 = arith.constant dense<0.000000e+00> : vector<16x32xf32>
    %56 = tpu.matmul %37, %55, %cst_33 {dimension_numbers = #tpu.dot_dimension_numbers<[1], [0], [0], [1], [0, 0, 1, 1], [], []>, precision = #tpu.contract_precision<fp32>} : vector<16x128xf32>, vector<128x32xf32>, vector<16x32xf32> -> vector<16x32xf32>
    %c0_34 = arith.constant 0 : index
    %c0_35 = arith.constant 0 : index
    %c0_36 = arith.constant 0 : index
    %57 = vector.load %arg10[%c0_34, %c0_35, %c0_36] : memref<2x32x32xf32, #tpu.memory_space<vmem>>, vector<1x32x32xf32>
    %58 = vector.shape_cast %57 : vector<1x32x32xf32> to vector<32x32xf32>
    %cst_37 = arith.constant dense<0.000000e+00> : vector<16x32xf32>
    %59 = tpu.matmul %56, %58, %cst_37 {dimension_numbers = #tpu.dot_dimension_numbers<[1], [0], [0], [1], [0, 0, 1, 1], [], []>, precision = #tpu.contract_precision<fp32>} : vector<16x32xf32>, vector<32x32xf32>, vector<16x32xf32> -> vector<16x32xf32>
    %60 = vector.extract_strided_slice %7 {offsets = [0, 0], sizes = [1, 32], strides = [1, 1]} : vector<2x32xf32> to vector<1x32xf32>
    %61 = vector.broadcast %60 : vector<1x32xf32> to vector<16x32xf32>
    %62 = arith.addf %59, %61 : vector<16x32xf32>
    %cst_38 = arith.constant 0.000000e+00 : f32
    %63 = vector.broadcast %cst_38 : f32 to vector<16x32xf32>
    %64 = arith.maximumf %62, %63 : vector<16x32xf32>
    %c1_39 = arith.constant 1 : index
    %c0_40 = arith.constant 0 : index
    %c0_41 = arith.constant 0 : index
    %65 = vector.load %arg10[%c1_39, %c0_40, %c0_41] : memref<2x32x32xf32, #tpu.memory_space<vmem>>, vector<1x32x32xf32>
    %66 = vector.shape_cast %65 : vector<1x32x32xf32> to vector<32x32xf32>
    %cst_42 = arith.constant dense<0.000000e+00> : vector<16x32xf32>
    %67 = tpu.matmul %64, %66, %cst_42 {dimension_numbers = #tpu.dot_dimension_numbers<[1], [0], [0], [1], [0, 0, 1, 1], [], []>, precision = #tpu.contract_precision<fp32>} : vector<16x32xf32>, vector<32x32xf32>, vector<16x32xf32> -> vector<16x32xf32>
    %68 = vector.extract_strided_slice %7 {offsets = [1, 0], sizes = [1, 32], strides = [1, 1]} : vector<2x32xf32> to vector<1x32xf32>
    %69 = vector.broadcast %68 : vector<1x32xf32> to vector<16x32xf32>
    %70 = arith.addf %67, %69 : vector<16x32xf32>
    %71 = arith.negf %70 : vector<16x32xf32>
    %72 = math.exp %71 : vector<16x32xf32>
    %cst_43 = arith.constant 1.000000e+00 : f32
    %73 = vector.broadcast %cst_43 : f32 to vector<16x32xf32>
    %74 = arith.addf %73, %72 : vector<16x32xf32>
    %75 = arith.divf %73, %74 : vector<16x32xf32>
    %76 = arith.mulf %75, %56 : vector<16x32xf32>
    %77 = arith.addf %2, %76 : vector<16x32xf32>
    %78 = arith.addf %3, %54 : vector<16x3xf32>
    %79 = tpu.concatenate %77, %78 in 1 : vector<16x32xf32>, vector<16x3xf32> -> vector<16x35xf32>
    %cst_44 = arith.constant 0.000000e+00 : f32
    %80 = vector.broadcast %cst_44 : f32 to vector<16x93xf32>
    %81 = tpu.concatenate %79, %80 in 1 : vector<16x35xf32>, vector<16x93xf32> -> vector<16x128xf32>
    %c0_45 = arith.constant 0 : index
    %c0_46 = arith.constant 0 : index
    %82 = vector.load %arg13[%c0_45, %c0_46] : memref<16x128xf32, #tpu.memory_space<vmem>>, vector<16x128xf32>
    tpu.vector_store %arg13[%c0_45, %c0_46], %81 {strides = array<i32>} : memref<16x128xf32, #tpu.memory_space<vmem>>, vector<16x128xf32>,
    return
  }
  func.func @transform_0(%arg0: i32) -> (i32, i32) {
    %c0_i32 = arith.constant 0 : i32
    %c0_i32_0 = arith.constant 0 : i32
    return %arg0, %c0_i32 : i32, i32
  }
  func.func @transform_1(%arg0: i32) -> (i32, i32) {
    %c0_i32 = arith.constant 0 : i32
    %c0_i32_0 = arith.constant 0 : i32
    return %arg0, %c0_i32 : i32, i32
  }
  func.func @transform_2(%arg0: i32) -> (i32, i32) {
    %c0_i32 = arith.constant 0 : i32
    %c0_i32_0 = arith.constant 0 : i32
    %c0_i32_1 = arith.constant 0 : i32
    return %c0_i32, %c0_i32_0 : i32, i32
  }
  func.func @transform_3(%arg0: i32) -> (i32, i32) {
    %c0_i32 = arith.constant 0 : i32
    %c0_i32_0 = arith.constant 0 : i32
    %c0_i32_1 = arith.constant 0 : i32
    return %c0_i32, %c0_i32_0 : i32, i32
  }
  func.func @transform_4(%arg0: i32) -> (i32, i32) {
    %c0_i32 = arith.constant 0 : i32
    %c0_i32_0 = arith.constant 0 : i32
    %c0_i32_1 = arith.constant 0 : i32
    return %c0_i32, %c0_i32_0 : i32, i32
  }
  func.func @transform_5(%arg0: i32) -> (i32, i32, i32) {
    %c0_i32 = arith.constant 0 : i32
    %c0_i32_0 = arith.constant 0 : i32
    %c0_i32_1 = arith.constant 0 : i32
    %c0_i32_2 = arith.constant 0 : i32
    return %c0_i32, %c0_i32_0, %c0_i32_1 : i32, i32, i32
  }
  func.func @transform_6(%arg0: i32) -> (i32, i32) {
    %c0_i32 = arith.constant 0 : i32
    %c0_i32_0 = arith.constant 0 : i32
    %c0_i32_1 = arith.constant 0 : i32
    return %c0_i32, %c0_i32_0 : i32, i32
  }
  func.func @transform_7(%arg0: i32) -> (i32, i32) {
    %c0_i32 = arith.constant 0 : i32
    %c0_i32_0 = arith.constant 0 : i32
    %c0_i32_1 = arith.constant 0 : i32
    return %c0_i32, %c0_i32_0 : i32, i32
  }
  func.func @transform_8(%arg0: i32) -> (i32, i32) {
    %c0_i32 = arith.constant 0 : i32
    %c0_i32_0 = arith.constant 0 : i32
    %c0_i32_1 = arith.constant 0 : i32
    return %c0_i32, %c0_i32_0 : i32, i32
  }
  func.func @transform_9(%arg0: i32) -> (i32, i32, i32) {
    %c0_i32 = arith.constant 0 : i32
    %c0_i32_0 = arith.constant 0 : i32
    %c0_i32_1 = arith.constant 0 : i32
    %c0_i32_2 = arith.constant 0 : i32
    return %c0_i32, %c0_i32_0, %c0_i32_1 : i32, i32, i32
  }
  func.func @transform_10(%arg0: i32) -> (i32, i32) {
    %c0_i32 = arith.constant 0 : i32
    %c0_i32_0 = arith.constant 0 : i32
    %c0_i32_1 = arith.constant 0 : i32
    return %c0_i32, %c0_i32_0 : i32, i32
  }
  func.func @transform_11(%arg0: i32) -> (i32, i32) {
    %c0_i32 = arith.constant 0 : i32
    %c0_i32_0 = arith.constant 0 : i32
    %c0_i32_1 = arith.constant 0 : i32
    return %c0_i32, %c0_i32_0 : i32, i32
  }
  func.func @transform_12(%arg0: i32) -> (i32, i32) {
    %c0_i32 = arith.constant 0 : i32
    %c0_i32_0 = arith.constant 0 : i32
    return %arg0, %c0_i32 : i32, i32
  }
}

</mosaic_0001>

<bundles_post_ra>
// kernel: tpu_custom_call.1
= control target key start
LH: loop header
LB: loop body
LE: loop exit
PB: predicated region body
PF: predicated region fallthrough
CT: control target
= control target key end

     0   :  { %s11618_s0 = inlined_call_operand.vmem [shape: f32[128,35], index: 0, kind: input, shape index: {}]   ;;  %s11619_s1 = inlined_call_operand.vmem [shape: f32[128,140], index: 1, kind: input, shape index: {}]   ;;  %s11620_s2 = inlined_call_operand.vmem [shape: f32[32,128], index: 2, kind: input, shape index: {}]   ;;  %s11621_s3 = inlined_call_operand.vmem [shape: f32[128,128], index: 3, kind: input, shape index: {}]   ;;  %s11622_s4 = inlined_call_operand.vmem [shape: f32[12,128], index: 4, kind: input, shape index: {}]   ;;  %s11623_s5 = inlined_call_operand.vmem [shape: f32[2,128,128], index: 5, kind: input, shape index: {}]   ;;  %s11624_s6 = inlined_call_operand.vmem [shape: f32[128,12], index: 6, kind: input, shape index: {}]   ;;  %s11625_s7 = inlined_call_operand.vmem [shape: f32[12,3], index: 7, kind: input, shape index: {}]   ;;  %s11626_s8 = inlined_call_operand.vmem [shape: f32[128,32], index: 8, kind: input, shape index: {}]   ;;  %s11627_s9 = inlined_call_operand.vmem [shape: f32[2,32,32], index: 9, kind: input, shape index: {}]   ;;  %s11628_s10 = inlined_call_operand.vmem [shape: f32[3,128], index: 10, kind: input, shape index: {}]   ;;  %s11629_s11 = inlined_call_operand.vmem [shape: f32[2,32], index: 11, kind: input, shape index: {}]   ;;  %s11630_s12 = inlined_call_operand.hbm [shape: f32[128,128], index: 12, kind: output, shape index: {}]  }
   0x1   :  { %11723 = sst [smem:[#allocation26_spill]] %s11618_s0 }
   0x2   :  { %11724 = sst [smem:[#allocation27_spill]] %s11619_s1 }
   0x3   :  { %17 = vsyncpa [#allocation3], 0 }
   0x4   :  { %19 = vsyncpa [#allocation3 + $0x1], 0  ;;  %s9069_s21 = smov 0   ;;  %s9071_s22 = smov 0  }
   0x5   :  { %s9073_s23 = smov 0   ;;  %s9075_s24 = smov 0  }
   0x6 LB: > { %s9090_s25 = sadd.s32 4294967295, %s8998_s24   ;;  %s6786_s26 = sadd.s32 4294967294, %s8998_s24   ;;  %s8998_s24 = sphi %s9075_s24, %s11831_s24   ;;  %s8994_s23 = sphi %s9073_s23, %s11830_s23   ;;  %s8990_s22 = sphi %s9071_s22, %s11829_s22   ;;  %s8986_s21 = sphi %s9069_s21, %s11828_s21  }
   0x7   : > { %s9094_s27 = sadd.s32 1, %s8998_s24   ;;  %s294_s28 = sadd.s32 1, %s8994_s23 }
   0x8   : > { %s291_s29 = ssub.s32 %s8998_s24, %s9094_s27  ;;  %p304_p0 = scmp.ne.s32.totalorder %s8994_s23, %s8990_s22 }
   0x9   : > { %p292_p1 = scmp.eq.s32.totalorder %s291_s29, 0  ;;  %p305_p2 = scmp.eq.s32.totalorder %s9090_s25, 7 }
   0xa   : > { %p310_p3 = scmp.ne.s32.totalorder %s8990_s22, %s8986_s21  ;;  %p311_p4 = scmp.eq.s32.totalorder %s6786_s26, 7 }
   0xb   : > { %s9105_s30 = scalar_select %p292_p1, %s8994_s23, %s294_s28  }
   0xc   : > { %p9107_p5 = por %p305_p2, %p304_p0  ;;  %p9111_p6 = por %p311_p4, %p310_p3 }
   0xd   : > { %p6789_p7 = scmp.ge.s32.totalorder %s8998_s24, 1  ;;  %p378_p8 = scmp.lt.s32.totalorder %s8998_s24, 9 }
   0xf   : > { %p379_p9 = pnand %p6789_p7, %p378_p8 }
  0x11   : > { %382 = sbr.rel (%p379_p9) target bundleno = 2146 (0x862), region = 68 }
  0x16   : > { %v467_v0 = vld [vmem:[%s11621_s3 + $0x78] sm:$0xff]  ;;  %v466_v1 = vld [vmem:[%s11621_s3 + $0x70] sm:$0xff]  ;;  %v465_v2 = vld [vmem:[%s11621_s3 + $0x68] sm:$0xff]  ;;  %s6791_s26 = sshll.u32 %s9090_s25, 1  ;;  %s11727_s1 = sld [smem:[#allocation27_spill]]  ;;  %vm1152_vm0 = vcmask 261120  }
  0x17   : > { %v9127_v3 = vand.u32 4294901760, %v467_v0  ;;  %v9129_v4 = vand.u32 4294901760, %v466_v1  ;;  %v9131_v5 = vand.u32 4294901760, %v465_v2  ;;  %v464_v6 = vld [vmem:[%s11621_s3 + $0x60] sm:$0xff]  ;;  %v463_v7 = vld [vmem:[%s11621_s3 + $0x58] sm:$0xff]  ;;  %v462_v8 = vld [vmem:[%s11621_s3 + $0x50] sm:$0xff] }
  0x18   : > { %v9142_v9 = vand.u32 4294901760, %v464_v6  ;;  %v9144_v10 = vand.u32 4294901760, %v463_v7  ;;  %v9146_v11 = vand.u32 4294901760, %v462_v8  ;;  %v461_v12 = vld [vmem:[%s11621_s3 + $0x48] sm:$0xff]  ;;  %v460_v13 = vld [vmem:[%s11621_s3 + $0x40] sm:$0xff]  ;;  %v459_v18 = vld [vmem:[%s11621_s3 + $0x38] sm:$0xff] }
  0x19   : > { %7527 = vmatprep.subr.mxu0 %v9127_v3  ;;  %v9156_v14 = vsub.f32 %v467_v0, %v9127_v3  ;;  %v9159_v15 = vsub.f32 %v466_v1, %v9129_v4  ;;  %v9161_v16 = vand.u32 4294901760, %v461_v12  ;;  %v9164_v17 = vsub.f32 %v465_v2, %v9131_v5  ;;  %p427_p10 = scmp.lt.s32.totalorder %s6791_s26, 15  ;;  %v458_v28 = vld [vmem:[%s11621_s3 + $0x30] sm:$0xff]  ;;  %v457_v35 = vld [vmem:[%s11621_s3 + $0x28] sm:$0xff]  ;;  %v456_v42 = vld [vmem:[%s11621_s3 + $0x20] sm:$0xff]  ;;  %s11730_s0 = sld [smem:[#allocation26_spill]] }
  0x1a   : > { %7528 = vmatpush3.msra.mxu0 %v9127_v3  ;;  %v9171_v19 = vsub.f32 %v464_v6, %v9142_v9  ;;  %v9174_v20 = vsub.f32 %v463_v7, %v9144_v10  ;;  %v9186_v24 = vand.u32 4294901760, %v460_v13  ;;  %v9194_v26 = vand.u32 4294901760, %v459_v18  ;;  %v455_v48 = vld [vmem:[%s11621_s3 + $0x18] sm:$0xff]  ;;  %v454_v59 = vld [vmem:[%s11621_s3 + $0x10] sm:$0xff]  ;;  %v453_v1 = vld [vmem:[%s11621_s3 + $0x8] sm:$0xff]  ;;  %s9000_s28 = smov 32  }
  0x1b   : > { %7529 = vmatprep.subr.mxu0 %v9129_v4  ;;  %v9178_v21 = vand.u32 4294901760, %v9156_v14  ;;  %v9181_v22 = vand.u32 4294901760, %v9159_v15  ;;  %v9184_v23 = vand.u32 4294901760, %v9164_v17  ;;  %s11833_s26 = smov (!%p427_p10, %s6791_s26), 15  ;;  %v9203_v29 = vsub.f32 %v462_v8, %v9146_v11  ;;  %s6830_s18 = sshll.u32 %s9090_s25, 8 }
  0x1c   : > { %7530 = vmatpush3.msra.mxu0 %v9129_v4  ;;  %v9192_v25 = vand.u32 4294901760, %v9171_v19  ;;  %v9197_v27 = vand.u32 4294901760, %v9174_v20  ;;  %v9213_v33 = vsub.f32 %v461_v12, %v9161_v16  ;;  %s6829_s19 = sshll.u32 %s11833_s26, 4  ;;  %v9226_v39 = vand.u32 4294901760, %v458_v28  ;;  %s6792_s20 = sshll.u32 %s11833_s26, 3 }
  0x1d   : > { %7531 = vmatprep.subr.mxu0 %v9131_v5  ;;  %v573_v30 = vsub.f32 %v9156_v14, %v9178_v21  ;;  %v580_v31 = vsub.f32 %v9159_v15, %v9181_v22  ;;  %v587_v32 = vsub.f32 %v9164_v17, %v9184_v23  ;;  %v9218_v34 = vand.u32 4294901760, %v9203_v29  ;;  %s9231_s16 = scalar_lea.vmem %s11727_s1, %s6829_s19  ;;  %s423_s26 = sand.u32 1, %s8990_s22  }
  0x1e   : > { %7532 = vmatpush3.msra.mxu0 %v9131_v5  ;;  %v594_v38 = vsub.f32 %v9171_v19, %v9192_v25  ;;  %v601_v40 = vsub.f32 %v9174_v20, %v9197_v27  ;;  %v9237_v41 = vand.u32 4294901760, %v9213_v33  ;;  %v9243_v43 = vsub.f32 %v460_v13, %v9186_v24  ;;  %v442_v49 = vld [vmem:[%s9231_s16] sm:$0xff]  ;;  %v444_v56 = vld [vmem:[%s9231_s16 + $0x10] sm:$0xff]  ;;  %s6790_s17 = sshll.u32 %s423_s26, 4  ;;  %s11578_s25 = scalar_lea.sflag [#allocation3], %s423_s26 }
  0x1f   : > { %7533 = vmatprep.subr.mxu0 %v9142_v9  ;;  %v574_v36 = vand.u32 4294901760, %v573_v30  ;;  %v581_v37 = vand.u32 4294901760, %v580_v31  ;;  %v588_v44 = vand.u32 4294901760, %v587_v32  ;;  %v9246_v45 = vand.u32 4294901760, %v457_v35  ;;  %s9482_s15 = scalar_lea.vmem %s11730_s0, %s6792_s20  ;;  %s425_s19 = scalar_lea.vmem [#allocation2], %s6790_s17 }
  0x20   : > { %7534 = vmatpush3.msra.mxu0 %v9142_v9  ;;  %v9249_v46 = vsub.f32 %v459_v18, %v9194_v26  ;;  %v608_v47 = vsub.f32 %v9203_v29, %v9218_v34  ;;  %v595_v50 = vand.u32 4294901760, %v594_v38  ;;  %v9259_v51 = vand.u32 4294901760, %v456_v42  ;;  %v452_v18 = vld [vmem:[%s11621_s3] sm:$0xff]  ;;  %s6712_s20 = sshll.u32 %s425_s19, 4  ;;  %s9001_s17 = smov [#allocation2]   ;;  %s11575_s20 = int_to_ptr.vmem [resolvable:$true] %s6712_s20 }
  0x21   : > { %7535 = vmatprep.subr.mxu0 %v9144_v10  ;;  %7562 = vmatprep.subr.mxu1 %v574_v36  ;;  %v9262_v52 = vand.u32 4294901760, %v9243_v43  ;;  %v9265_v53 = vsub.f32 %v458_v28, %v9226_v39  ;;  %v602_v54 = vand.u32 4294901760, %v601_v40  ;;  %v615_v55 = vsub.f32 %v9213_v33, %v9237_v41 }
  0x22   : > { %7536 = vmatpush3.msra.mxu0 %v9144_v10  ;;  %7563 = vmatpush3.msra.mxu1 %v574_v36  ;;  %v9272_v57 = vand.u32 4294901760, %v455_v48  ;;  %v9275_v58 = vand.u32 4294901760, %v9249_v46  ;;  %v9281_v60 = vsub.f32 %v457_v35, %v9246_v45  ;;  %v9283_v61 = vand.u32 4294901760, %v442_v49 }
  0x23   : > { %7537 = vmatprep.subr.mxu0 %v9146_v11  ;;  %7564 = vmatprep.subr.mxu1 %v581_v37  ;;  %v609_v62 = vand.u32 4294901760, %v608_v47  ;;  %v622_v63 = vsub.f32 %v9243_v43, %v9262_v52  ;;  %v9290_v0 = vand.u32 4294901760, %v9265_v53  ;;  %v9296_v2 = vsub.f32 %v456_v42, %v9259_v51 }
  0x24   : > { %7538 = vmatpush3.msra.mxu0 %v9146_v11  ;;  %7565 = vmatpush3.msra.mxu1 %v581_v37  ;;  %v9298_v6 = vand.u32 4294901760, %v444_v56  ;;  %v616_v7 = vand.u32 4294901760, %v615_v55  ;;  %v9301_v8 = vand.u32 4294901760, %v454_v59  ;;  %v629_v12 = vsub.f32 %v9249_v46, %v9275_v58 }
  0x25   : > { %7539 = vmatprep.subr.mxu0 %v9161_v16  ;;  %7566 = vmatprep.subr.mxu1 %v588_v44  ;;  %v9307_v13 = vand.u32 4294901760, %v9281_v60  ;;  %v9313_v28 = vsub.f32 %v442_v49, %v9283_v61  ;;  %v9316_v30 = vsub.f32 %v455_v48, %v9272_v57  ;;  %v9319_v31 = vand.u32 4294901760, %v453_v1 }
  0x26   : > { %7540 = vmatpush3.msra.mxu0 %v9161_v16  ;;  %7567 = vmatpush3.msra.mxu1 %v588_v44  ;;  %v9322_v32 = vsub.f32 %v444_v56, %v9298_v6  ;;  %v623_v35 = vand.u32 4294901760, %v622_v63  ;;  %v636_v36 = vsub.f32 %v9265_v53, %v9290_v0  ;;  %v9328_v37 = vand.u32 4294901760, %v9296_v2 }
  0x27   : > { %7541 = vmatprep.subr.mxu0 %v9186_v24  ;;  %7568 = vmatprep.subr.mxu1 %v595_v50  ;;  %v9331_v38 = vand.u32 4294901760, %v452_v18  ;;  %v9334_v40 = vsub.f32 %v454_v59, %v9301_v8  ;;  %v630_v42 = vand.u32 4294901760, %v629_v12  ;;  %v643_v44 = vsub.f32 %v9281_v60, %v9307_v13 }
  0x28   : > { %7542 = vmatpush3.msra.mxu0 %v9186_v24  ;;  %7569 = vmatpush3.msra.mxu1 %v595_v50  ;;  %v11632_v47 = vand.u32 4294901760, %v9313_v28  ;;  %v9341_v48 = vand.u32 4294901760, %v9316_v30  ;;  %v11631_v49 = vand.u32 4294901760, %v9322_v32  ;;  %v9346_v50 = vsub.f32 %v453_v1, %v9319_v31 }
  0x29   : > { %7543 = vmatprep.subr.mxu0 %v9194_v26  ;;  %7570 = vmatprep.subr.mxu1 %v602_v54  ;;  %v650_v55 = vsub.f32 %v9296_v2, %v9328_v37  ;;  %v9353_v56 = vand.u32 4294901760, %v9334_v40  ;;  %v9356_v59 = vsub.f32 %v452_v18, %v9331_v38  ;;  %vm1691_vm1 = vcmask 97280  }
  0x2a   : > { %7544 = vmatpush3.msra.mxu0 %v9194_v26  ;;  %7571 = vmatpush3.msra.mxu1 %v602_v54  ;;  %v637_v54 = vand.u32 4294901760, %v636_v36  ;;  %v552_v63 = vsub.f32 %v9313_v28, %v11632_v47  ;;  %v657_v1 = vsub.f32 %v9316_v30, %v9341_v48  ;;  %v9369_v12 = vand.u32 4294901760, %v9346_v50 }
  0x2b   : > { %7545 = vmatprep.subr.mxu0 %v9226_v39  ;;  %7572 = vmatprep.subr.mxu1 %v609_v62  ;;  %v651_v18 = vand.u32 4294901760, %v650_v55  ;;  %v9376_v36 = vand.u32 4294901760, %v9356_v59  ;;  %vm1698_vm2 = vcmask 1043456   ;;  %vm6693_vm3 = vcmask 285696  }
  0x2c   : > { %7546 = vmatpush3.msra.mxu0 %v9226_v39  ;;  %7573 = vmatpush3.msra.mxu1 %v609_v62  ;;  %v644_v62 = vand.u32 4294901760, %v643_v44  ;;  %v658_v44 = vand.u32 4294901760, %v657_v1  ;;  %v671_v55 = vsub.f32 %v9346_v50, %v9369_v12 }
  0x2d   : > { %7547 = vmatprep.subr.mxu0 %v9246_v45  ;;  %7574 = vmatprep.subr.mxu1 %v616_v7  ;;  %v678_v47 = vsub.f32 %v9356_v59, %v9376_v36 }
  0x2e   : > { %7548 = vmatpush3.msra.mxu0 %v9246_v45  ;;  %7575 = vmatpush3.msra.mxu1 %v616_v7  ;;  %v562_v7 = vsub.f32 %v9322_v32, %v11631_v49 }
  0x2f   : > { %7549 = vmatprep.subr.mxu0 %v9259_v51  ;;  %7576 = vmatprep.subr.mxu1 %v623_v35 }
  0x30   : > { %7550 = vmatpush3.msra.mxu0 %v9259_v51  ;;  %7577 = vmatpush3.msra.mxu1 %v623_v35  ;;  %v664_v35 = vsub.f32 %v9334_v40, %v9353_v56  ;;  %v563_v49 = vand.u32 4294901760, %v562_v7 }
  0x31   : > { %7551 = vmatprep.subr.mxu0 %v9272_v57  ;;  %7578 = vmatprep.subr.mxu1 %v630_v42 }
  0x32   : > { %7552 = vmatpush3.msra.mxu0 %v9272_v57  ;;  %7579 = vmatpush3.msra.mxu1 %v630_v42  ;;  %v553_v42 = vand.u32 4294901760, %v552_v63  ;;  %v679_v63 = vand.u32 4294901760, %v678_v47 }
  0x33   : > { %7553 = vmatprep.subr.mxu0 %v9301_v8  ;;  %7580 = vmatprep.subr.mxu1 %v637_v54 }
  0x34   : > { %7554 = vmatpush3.msra.mxu0 %v9301_v8  ;;  %7581 = vmatpush3.msra.mxu1 %v637_v54  ;;  %v665_v54 = vand.u32 4294901760, %v664_v35 }
  0x35   : > { %7555 = vmatprep.subr.mxu0 %v9319_v31  ;;  %7582 = vmatprep.subr.mxu1 %v644_v62 }
  0x36   : > { %7556 = vmatpush3.msra.mxu0 %v9319_v31  ;;  %7583 = vmatpush3.msra.mxu1 %v644_v62  ;;  %v672_v62 = vand.u32 4294901760, %v671_v55 }
  0x37   : > { %7557 = vmatprep.subr.mxu0 %v9331_v38  ;;  %7584 = vmatprep.subr.mxu1 %v651_v18 }
  0x38   : > { %7558 = vmatpush3.msra.mxu0 %v9331_v38  ;;  %7585 = vmatpush3.msra.mxu1 %v651_v18 }
  0x39   : > { %7559 = vmatprep.mubr.f32.mxu0 %v553_v42  ;;  %7586 = vmatprep.subr.mxu1 %v658_v44 }
  0x3a   : > { %7597 = vmatprep.subr.mxu0 %v9156_v14  ;;  %7560 = vmatmul.mubr.f32.vlgmr.msra.gmra.mxu0 %v563_v49  ;;  %v1689_v49 = vld [vmem:[%s11622_s4] sm:$0xff] }
  0x3b   : > { %7587 = vmatpush3.msra.mxu1 %v658_v44  ;;  %7598 = vmatpush3.msra.mxu0 %v9156_v14  ;;  %v11728_v14 = vand.u32 4294901760, %v9313_v28  ;;  %v9643_v1 = vand.u32 4294901760, %v1689_v49 }
  0x3c   : > { %7588 = vmatprep.subr.mxu1 %v665_v54  ;;  %7599 = vmatprep.subr.mxu0 %v9159_v15 }
  0x3d   : > { %7589 = vmatpush3.msra.mxu1 %v665_v54  ;;  %7600 = vmatpush3.msra.mxu0 %v9159_v15  ;;  %v11729_v15 = vand.u32 4294901760, %v9322_v32  ;;  %v1826_v35 = vsub.f32 %v1689_v49, %v9643_v1 }
  0x3e   : > { %7590 = vmatprep.subr.mxu1 %v672_v62  ;;  %7601 = vmatprep.subr.mxu0 %v9164_v17 }
  0x3f   : > { %7591 = vmatpush3.msra.mxu1 %v672_v62  ;;  %7602 = vmatpush3.msra.mxu0 %v9164_v17  ;;  %v1827_v55 = vand.u32 4294901760, %v1826_v35 }
  0x40   : > { %7592 = vmatprep.subr.mxu1 %v679_v63  ;;  %7603 = vmatprep.subr.mxu0 %v9171_v19 }
  0x41   : > { %7593 = vmatpush3.msra.mxu1 %v679_v63  ;;  %7594 = vmatprep.mubr.f32.mxu1 %v9283_v61 }
  0x42   : > { %7604 = vmatpush3.msra.mxu0 %v9171_v19  ;;  %7595 = vmatmul.mubr.f32.vlgmr.msra.gmra.mxu1 %v9298_v6  ;;  %v450_v19 = vld [vmem:[%s11620_s2 + $0x10] sm:$0xff] }
  0x43   : > { %7605 = vmatprep.subr.mxu0 %v9174_v20  ;;  %7632 = vmatprep.subr.mxu1 %v9127_v3 }
  0x44   : > { %7606 = vmatpush3.msra.mxu0 %v9174_v20  ;;  %7633 = vmatpush3.msra.mxu1 %v9127_v3 }
  0x45   : > { %7607 = vmatprep.subr.mxu0 %v9203_v29  ;;  %7634 = vmatprep.subr.mxu1 %v9129_v4 }
  0x46   : > { %7608 = vmatpush3.msra.mxu0 %v9203_v29  ;;  %7635 = vmatpush3.msra.mxu1 %v9129_v4 }
  0x47   : > { %7609 = vmatprep.subr.mxu0 %v9213_v33  ;;  %7636 = vmatprep.subr.mxu1 %v9131_v5 }
  0x48   : > { %7610 = vmatpush3.msra.mxu0 %v9213_v33  ;;  %7637 = vmatpush3.msra.mxu1 %v9131_v5 }
  0x49   : > { %7611 = vmatprep.subr.mxu0 %v9243_v43  ;;  %7638 = vmatprep.subr.mxu1 %v9142_v9 }
  0x4a   : > { %7612 = vmatpush3.msra.mxu0 %v9243_v43  ;;  %7639 = vmatpush3.msra.mxu1 %v9142_v9 }
  0x4b   : > { %7613 = vmatprep.subr.mxu0 %v9249_v46  ;;  %7640 = vmatprep.subr.mxu1 %v9144_v10 }
  0x4c   : > { %7614 = vmatpush3.msra.mxu0 %v9249_v46  ;;  %7641 = vmatpush3.msra.mxu1 %v9144_v10 }
  0x4d   : > { %7615 = vmatprep.subr.mxu0 %v9265_v53  ;;  %7642 = vmatprep.subr.mxu1 %v9146_v11 }
  0x4e   : > { %7616 = vmatpush3.msra.mxu0 %v9265_v53  ;;  %7643 = vmatpush3.msra.mxu1 %v9146_v11 }
  0x4f   : > { %7617 = vmatprep.subr.mxu0 %v9281_v60  ;;  %7644 = vmatprep.subr.mxu1 %v9161_v16 }
  0x50   : > { %7618 = vmatpush3.msra.mxu0 %v9281_v60  ;;  %7645 = vmatpush3.msra.mxu1 %v9161_v16 }
  0x51   : > { %7619 = vmatprep.subr.mxu0 %v9296_v2  ;;  %7646 = vmatprep.subr.mxu1 %v9186_v24 }
  0x52   : > { %7620 = vmatpush3.msra.mxu0 %v9296_v2  ;;  %7647 = vmatpush3.msra.mxu1 %v9186_v24 }
  0x53   : > { %7621 = vmatprep.subr.mxu0 %v9316_v30  ;;  %7648 = vmatprep.subr.mxu1 %v9194_v26 }
  0x54   : > { %7622 = vmatpush3.msra.mxu0 %v9316_v30  ;;  %7649 = vmatpush3.msra.mxu1 %v9194_v26 }
  0x55   : > { %7623 = vmatprep.subr.mxu0 %v9334_v40  ;;  %7650 = vmatprep.subr.mxu1 %v9226_v39 }
  0x56   : > { %7624 = vmatpush3.msra.mxu0 %v9334_v40  ;;  %7651 = vmatpush3.msra.mxu1 %v9226_v39  ;;  %v1690_v40 = vld [vmem:[%s11622_s4 + $0x8] sm:$0xf] }
  0x57   : > { %7625 = vmatprep.subr.mxu0 %v9346_v50  ;;  %7652 = vmatprep.subr.mxu1 %v9246_v45  ;;  %v1700_v47 = vsel %vm1698_vm2, %v1690_v40, 0 }
  0x58   : > { %7626 = vmatpush3.msra.mxu0 %v9346_v50  ;;  %7653 = vmatpush3.msra.mxu1 %v9246_v45 }
  0x59   : > { %7627 = vmatprep.subr.mxu0 %v9356_v59  ;;  %7654 = vmatprep.subr.mxu1 %v9259_v51 }
  0x5a   : > { %7628 = vmatpush3.msra.mxu0 %v9356_v59  ;;  %7629 = vmatprep.mubr.f32.mxu0 %v9313_v28 }
  0x5b   : > { %7655 = vmatpush3.msra.mxu1 %v9259_v51  ;;  %7630 = vmatmul.mubr.f32.vlgmr.msra.gmra.mxu0 %v9322_v32 }
  0x5c   : > { %7656 = vmatprep.subr.mxu1 %v9272_v57  ;;  %7667 = vmatprep.subr.mxu0 %v9178_v21 }
  0x5d   : > { %7657 = vmatpush3.msra.mxu1 %v9272_v57  ;;  %7668 = vmatpush3.msra.mxu0 %v9178_v21  ;;  %v9525_v21 = vand.u32 4294901760, %v450_v19 }
  0x5e   : > { %7658 = vmatprep.subr.mxu1 %v9301_v8  ;;  %7669 = vmatprep.subr.mxu0 %v9181_v22 }
  0x5f   : > { %7659 = vmatpush3.msra.mxu1 %v9301_v8  ;;  %7670 = vmatpush3.msra.mxu0 %v9181_v22  ;;  %v448_v22 = vld [vmem:[%s11620_s2] sm:$0xff]  ;;  %v9552_v29 = vsub.f32 %v450_v19, %v9525_v21 }
  0x60   : > { %7660 = vmatprep.subr.mxu1 %v9319_v31  ;;  %7671 = vmatprep.subr.mxu0 %v9184_v23 }
  0x61   : > { %7661 = vmatpush3.msra.mxu1 %v9319_v31  ;;  %7672 = vmatpush3.msra.mxu0 %v9184_v23  ;;  %v9571_v43 = vand.u32 4294901760, %v9552_v29 }
  0x62   : > { %7662 = vmatprep.subr.mxu1 %v9331_v38  ;;  %7673 = vmatprep.subr.mxu0 %v9192_v25 }
  0x63   : > { %7663 = vmatpush3.msra.mxu1 %v9331_v38  ;;  %7664 = vmatprep.mubr.f32.mxu1 %v11728_v14  ;;  %v1828_v14 = vsub.f32 %v1826_v35, %v1827_v55 }
  0x64   : > { %7674 = vmatpush3.msra.mxu0 %v9192_v25  ;;  %7665 = vmatmul.mubr.f32.vlgmr.msra.gmra.mxu1 %v11729_v15 }
  0x65   : > { %7675 = vmatprep.subr.mxu0 %v9197_v27  ;;  %7702 = vmatprep.subr.mxu1 %v9127_v3 }
  0x66   : > { %7676 = vmatpush3.msra.mxu0 %v9197_v27  ;;  %7703 = vmatpush3.msra.mxu1 %v9127_v3  ;;  %v440_v3 = vld [vmem:[%s9482_s15] sm:$0xff]  ;;  %v9549_v27 = vand.u32 4294901760, %v448_v22 }
  0x67   : > { %7677 = vmatprep.subr.mxu0 %v9218_v34  ;;  %7704 = vmatprep.subr.mxu1 %v9129_v4 }
  0x68   : > { %7678 = vmatpush3.msra.mxu0 %v9218_v34  ;;  %7705 = vmatpush3.msra.mxu1 %v9129_v4  ;;  %v441_v4 = vld [vmem:[%s9482_s15 + $0x8] sm:$0xff] }
  0x69   : > { %7679 = vmatprep.subr.mxu0 %v9237_v41  ;;  %7706 = vmatprep.subr.mxu1 %v9131_v5 }
  0x6a   : > { %7680 = vmatpush3.msra.mxu0 %v9237_v41  ;;  %7707 = vmatpush3.msra.mxu1 %v9131_v5  ;;  %v451_v5 = vld [vmem:[%s11620_s2 + $0x18] sm:$0xff] }
  0x6b   : > { %7681 = vmatprep.subr.mxu0 %v9262_v52  ;;  %7708 = vmatprep.subr.mxu1 %v9142_v9  ;;  %v9507_v17 = vand.u32 4294901760, %v451_v5 }
  0x6c   : > { %7682 = vmatpush3.msra.mxu0 %v9262_v52  ;;  %7709 = vmatpush3.msra.mxu1 %v9142_v9  ;;  %v1154_v9 = vsel %vm1152_vm0, %v440_v3, 0 }
  0x6d   : > { %7683 = vmatprep.subr.mxu0 %v9275_v58  ;;  %7710 = vmatprep.subr.mxu1 %v9144_v10  ;;  %v9533_v23 = vsub.f32 %v451_v5, %v9507_v17  ;;  %v1829_v5 = vand.u32 4294901760, %v1828_v14 }
  0x6e   : > { %7684 = vmatpush3.msra.mxu0 %v9275_v58  ;;  %7711 = vmatpush3.msra.mxu1 %v9144_v10  ;;  %v1157_v10 = vsel %vm1152_vm0, %v441_v4, 0 }
  0x6f   : > { %7685 = vmatprep.subr.mxu0 %v9290_v0  ;;  %7712 = vmatprep.subr.mxu1 %v9146_v11  ;;  %v9521_v20 = vand.u32 4294901760, %v1157_v10  ;;  %v9557_v33 = vand.u32 4294901760, %v9533_v23 }
  0x70   : > { %7686 = vmatpush3.msra.mxu0 %v9290_v0  ;;  %7713 = vmatpush3.msra.mxu1 %v9146_v11  ;;  %v9514_v11 = vand.u32 4294901760, %v1154_v9 }
  0x71   : > { %7687 = vmatprep.subr.mxu0 %v9307_v13  ;;  %7714 = vmatprep.subr.mxu1 %v9161_v16  ;;  %v1276_v46 = vsub.f32 %v9533_v23, %v9557_v33 }
  0x72   : > { %7688 = vmatpush3.msra.mxu0 %v9307_v13  ;;  %7715 = vmatpush3.msra.mxu1 %v9161_v16  ;;  %v449_v16 = vld [vmem:[%s11620_s2 + $0x8] sm:$0xff]  ;;  %v9540_v25 = vsub.f32 %v1154_v9, %v9514_v11  ;;  %v2241_v9 = vld [vmem:[%s11623_s5 + $0x78] sm:$0xff] }
  0x73   : > { %7689 = vmatprep.subr.mxu0 %v9328_v37  ;;  %7716 = vmatprep.subr.mxu1 %v9186_v24  ;;  %v1277_v60 = vand.u32 4294901760, %v1276_v46  ;;  %v443_v13 = vld [vmem:[%s9231_s16 + $0x8] sm:$0xff] }
  0x74   : > { %7690 = vmatpush3.msra.mxu0 %v9328_v37  ;;  %7717 = vmatpush3.msra.mxu1 %v9186_v24  ;;  %v9537_v24 = vand.u32 4294901760, %v449_v16  ;;  %v1230_v34 = vand.u32 4294901760, %v9540_v25  ;;  %v1687_v32 = vmul.f32 %v443_v13, %v443_v13 }
  0x75   : > { %7691 = vmatprep.subr.mxu0 %v9341_v48  ;;  %7718 = vmatprep.subr.mxu1 %v9194_v26 }
  0x76   : > { %7692 = vmatpush3.msra.mxu0 %v9341_v48  ;;  %7719 = vmatpush3.msra.mxu1 %v9194_v26  ;;  %v9545_v26 = vsub.f32 %v1157_v10, %v9521_v20  ;;  %v9712_v10 = vand.u32 4294901760, %v2241_v9 }
  0x77   : > { %7693 = vmatprep.subr.mxu0 %v9353_v56  ;;  %7720 = vmatprep.subr.mxu1 %v9226_v39 }
  0x78   : > { %7694 = vmatpush3.msra.mxu0 %v9353_v56  ;;  %7721 = vmatpush3.msra.mxu1 %v9226_v39  ;;  %v9563_v39 = vsub.f32 %v449_v16, %v9537_v24  ;;  %v1240_v41 = vand.u32 4294901760, %v9545_v26  ;;  %v9635_v56 = vand.u32 4294901760, %v1700_v47  ;;  %v9718_v19 = vsub.f32 %v2241_v9, %v9712_v10  ;;  %v2239_v16 = vld [vmem:[%s11623_s5 + $0x68] sm:$0xff] }
  0x79   : > { %7695 = vmatprep.subr.mxu0 %v9369_v12  ;;  %7722 = vmatprep.subr.mxu1 %v9246_v45 }
  0x7a   : > { %7696 = vmatpush3.msra.mxu0 %v9369_v12  ;;  %7723 = vmatpush3.msra.mxu1 %v9246_v45  ;;  %v9574_v45 = vsub.f32 %v448_v22, %v9549_v27  ;;  %v9586_v52 = vand.u32 4294901760, %v9563_v39  ;;  %v1241_v53 = vsub.f32 %v9545_v26, %v1240_v41  ;;  %v1819_v12 = vsub.f32 %v1700_v47, %v9635_v56 }
  0x7b   : > { %7697 = vmatprep.subr.mxu0 %v9376_v36  ;;  %7724 = vmatprep.subr.mxu1 %v9259_v51  ;;  %v9733_v22 = vand.u32 4294901760, %v2239_v16 }
  0x7c   : > { %7698 = vmatpush3.msra.mxu0 %v9376_v36  ;;  %7699 = vmatprep.mubr.f32.mxu0 %v9283_v61  ;;  %v9598_v58 = vand.u32 4294901760, %v9574_v45  ;;  %v1290_v2 = vsub.f32 %v9563_v39, %v9586_v52  ;;  %v1820_v42 = vand.u32 4294901760, %v1819_v12 }
  0x7d   : > { %7725 = vmatpush3.msra.mxu1 %v9259_v51  ;;  %7700 = vmatmul.mubr.f32.vlgmr.msra.gmra.mxu0 %v9298_v6  ;;  %v1231_v51 = vsub.f32 %v9540_v25, %v1230_v34 }
  0x7e   : > { %7726 = vmatprep.subr.mxu1 %v9272_v57  ;;  %7737 = vmatprep.subr.mxu0 %v9507_v17  ;;  %v1297_v30 = vsub.f32 %v9574_v45, %v9598_v58  ;;  %v1821_v62 = vsub.f32 %v1819_v12, %v1820_v42 }
  0x7f   : > { %7727 = vmatpush3.msra.mxu1 %v9272_v57  ;;  %7738 = vmatpush3.msra.mxu0 %v9507_v17  ;;  %v1283_v57 = vsub.f32 %v9552_v29, %v9571_v43  ;;  %v1232_v0 = vand.u32 4294901760, %v1231_v51 }
  0x80   : > { %7728 = vmatprep.subr.mxu1 %v9301_v8  ;;  %7739 = vmatprep.subr.mxu0 %v9525_v21  ;;  %v1822_v3 = vand.u32 4294901760, %v1821_v62 }
  0x81   : > { %7729 = vmatpush3.msra.mxu1 %v9301_v8  ;;  %7740 = vmatpush3.msra.mxu0 %v9525_v21  ;;  %v1242_v8 = vand.u32 4294901760, %v1241_v53  ;;  %v1284_v28 = vand.u32 4294901760, %v1283_v57 }
  0x82   : > { %7730 = vmatprep.subr.mxu1 %v9319_v31  ;;  %7741 = vmatprep.subr.mxu0 %v9537_v24 }
  0x83   : > { %7731 = vmatpush3.msra.mxu1 %v9319_v31  ;;  %7734 = vmatprep.mubr.f32.mxu1 %v9283_v61  ;;  %v445_v31 = vld [vmem:[%s9231_s16 + $0x18] sm:$0xff]  ;;  %v1291_v61 = vand.u32 4294901760, %v1290_v2 }
  0x84   : > { %7732 = vmatprep.subr.mxu1 %v9331_v38  ;;  %7742 = vmatpush3.msra.mxu0 %v9537_v24  ;;  %v1688_v37 = vmul.f32 %v445_v31, %v445_v31 }
  0x85   : > { %7733 = vmatpush3.msra.mxu1 %v9331_v38  ;;  %7743 = vmatprep.subr.mxu0 %v9549_v27  ;;  %v1298_v38 = vand.u32 4294901760, %v1297_v30 }
  0x86   : > { %7735 = vmatmul.mubr.f32.vlgmr.msra.gmra.mxu1 %v9298_v6  ;;  %7748 = vmatprep.subr.mxu1 %v1277_v60  ;;  %v1693_v6 = vsel %vm1691_vm1, %v1687_v32, 0  ;;  %v1696_v48 = vsel %vm1691_vm1, %v1688_v37, 0 }
  0x87   : > { %7744 = vmatpush3.msra.mxu0 %v9549_v27  ;;  %7745 = vmatprep.mubr.f32.mxu0 %v1232_v0  ;;  %v9631_v50 = vand.u32 4294901760, %v1693_v6  ;;  %v9639_v59 = vand.u32 4294901760, %v1696_v48 }
  0x88   : > { %7749 = vmatpush3.msra.mxu1 %v1277_v60  ;;  %7746 = vmatmul.mubr.f32.vlgmr.msra.gmra.mxu0 %v1242_v8 }
  0x89   : > { %7750 = vmatprep.subr.mxu1 %v1284_v28  ;;  %7759 = vmatprep.subr.mxu0 %v9533_v23  ;;  %v9648_v7 = vsub.f32 %v1693_v6, %v9631_v50  ;;  %v9656_v18 = vsub.f32 %v1696_v48, %v9639_v59 }
  0x8a   : > { %7751 = vmatpush3.msra.mxu1 %v1284_v28  ;;  %7760 = vmatpush3.msra.mxu0 %v9533_v23  ;;  %v2238_v23 = vld [vmem:[%s11623_s5 + $0x60] sm:$0xff] }
  0x8b   : > { %7752 = vmatprep.subr.mxu1 %v1291_v61  ;;  %7761 = vmatprep.subr.mxu0 %v9552_v29  ;;  %v1771_v36 = vand.u32 4294901760, %v9648_v7  ;;  %v1781_v44 = vand.u32 4294901760, %v9656_v18  ;;  %v2234_v28 = vld [vmem:[%s11623_s5 + $0x40] sm:$0xff] }
  0x8c   : > { %7753 = vmatpush3.msra.mxu1 %v1291_v61  ;;  %7762 = vmatpush3.msra.mxu0 %v9552_v29  ;;  %v2237_v29 = vld [vmem:[%s11623_s5 + $0x58] sm:$0xff]  ;;  %v9802_v61 = vand.u32 4294901760, %v2234_v28 }
  0x8d   : > { %7754 = vmatprep.subr.mxu1 %v1298_v38  ;;  %7763 = vmatprep.subr.mxu0 %v9563_v39  ;;  %v1772_v54 = vsub.f32 %v9648_v7, %v1771_v36  ;;  %v1782_v63 = vsub.f32 %v9656_v18, %v1781_v44 }
  0x8e   : > { %7755 = vmatpush3.msra.mxu1 %v1298_v38  ;;  %7756 = vmatprep.mubr.f32.mxu1 %v9514_v11  ;;  %v2233_v38 = vld [vmem:[%s11623_s5 + $0x38] sm:$0xff]  ;;  %v9817_v6 = vsub.f32 %v2234_v28, %v9802_v61 }
  0x8f   : > { %7764 = vmatpush3.msra.mxu0 %v9563_v39  ;;  %7757 = vmatmul.mubr.f32.vlgmr.msra.gmra.mxu1 %v9521_v20  ;;  %v1773_v15 = vand.u32 4294901760, %v1772_v54  ;;  %v1783_v4 = vand.u32 4294901760, %v1782_v63  ;;  %v9819_v47 = vand.u32 4294901760, %v2233_v38  ;;  %v2230_v54 = vld [vmem:[%s11623_s5 + $0x20] sm:$0xff] }
  0x90   : > { %7765 = vmatprep.subr.mxu0 %v9574_v45  ;;  %7770 = vmatprep.subr.mxu1 %v9507_v17 }
  0x91   : > { %7766 = vmatpush3.msra.mxu0 %v9574_v45  ;;  %7767 = vmatprep.mubr.f32.mxu0 %v9540_v25  ;;  %v2236_v45 = vld [vmem:[%s11623_s5 + $0x50] sm:$0xff] }
  0x92   : > { %7771 = vmatpush3.msra.mxu1 %v9507_v17  ;;  %7768 = vmatmul.mubr.f32.vlgmr.msra.gmra.mxu0 %v9545_v26  ;;  %v9746_v26 = vsub.f32 %v2239_v16, %v9733_v22  ;;  %v9775_v53 = vand.u32 4294901760, %v2236_v45 }
  0x93   : > { %7772 = vmatprep.subr.mxu1 %v9525_v21  ;;  %7781 = vmatprep.subr.mxu0 %v9557_v33 }
  0x94   : > { %7773 = vmatpush3.msra.mxu1 %v9525_v21  ;;  %7782 = vmatpush3.msra.mxu0 %v9557_v33  ;;  %v9758_v39 = vand.u32 4294901760, %v9746_v26  ;;  %v9787_v2 = vsub.f32 %v2236_v45, %v9775_v53 }
  0x95   : > { %7774 = vmatprep.subr.mxu1 %v9537_v24  ;;  %7783 = vmatprep.subr.mxu0 %v9571_v43 }
  0x96   : > { %7775 = vmatpush3.msra.mxu1 %v9537_v24  ;;  %7784 = vmatpush3.msra.mxu0 %v9571_v43  ;;  %11733 = vst [vmem:[#allocation7_spill] sm:$0xff] %v9758_v39  ;;  %v9764_v43 = vand.u32 4294901760, %v2237_v29  ;;  %v2365_v51 = vsub.f32 %v9746_v26, %v9758_v39  ;;  %v9800_v31 = vand.u32 4294901760, %v9787_v2 }
  0x97   : > { %7776 = vmatprep.subr.mxu1 %v9549_v27  ;;  %7785 = vmatprep.subr.mxu0 %v9586_v52 }
  0x98   : > { %7777 = vmatpush3.msra.mxu1 %v9549_v27  ;;  %7778 = vmatprep.mubr.f32.mxu1 %v1230_v34  ;;  %v9778_v57 = vsub.f32 %v2237_v29, %v9764_v43  ;;  %v2366_v60 = vand.u32 4294901760, %v2365_v51  ;;  %11736 = vst [vmem:[#allocation10_spill] sm:$0xff] %v9800_v31  ;;  %v2386_v40 = vsub.f32 %v9787_v2, %v9800_v31  ;;  %v2227_v51 = vld [vmem:[%s11623_s5 + $0x8] sm:$0xff] }
  0x99   : > { %7786 = vmatpush3.msra.mxu0 %v9586_v52  ;;  %7779 = vmatmul.mubr.f32.vlgmr.msra.gmra.mxu1 %v1240_v41  ;;  %v9910_v28 = vand.u32 4294901760, %v2227_v51 }
  0x9a   : > { %7787 = vmatprep.subr.mxu0 %v9598_v58  ;;  %7792 = vmatprep.subr.mxu1 %v9507_v17  ;;  %v9791_v8 = vand.u32 4294901760, %v9778_v57 }
  0x9b   : > { %7788 = vmatpush3.msra.mxu0 %v9598_v58  ;;  %7789 = vmatprep.mubr.f32.mxu0 %v9514_v11  ;;  %v2235_v58 = vld [vmem:[%s11623_s5 + $0x48] sm:$0xff] }
  0x9c   : > { %7793 = vmatpush3.msra.mxu1 %v9507_v17  ;;  %7790 = vmatmul.mubr.f32.vlgmr.msra.gmra.mxu0 %v9521_v20  ;;  %v2240_v17 = vld [vmem:[%s11623_s5 + $0x70] sm:$0xff]  ;;  %11735 = vst [vmem:[#allocation9_spill] sm:$0xff] %v9791_v8  ;;  %v9793_v13 = vand.u32 4294901760, %v2235_v58  ;;  %v2379_v32 = vsub.f32 %v9778_v57, %v9791_v8 }
  0x9d   : > { %7794 = vmatprep.subr.mxu1 %v9525_v21  ;;  %7803 = vmatprep.subr.mxu0 %v9635_v56 }
  0x9e   : > { %7795 = vmatpush3.msra.mxu1 %v9525_v21  ;;  %7804 = vmatpush3.msra.mxu0 %v9635_v56  ;;  %v9808_v37 = vsub.f32 %v2235_v58, %v9793_v13  ;;  %v2380_v48 = vand.u32 4294901760, %v2379_v32  ;;  %v2226_v32 = vld [vmem:[%s11623_s5] sm:$0xff] }
  0x9f   : > { %7796 = vmatprep.subr.mxu1 %v9537_v24  ;;  %7800 = vmatprep.mubr.f32.mxu1 %v9514_v11  ;;  %v9720_v11 = vand.u32 4294901760, %v2240_v17 }
  0xa0   : > { %7797 = vmatpush3.msra.mxu1 %v9537_v24  ;;  %7805 = vmatprep.subr.mxu0 %v9643_v1  ;;  %v9823_v49 = vand.u32 4294901760, %v9808_v37 }
  0xa1   : > { %7798 = vmatprep.subr.mxu1 %v9549_v27  ;;  %7806 = vmatpush3.msra.mxu0 %v9643_v1  ;;  %v9731_v21 = vsub.f32 %v2240_v17, %v9720_v11 }
  0xa2   : > { %7799 = vmatpush3.msra.mxu1 %v9549_v27  ;;  %7807 = vmatprep.mubr.f32.mxu0 %v1773_v15  ;;  %v9748_v27 = vand.u32 4294901760, %v2238_v23  ;;  %11737 = vst [vmem:[#allocation11_spill] sm:$0xff] %v9823_v49 }
  0xa3   : > { %7801 = vmatmul.mubr.f32.vlgmr.msra.gmra.mxu1 %v9521_v20  ;;  %7810 = vmatprep.subr.mxu1 %v1822_v3  ;;  %v9728_v20 = vand.u32 4294901760, %v9718_v19  ;;  %v9743_v25 = vand.u32 4294901760, %v9731_v21 }
  0xa4   : > { %7808 = vmatmul.mubr.f32.vlgmr.msra.gmra.mxu0 %v1783_v4  ;;  %7811 = vmatpush3.msra.mxu1 %v1822_v3  ;;  %v9761_v41 = vsub.f32 %v2238_v23, %v9748_v27  ;;  %v9868_v3 = vand.u32 4294901760, %v2230_v54  ;;  %v2229_v4 = vld [vmem:[%s11623_s5 + $0x18] sm:$0xff] }
  0xa5   : > { %7817 = vmatprep.subr.mxu0 %v1819_v12  ;;  %7812 = vmatprep.subr.mxu1 %v1829_v5  ;;  %11731 = vst [vmem:[#allocation5_spill] sm:$0xff] %v9728_v20  ;;  %v2351_v24 = vsub.f32 %v9718_v19, %v9728_v20  ;;  %11732 = vst [vmem:[#allocation6_spill] sm:$0xff] %v9743_v25  ;;  %v2358_v34 = vsub.f32 %v9731_v21, %v9743_v25  ;;  %v9879_v16 = vand.u32 4294901760, %v2229_v4 }
  0xa6   : > { %7818 = vmatpush3.msra.mxu0 %v1819_v12  ;;  %7813 = vmatpush3.msra.mxu1 %v1829_v5  ;;  %v9773_v52 = vand.u32 4294901760, %v9761_v41  ;;  %v2393_v12 = vsub.f32 %v9808_v37, %v9823_v49  ;;  %v9883_v23 = vsub.f32 %v2230_v54, %v9868_v3 }
  0xa7   : > { %7814 = vmatprep.mubr.f32.mxu1 %v9631_v50  ;;  %7819 = vmatprep.subr.mxu0 %v1826_v35  ;;  %v2352_v33 = vand.u32 4294901760, %v2351_v24  ;;  %v2359_v46 = vand.u32 4294901760, %v2358_v34  ;;  %v2228_v24 = vld [vmem:[%s11623_s5 + $0x10] sm:$0xff]  ;;  %v9892_v34 = vsub.f32 %v2229_v4, %v9879_v16 }
  0xa8   : > { %7815 = vmatmul.mubr.f32.vlgmr.msra.gmra.mxu1 %v9639_v59  ;;  %7820 = vmatpush3.msra.mxu0 %v1826_v35  ;;  %11734 = vst [vmem:[#allocation8_spill] sm:$0xff] %v9773_v52  ;;  %v2372_v0 = vsub.f32 %v9761_v41, %v9773_v52  ;;  %v9894_v45 = vand.u32 4294901760, %v2228_v24 }
  0xa9   : > { %7821 = vmatprep.mubr.f32.mxu0 %v9648_v7  ;;  %7824 = vmatprep.subr.mxu1 %v9635_v56  ;;  %11742 = vst [vmem:[#allocation16_spill] sm:$0xff] %v9892_v34 }
  0xaa   : > { %7822 = vmatmul.mubr.f32.vlgmr.msra.gmra.mxu0 %v9656_v18  ;;  %7825 = vmatpush3.msra.mxu1 %v9635_v56  ;;  %v2373_v30 = vand.u32 4294901760, %v2372_v0  ;;  %v2231_v18 = vld [vmem:[%s11623_s5 + $0x28] sm:$0xff]  ;;  %v9908_v0 = vsub.f32 %v2228_v24, %v9894_v45 }
  0xab   : > { %7831 = vmatprep.subr.mxu0 %v1820_v42  ;;  %7826 = vmatprep.subr.mxu1 %v9643_v1 }
  0xac   : > { %7832 = vmatpush3.msra.mxu0 %v1820_v42  ;;  %7827 = vmatpush3.msra.mxu1 %v9643_v1  ;;  %11745 = vst [vmem:[#allocation19_spill] sm:$0xff] %v9908_v0 }
  0xad   : > { %7828 = vmatprep.mubr.f32.mxu1 %v1771_v36  ;;  %7833 = vmatprep.subr.mxu0 %v1827_v55 }
  0xae   : > { %7829 = vmatmul.mubr.f32.vlgmr.msra.gmra.mxu1 %v1781_v44  ;;  %7834 = vmatpush3.msra.mxu0 %v1827_v55  ;;  %v9852_v44 = vand.u32 4294901760, %v2231_v18  ;;  %v2394_v55 = vand.u32 4294901760, %v2393_v12 }
  0xaf   : > { %7835 = vmatprep.mubr.f32.mxu0 %v9631_v50  ;;  %7838 = vmatprep.subr.mxu1 %v9635_v56 }
  0xb0   : > { %7836 = vmatmul.mubr.f32.vlgmr.msra.gmra.mxu0 %v9639_v59  ;;  %7839 = vmatpush3.msra.mxu1 %v9635_v56  ;;  %v2387_v56 = vand.u32 4294901760, %v2386_v40  ;;  %v9865_v15 = vsub.f32 %v2231_v18, %v9852_v44  ;;  %v9922_v40 = vand.u32 4294901760, %v9908_v0 }
  0xb1   : > { %7840 = vmatprep.subr.mxu1 %v9643_v1  ;;  %7842 = vmatprep.mubr.f32.mxu1 %v9631_v50  ;;  %v2232_v50 = vld [vmem:[%s11623_s5 + $0x30] sm:$0xff] }
  0xb2   : > { %7841 = vmatpush3.msra.mxu1 %v9643_v1  ;;  %7845 = vmatprep.subr.mxu0 %v9712_v10  ;;  %v9833_v1 = vsub.f32 %v2233_v38, %v9819_v47  ;;  %v9835_v7 = vand.u32 4294901760, %v2232_v50  ;;  %v9877_v17 = vand.u32 4294901760, %v9865_v15  ;;  %11746 = vst [vmem:[#allocation20_spill] sm:$0xff] %v9922_v40  ;;  %v2442_v18 = vsub.f32 %v9908_v0, %v9922_v40 }
  0xb3   : > { %7843 = vmatmul.mubr.f32.vlgmr.msra.gmra.mxu1 %v9639_v59  ;;  %7846 = vmatpush3.msra.mxu0 %v9712_v10  ;;  %v9830_v59 = vand.u32 4294901760, %v9817_v6 }
  0xb4   : > { %7847 = vmatprep.subr.mxu0 %v9720_v11  ;;  %7880 = vmatprep.subr.mxu1 %v2352_v33  ;;  %v9847_v36 = vand.u32 4294901760, %v9833_v1  ;;  %v9850_v42 = vsub.f32 %v2232_v50, %v9835_v7  ;;  %11741 = vst [vmem:[#allocation15_spill] sm:$0xff] %v9877_v17  ;;  %v9927_v50 = vand.u32 4294901760, %v2226_v32  ;;  %v2443_v54 = vand.u32 4294901760, %v2442_v18 }
  0xb5   : > { %7848 = vmatpush3.msra.mxu0 %v9720_v11  ;;  %7881 = vmatpush3.msra.mxu1 %v2352_v33  ;;  %11738 = vst [vmem:[#allocation12_spill] sm:$0xff] %v9830_v59  ;;  %v2400_v35 = vsub.f32 %v9817_v6, %v9830_v59  ;;  %v2421_v33 = vsub.f32 %v9865_v15, %v9877_v17 }
  0xb6   : > { %7849 = vmatprep.subr.mxu0 %v9733_v22  ;;  %7882 = vmatprep.subr.mxu1 %v2359_v46  ;;  %11739 = vst [vmem:[#allocation13_spill] sm:$0xff] %v9847_v36  ;;  %v2407_v63 = vsub.f32 %v9833_v1, %v9847_v36  ;;  %v9862_v14 = vand.u32 4294901760, %v9850_v42 }
  0xb7   : > { %7850 = vmatpush3.msra.mxu0 %v9733_v22  ;;  %7883 = vmatpush3.msra.mxu1 %v2359_v46  ;;  %v2401_v62 = vand.u32 4294901760, %v2400_v35  ;;  %v9898_v46 = vand.u32 4294901760, %v9883_v23  ;;  %v2422_v58 = vand.u32 4294901760, %v2421_v33 }
  0xb8   : > { %7851 = vmatprep.subr.mxu0 %v9748_v27  ;;  %7884 = vmatprep.subr.mxu1 %v2366_v60  ;;  %11740 = vst [vmem:[#allocation14_spill] sm:$0xff] %v9862_v14  ;;  %v2408_v5 = vand.u32 4294901760, %v2407_v63  ;;  %v2414_v9 = vsub.f32 %v9850_v42, %v9862_v14 }
  0xb9   : > { %7852 = vmatpush3.msra.mxu0 %v9748_v27  ;;  %7885 = vmatpush3.msra.mxu1 %v2366_v60  ;;  %11743 = vst [vmem:[#allocation17_spill] sm:$0xff] %v9898_v46  ;;  %v9905_v60 = vand.u32 4294901760, %v9892_v34 }
  0xba   : > { %7853 = vmatprep.subr.mxu0 %v9764_v43  ;;  %7886 = vmatprep.subr.mxu1 %v2373_v30  ;;  %v2415_v29 = vand.u32 4294901760, %v2414_v9 }
  0xbb   : > { %7854 = vmatpush3.msra.mxu0 %v9764_v43  ;;  %7887 = vmatpush3.msra.mxu1 %v2373_v30  ;;  %11744 = vst [vmem:[#allocation18_spill] sm:$0xff] %v9905_v60  ;;  %v2428_v30 = vsub.f32 %v9883_v23, %v9898_v46  ;;  %v2435_v38 = vsub.f32 %v9892_v34, %v9905_v60 }
  0xbc   : > { %7855 = vmatprep.subr.mxu0 %v9775_v53  ;;  %7888 = vmatprep.subr.mxu1 %v2380_v48 }
  0xbd   : > { %7856 = vmatpush3.msra.mxu0 %v9775_v53  ;;  %7889 = vmatpush3.msra.mxu1 %v2380_v48  ;;  %v9925_v48 = vsub.f32 %v2227_v51, %v9910_v28  ;;  %v2436_v12 = vand.u32 4294901760, %v2435_v38 }
  0xbe   : > { %7857 = vmatprep.subr.mxu0 %v9793_v13  ;;  %7890 = vmatprep.subr.mxu1 %v2387_v56 }
  0xbf   : > { %7858 = vmatpush3.msra.mxu0 %v9793_v13  ;;  %7891 = vmatpush3.msra.mxu1 %v2387_v56  ;;  %11747 = vst [vmem:[#allocation21_spill] sm:$0xff] %v9925_v48  ;;  %v2429_v56 = vand.u32 4294901760, %v2428_v30  ;;  %v9934_v35 = vand.u32 4294901760, %v9925_v48 }
  0xc0   : > { %7859 = vmatprep.subr.mxu0 %v9802_v61  ;;  %7892 = vmatprep.subr.mxu1 %v2394_v55 }
  0xc1   : > { %7860 = vmatpush3.msra.mxu0 %v9802_v61  ;;  %7893 = vmatpush3.msra.mxu1 %v2394_v55  ;;  %11748 = vst [vmem:[#allocation22_spill] sm:$0xff] %v9934_v35  ;;  %v9937_v55 = vsub.f32 %v2226_v32, %v9927_v50 }
  0xc2   : > { %7861 = vmatprep.subr.mxu0 %v9819_v47  ;;  %7894 = vmatprep.subr.mxu1 %v2401_v62 }
  0xc3   : > { %7862 = vmatpush3.msra.mxu0 %v9819_v47  ;;  %7895 = vmatpush3.msra.mxu1 %v2401_v62  ;;  %11749 = vst [vmem:[#allocation23_spill] sm:$0xff] %v9937_v55  ;;  %v2449_v62 = vsub.f32 %v9925_v48, %v9934_v35  ;;  %v9944_v63 = vand.u32 4294901760, %v9937_v55 }
  0xc4   : > { %7863 = vmatprep.subr.mxu0 %v9835_v7  ;;  %7896 = vmatprep.subr.mxu1 %v2408_v5 }
  0xc5   : > { %7864 = vmatpush3.msra.mxu0 %v9835_v7  ;;  %7897 = vmatpush3.msra.mxu1 %v2408_v5  ;;  %11750 = vst [vmem:[#allocation24_spill] sm:$0xff] %v9944_v63  ;;  %v2450_v4 = vand.u32 4294901760, %v2449_v62  ;;  %v2456_v5 = vsub.f32 %v9937_v55, %v9944_v63 }
  0xc6   : > { %7865 = vmatprep.subr.mxu0 %v9852_v44  ;;  %7898 = vmatprep.subr.mxu1 %v2415_v29 }
  0xc7   : > { %7866 = vmatpush3.msra.mxu0 %v9852_v44  ;;  %7899 = vmatpush3.msra.mxu1 %v2415_v29  ;;  %v2457_v9 = vand.u32 4294901760, %v2456_v5 }
  0xc8   : > { %7867 = vmatprep.subr.mxu0 %v9868_v3  ;;  %7900 = vmatprep.subr.mxu1 %v2422_v58 }
  0xc9   : > { %7868 = vmatpush3.msra.mxu0 %v9868_v3  ;;  %7901 = vmatpush3.msra.mxu1 %v2422_v58 }
  0xca   : > { %7869 = vmatprep.subr.mxu0 %v9879_v16  ;;  %7902 = vmatprep.subr.mxu1 %v2429_v56 }
  0xcb   : > { %7870 = vmatpush3.msra.mxu0 %v9879_v16  ;;  %7903 = vmatpush3.msra.mxu1 %v2429_v56 }
  0xcc   : > { %7871 = vmatprep.subr.mxu0 %v9894_v45  ;;  %7904 = vmatprep.subr.mxu1 %v2436_v12 }
  0xcd   : > { %7872 = vmatpush3.msra.mxu0 %v9894_v45  ;;  %7905 = vmatpush3.msra.mxu1 %v2436_v12 }
  0xce   : > { %7873 = vmatprep.subr.mxu0 %v9910_v28  ;;  %7906 = vmatprep.subr.mxu1 %v2443_v54 }
  0xcf   : > { %7874 = vmatpush3.msra.mxu0 %v9910_v28  ;;  %7907 = vmatpush3.msra.mxu1 %v2443_v54 }
  0xd0   : > { %7875 = vmatprep.subr.mxu0 %v9927_v50  ;;  %7908 = vmatprep.subr.mxu1 %v2450_v4 }
  0xd1   : > { %7876 = vmatpush3.msra.mxu0 %v9927_v50  ;;  %7909 = vmatpush3.msra.mxu1 %v2450_v4 }
  0xd2   : > { %7915 = vmatprep.subr.mxu0 %v9718_v19  ;;  %7910 = vmatprep.subr.mxu1 %v2457_v9 }
  0xd3   : > { %7911 = vmatpush3.msra.mxu1 %v2457_v9 }
  0xd4   : > { %7950 = vmatprep.subr.mxu1 %v9712_v10 }
  0xfa   : > { %v7561_v24 = vpop.f32.mrf.mxu0 }
  0xfc   : > { %v555_v29 = vpop.f32.mrf.mxu0 }
 0x102   : > { %v7596_v33 = vpop.f32.mrf.mxu1 }
 0x103   : > { %v723_v35 = vadd.f32 %v7596_v33, %v7561_v24 }
 0x104   : > { %v716_v58 = vpop.f32.mrf.mxu1 }
 0x105   : > { %v717_v40 = vadd.f32 %v716_v58, %v555_v29 }
 0x11b   : > { %v7631_v51 = vpop.f32.mrf.mxu0 }
 0x11c   : > { %v834_v60 = vadd.f32 %v7631_v51, %v723_v35  ;;  %v2206_v51 = vlaneseq }
 0x11d   : > { %v826_v30 = vpop.f32.mrf.mxu0 }
 0x11e   : > { %v827_v14 = vadd.f32 %v826_v30, %v717_v40 }
 0x124   : > { %v7666_v32 = vpop.f32.mrf.mxu1 }
 0x125   : > { %v931_v36 = vadd.f32 %v7666_v32, %v834_v60 }
 0x126   : > { %v922_v56 = vpop.f32.mrf.mxu1 }
 0x127   : > { %v923_v49 = vadd.f32 %v922_v56, %v827_v14 }
 0x13d   : > { %v7701_v38 = vpop.f32.mrf.mxu0 }
 0x13e   : > { %v1056_v31 = vadd.f32 %v7701_v38, %v931_v36 }
 0x13f   : > { %v1049_v12 = vpop.f32.mrf.mxu0 }
 0x140   : > { %v1050_v52 = vadd.f32 %v1049_v12, %v923_v49 }
 0x146   : > { %v7736_v18 = vpop.f32.mrf.mxu1 }
 0x147   : > { %v1149_v39 = vadd.f32 %v7736_v18, %v1056_v31  ;;  %v9951_v31 = vshrl.u32 %v2206_v51, 7 }
 0x148   : > { %v7747_v62 = vpop.f32.mrf.mxu0  ;;  %v1142_v54 = vpop.f32.mrf.mxu1 }
 0x149   : > { %v1143_v55 = vadd.f32 %v1142_v54, %v1050_v52  ;;  %v1245_v34 = vadd.f32 %v7747_v62, %v1149_v39  ;;  %11751 = vst [vmem:[#allocation25_spill] sm:$0xff] %v9951_v31  ;;  %v9957_v54 = vld [vmem:[%s11628_s10] sm:$0x7] }
 0x14a   : > { %v1234_v5 = vpop.f32.mrf.mxu0 }
 0x14b   : > { %v1235_v33 = vadd.f32 %v1234_v5, %v1143_v55 }
 0x14f   : > { %v7758_v63 = vpop.f32.mrf.mxu1 }
 0x150   : > { %v1342_v29 = vadd.f32 %v7758_v63, %v1245_v34  ;;  %v11673_v63 = vsub.s32 0, %v9951_v31 }
 0x151   : > { %v1335_v9 = vpop.f32.mrf.mxu1 }
 0x152   : > { %v7769_v4 = vpop.f32.mrf.mxu0  ;;  %v1336_v40 = vadd.f32 %v1335_v9, %v1235_v33 }
 0x153   : > { %v1429_v32 = vadd.f32 %v7769_v4, %v1342_v29 }
 0x154   : > { %v1421_v46 = vpop.f32.mrf.mxu0 }
 0x155   : > { %v1422_v52 = vadd.f32 %v1421_v46, %v1336_v40 }
 0x159   : > { %v7780_v17 = vpop.f32.mrf.mxu1 }
 0x15a   : > { %v1514_v56 = vadd.f32 %v7780_v17, %v1429_v32 }
 0x15b   : > { %v1505_v8 = vpop.f32.mrf.mxu1 }
 0x15c   : > { %v7791_v59 = vpop.f32.mrf.mxu0  ;;  %v1506_v18 = vadd.f32 %v1505_v8, %v1422_v52  ;;  %v2209_v8 = vrot.slane %v9957_v54, %v11673_v63 }
 0x15d   : > { %v1603_v5 = vadd.f32 %v7791_v59, %v1514_v56 }
 0x15e   : > { %v1596_v25 = vpop.f32.mrf.mxu0 }
 0x15f   : > { %v1597_v46 = vadd.f32 %v1596_v25, %v1506_v18 }
 0x163   : > { %v7802_v20 = vpop.f32.mrf.mxu1 }
 0x164   : > { %v7809_v48 = vpop.f32.mrf.mxu0  ;;  %v1684_v17 = vadd.f32 %v7802_v20, %v1603_v5 }
 0x165   : > { %v1677_v0 = vpop.f32.mrf.mxu1 }
 0x166   : > { %v1775_v24 = vpop.f32.mrf.mxu0 }
 0x168   : > { %v7816_v35 = vpop.f32.mrf.mxu1 }
 0x169   : > { %v1873_v58 = vadd.f32 %v7816_v35, %v7809_v48  ;;  %v1678_v35 = vadd.f32 %v1677_v0, %v1597_v46 }
 0x16a   : > { %v7823_v60 = vpop.f32.mrf.mxu0  ;;  %v1866_v30 = vpop.f32.mrf.mxu1 }
 0x16b   : > { %v1956_v14 = vadd.f32 %v7823_v60, %v1873_v58  ;;  %v1867_v36 = vadd.f32 %v1866_v30, %v1775_v24 }
 0x16c   : > { %v1948_v49 = vpop.f32.mrf.mxu0 }
 0x16d   : > { %v1949_v38 = vadd.f32 %v1948_v49, %v1867_v36 }
 0x16e   : > { %v7830_v12 = vpop.f32.mrf.mxu1 }
 0x16f   : > { %v2039_v39 = vadd.f32 %v7830_v12, %v1956_v14 }
 0x170   : > { %v7837_v55 = vpop.f32.mrf.mxu0  ;;  %v2030_v34 = vpop.f32.mrf.mxu1 }
 0x171   : > { %v2122_v48 = vadd.f32 %v7837_v55, %v2039_v39  ;;  %v2031_v62 = vadd.f32 %v2030_v34, %v1949_v38 }
 0x172   : > { %v2115_v4 = vpop.f32.mrf.mxu0 }
 0x173   : > { %v2116_v9 = vadd.f32 %v2115_v4, %v2031_v62  ;;  %v7844_v24 = vpop.f32.mrf.mxu1 }
 0x174   : > { %v2201_v33 = vadd.f32 %v7844_v24, %v2122_v48  ;;  %v6812_v24 = vld [vmem:[%s11623_s5 + $0xe0] sm:$0xff] }
 0x175   : > { %v2194_v29 = vpop.f32.mrf.mxu1 }
 0x176   : > { %v2205_v51 = vadd.f32 %v2201_v33, %v1684_v17  ;;  %v2195_v58 = vadd.f32 %v2194_v29, %v2116_v9  ;;  %v6811_v29 = vld [vmem:[%s11623_s5 + $0xd8] sm:$0xff] }
 0x178   : > { %v2211_v40 = vadd.f32 %v2209_v8, %v2205_v51  ;;  %v2204_v60 = vadd.f32 %v2195_v58, %v1678_v35 }
 0x17a   : > { %v6797_v30 = vmul.f32 -1.442695, %v2211_v40  ;;  %v2210_v14 = vadd.f32 %v2209_v8, %v2204_v60  ;;  %v10148_v8 = vand.u32 4294901760, %v6812_v24  ;;  %v10164_v60 = vand.u32 4294901760, %v6811_v29 }
 0x17c   : > { %8901 = vpow2.f32 %v6797_v30  ;;  %v6796_v59 = vmul.f32 -1.442695, %v2210_v14  ;;  %v6810_v30 = vld [vmem:[%s11623_s5 + $0xd0] sm:$0xff] }
 0x17e   : > { %8903 = vpow2.f32 %v6796_v59 }
 0x189   : > { %v8902_v36 = vpop.eup %8901 }
 0x18a   : > { %v2219_v32 = vadd.f32 1.0, %v8902_v36 }
 0x18b   : > { %v8904_v25 = vpop.eup %8903 }
 0x18c   : > { %8905 = vrcp.f32 %v2219_v32  ;;  %v2218_v20 = vadd.f32 1.0, %v8904_v25  ;;  %v10175_v32 = vand.u32 4294901760, %v6810_v30  ;;  %v10178_v25 = vsub.f32 %v6811_v29, %v10164_v60 }
 0x18e   : > { %8907 = vrcp.f32 %v2218_v20  ;;  %v6809_v20 = vld [vmem:[%s11623_s5 + $0xc8] sm:$0xff] }
 0x199   : > { %v8906_v49 = vpop.eup %8905 }
 0x19a   : > { %v2225_v38 = vmul.f32 %v8906_v49, %v2211_v40  ;;  %v10161_v40 = vsub.f32 %v6812_v24, %v10148_v8 }
 0x19b   : > { %v8908_v52 = vpop.eup %8907 }
 0x19c   : > { %v2224_v56 = vmul.f32 %v8908_v52, %v2210_v14  ;;  %v9962_v0 = vand.u32 4294901760, %v2225_v38  ;;  %v10173_v36 = vand.u32 4294901760, %v10161_v40  ;;  %v10187_v52 = vsub.f32 %v6810_v30, %v10175_v32 }
 0x19e   : > { %v9964_v12 = vand.u32 4294901760, %v2224_v56  ;;  %v9967_v39 = vsub.f32 %v2225_v38, %v9962_v0  ;;  %v3091_v38 = vsub.f32 %v10161_v40, %v10173_v36 }
 0x1a0   : > { %7912 = vmatprep.mubr.f32.mxu1 %v9964_v12  ;;  %v2328_v18 = vsub.f32 %v2224_v56, %v9964_v12  ;;  %v2339_v55 = vand.u32 4294901760, %v9967_v39  ;;  %v10189_v56 = vand.u32 4294901760, %v6809_v20 }
 0x1a1   : > { %7913 = vmatmul.mubr.f32.vlgmr.msra.gmra.mxu1 %v9962_v0 }
 0x1a2   : > { %7951 = vmatpush3.msra.mxu1 %v9712_v10  ;;  %v2329_v34 = vand.u32 4294901760, %v2328_v18  ;;  %v2340_v48 = vsub.f32 %v9967_v39, %v2339_v55 }
 0x1a3   : > { %7952 = vmatprep.subr.mxu1 %v9720_v11 }
 0x1a4   : > { %7953 = vmatpush3.msra.mxu1 %v9720_v11  ;;  %7982 = vmatprep.mubr.f32.mxu1 %v2329_v34  ;;  %v2330_v62 = vsub.f32 %v2328_v18, %v2329_v34  ;;  %v2341_v4 = vand.u32 4294901760, %v2340_v48 }
 0x1a5   : > { %7954 = vmatprep.subr.mxu1 %v9733_v22 }
 0x1a6   : > { %7955 = vmatpush3.msra.mxu1 %v9733_v22  ;;  %v2331_v5 = vand.u32 4294901760, %v2330_v62  ;;  %v6807_v62 = vld [vmem:[%s11623_s5 + $0xb8] sm:$0xff] }
 0x1a7   : > { %7956 = vmatprep.subr.mxu1 %v9748_v27 }
 0x1a8   : > { %7957 = vmatpush3.msra.mxu1 %v9748_v27  ;;  %7877 = vmatprep.mubr.f32.mxu0 %v2331_v5 }
 0x1a9   : > { %7958 = vmatprep.subr.mxu1 %v9764_v43  ;;  %7878 = vmatmul.mubr.f32.vlgmr.msra.gmra.mxu0 %v2341_v4 }
 0x1aa   : > { %7916 = vmatpush3.msra.mxu0 %v9718_v19  ;;  %7959 = vmatpush3.msra.mxu1 %v9764_v43  ;;  %v11752_v19 = vld [vmem:[#allocation16_spill] sm:$0xff] }
 0x1ab   : > { %7917 = vmatprep.subr.mxu0 %v9731_v21  ;;  %7947 = vmatprep.mubr.f32.mxu0 %v2328_v18  ;;  %v10200_v18 = vand.u32 4294901760, %v10187_v52 }
 0x1ac   : > { %7960 = vmatprep.subr.mxu1 %v9775_v53  ;;  %7918 = vmatpush3.msra.mxu0 %v9731_v21  ;;  %v11753_v21 = vld [vmem:[#allocation19_spill] sm:$0xff] }
 0x1ad   : > { %7961 = vmatpush3.msra.mxu1 %v9775_v53  ;;  %7919 = vmatprep.subr.mxu0 %v9746_v26  ;;  %v3105_v5 = vsub.f32 %v10187_v52, %v10200_v18 }
 0x1ae   : > { %7962 = vmatprep.subr.mxu1 %v9793_v13  ;;  %7920 = vmatpush3.msra.mxu0 %v9746_v26  ;;  %v11754_v26 = vld [vmem:[#allocation21_spill] sm:$0xff] }
 0x1af   : > { %7963 = vmatpush3.msra.mxu1 %v9793_v13  ;;  %7921 = vmatprep.subr.mxu0 %v9761_v41 }
 0x1b0   : > { %7964 = vmatprep.subr.mxu1 %v9802_v61  ;;  %7922 = vmatpush3.msra.mxu0 %v9761_v41  ;;  %v11755_v41 = vld [vmem:[#allocation23_spill] sm:$0xff] }
 0x1b1   : > { %7965 = vmatpush3.msra.mxu1 %v9802_v61  ;;  %7923 = vmatprep.subr.mxu0 %v9778_v57 }
 0x1b2   : > { %7966 = vmatprep.subr.mxu1 %v9819_v47  ;;  %7924 = vmatpush3.msra.mxu0 %v9778_v57  ;;  %v11762_v57 = vld [vmem:[#allocation11_spill] sm:$0xff] }
 0x1b3   : > { %7967 = vmatpush3.msra.mxu1 %v9819_v47  ;;  %7925 = vmatprep.subr.mxu0 %v9787_v2 }
 0x1b4   : > { %7968 = vmatprep.subr.mxu1 %v9835_v7  ;;  %7926 = vmatpush3.msra.mxu0 %v9787_v2  ;;  %v11763_v2 = vld [vmem:[#allocation12_spill] sm:$0xff] }
 0x1b5   : > { %7969 = vmatpush3.msra.mxu1 %v9835_v7  ;;  %7927 = vmatprep.subr.mxu0 %v9808_v37 }
 0x1b6   : > { %7970 = vmatprep.subr.mxu1 %v9852_v44  ;;  %7928 = vmatpush3.msra.mxu0 %v9808_v37  ;;  %v11766_v37 = vld [vmem:[#allocation15_spill] sm:$0xff] }
 0x1b7   : > { %7971 = vmatpush3.msra.mxu1 %v9852_v44  ;;  %7929 = vmatprep.subr.mxu0 %v9817_v6 }
 0x1b8   : > { %7972 = vmatprep.subr.mxu1 %v9868_v3  ;;  %7930 = vmatpush3.msra.mxu0 %v9817_v6  ;;  %v11767_v6 = vld [vmem:[#allocation17_spill] sm:$0xff] }
 0x1b9   : > { %7973 = vmatpush3.msra.mxu1 %v9868_v3  ;;  %7931 = vmatprep.subr.mxu0 %v9833_v1 }
 0x1ba   : > { %7974 = vmatprep.subr.mxu1 %v9879_v16  ;;  %7932 = vmatpush3.msra.mxu0 %v9833_v1  ;;  %v11769_v1 = vld [vmem:[#allocation20_spill] sm:$0xff] }
 0x1bb   : > { %7975 = vmatpush3.msra.mxu1 %v9879_v16  ;;  %7933 = vmatprep.subr.mxu0 %v9850_v42 }
 0x1bc   : > { %7976 = vmatprep.subr.mxu1 %v9894_v45  ;;  %7934 = vmatpush3.msra.mxu0 %v9850_v42  ;;  %v11771_v42 = vld [vmem:[#allocation24_spill] sm:$0xff] }
 0x1bd   : > { %7977 = vmatpush3.msra.mxu1 %v9894_v45  ;;  %7935 = vmatprep.subr.mxu0 %v9865_v15 }
 0x1be   : > { %7978 = vmatprep.subr.mxu1 %v9910_v28  ;;  %7936 = vmatpush3.msra.mxu0 %v9865_v15 }
 0x1bf   : > { %7979 = vmatpush3.msra.mxu1 %v9910_v28  ;;  %7937 = vmatprep.subr.mxu0 %v9883_v23 }
 0x1c0   : > { %7980 = vmatprep.subr.mxu1 %v9927_v50  ;;  %7938 = vmatpush3.msra.mxu0 %v9883_v23 }
 0x1c1   : > { %7981 = vmatpush3.msra.mxu1 %v9927_v50  ;;  %7939 = vmatprep.subr.mxu0 %v11752_v19 }
 0x1c2   : > { %7983 = vmatmul.mubr.f32.vlgmr.msra.gmra.mxu1 %v2339_v55  ;;  %8020 = vmatprep.subr.mxu1 %v9712_v10  ;;  %v10203_v55 = vsub.f32 %v6809_v20, %v10189_v56 }
 0x1c3   : > { %7940 = vmatpush3.msra.mxu0 %v11752_v19  ;;  %8021 = vmatpush3.msra.mxu1 %v9712_v10  ;;  %v11756_v10 = vld [vmem:[#allocation5_spill] sm:$0xff] }
 0x1c4   : > { %8052 = vmatprep.mubr.f32.mxu1 %v9964_v12  ;;  %7941 = vmatprep.subr.mxu0 %v11753_v21  ;;  %v10217_v4 = vand.u32 4294901760, %v10203_v55 }
 0x1c5   : > { %8022 = vmatprep.subr.mxu1 %v9720_v11  ;;  %7942 = vmatpush3.msra.mxu0 %v11753_v21  ;;  %v10222_v21 = vand.u32 4294901760, %v6807_v62 }
 0x1c6   : > { %8023 = vmatpush3.msra.mxu1 %v9720_v11  ;;  %7943 = vmatprep.subr.mxu0 %v11754_v26  ;;  %v11757_v11 = vld [vmem:[#allocation6_spill] sm:$0xff] }
 0x1c7   : > { %8024 = vmatprep.subr.mxu1 %v9733_v22  ;;  %7944 = vmatpush3.msra.mxu0 %v11754_v26 }
 0x1c8   : > { %8025 = vmatpush3.msra.mxu1 %v9733_v22  ;;  %7945 = vmatprep.subr.mxu0 %v11755_v41  ;;  %v11758_v22 = vld [vmem:[#allocation7_spill] sm:$0xff] }
 0x1c9   : > { %8026 = vmatprep.subr.mxu1 %v9748_v27  ;;  %7946 = vmatpush3.msra.mxu0 %v11755_v41  ;;  %v6806_v41 = vld [vmem:[%s11623_s5 + $0xb0] sm:$0xff] }
 0x1ca   : > { %8027 = vmatpush3.msra.mxu1 %v9748_v27  ;;  %7948 = vmatmul.mubr.f32.vlgmr.msra.gmra.mxu0 %v9967_v39  ;;  %v11759_v27 = vld [vmem:[#allocation8_spill] sm:$0xff]  ;;  %v3092_v39 = vand.u32 4294901760, %v3091_v38  ;;  %v6801_v38 = vld [vmem:[%s11623_s5 + $0x88] sm:$0xff] }
 0x1cb   : > { %7985 = vmatprep.subr.mxu0 %v11756_v10  ;;  %8028 = vmatprep.subr.mxu1 %v9764_v43 }
 0x1cc   : > { %7986 = vmatpush3.msra.mxu0 %v11756_v10  ;;  %8017 = vmatprep.mubr.f32.mxu0 %v9964_v12  ;;  %v6808_v12 = vld [vmem:[%s11623_s5 + $0xc0] sm:$0xff]  ;;  %v3106_v10 = vand.u32 4294901760, %v3105_v5  ;;  %v10313_v5 = vand.u32 4294901760, %v6801_v38 }
 0x1cd   : > { %8029 = vmatpush3.msra.mxu1 %v9764_v43  ;;  %7987 = vmatprep.subr.mxu0 %v11757_v11  ;;  %v11760_v43 = vld [vmem:[#allocation9_spill] sm:$0xff]  ;;  %v10205_v34 = vand.u32 4294901760, %v6808_v12 }
 0x1ce   : > { %8030 = vmatprep.subr.mxu1 %v9775_v53  ;;  %7988 = vmatpush3.msra.mxu0 %v11757_v11  ;;  %v3112_v11 = vsub.f32 %v10203_v55, %v10217_v4 }
 0x1cf   : > { %8031 = vmatpush3.msra.mxu1 %v9775_v53  ;;  %7989 = vmatprep.subr.mxu0 %v11758_v22  ;;  %v11761_v53 = vld [vmem:[#allocation10_spill] sm:$0xff]  ;;  %v10220_v19 = vsub.f32 %v6808_v12, %v10205_v34 }
 0x1d0   : > { %8032 = vmatprep.subr.mxu1 %v9793_v13  ;;  %7990 = vmatpush3.msra.mxu0 %v11758_v22 }
 0x1d1   : > { %8033 = vmatpush3.msra.mxu1 %v9793_v13  ;;  %7991 = vmatprep.subr.mxu0 %v11759_v27  ;;  %v11764_v13 = vld [vmem:[#allocation13_spill] sm:$0xff]  ;;  %v10232_v22 = vand.u32 4294901760, %v10220_v19 }
 0x1d2   : > { %8034 = vmatprep.subr.mxu1 %v9802_v61  ;;  %7992 = vmatpush3.msra.mxu0 %v11759_v27  ;;  %v10235_v27 = vsub.f32 %v6807_v62, %v10222_v21 }
 0x1d3   : > { %8035 = vmatpush3.msra.mxu1 %v9802_v61  ;;  %7993 = vmatprep.subr.mxu0 %v11760_v43  ;;  %v11765_v61 = vld [vmem:[#allocation14_spill] sm:$0xff]  ;;  %11772 = vst [vmem:[#allocation16_spill] sm:$0xff] %v10232_v22 }
 0x1d4   : > { %8036 = vmatprep.subr.mxu1 %v9819_v47  ;;  %7994 = vmatpush3.msra.mxu0 %v11760_v43  ;;  %v10238_v43 = vand.u32 4294901760, %v6806_v41 }
 0x1d5   : > { %8037 = vmatpush3.msra.mxu1 %v9819_v47  ;;  %7995 = vmatprep.subr.mxu0 %v11761_v53  ;;  %v11768_v47 = vld [vmem:[#allocation18_spill] sm:$0xff] }
 0x1d6   : > { %8038 = vmatprep.subr.mxu1 %v9835_v7  ;;  %7996 = vmatpush3.msra.mxu0 %v11761_v53  ;;  %v6805_v53 = vld [vmem:[%s11623_s5 + $0xa8] sm:$0xff] }
 0x1d7   : > { %8039 = vmatpush3.msra.mxu1 %v9835_v7  ;;  %7997 = vmatprep.subr.mxu0 %v11762_v57  ;;  %v11770_v7 = vld [vmem:[#allocation22_spill] sm:$0xff] }
 0x1d8   : > { %8040 = vmatprep.subr.mxu1 %v9852_v44  ;;  %7998 = vmatpush3.msra.mxu0 %v11762_v57  ;;  %v3113_v57 = vand.u32 4294901760, %v3112_v11 }
 0x1d9   : > { %8041 = vmatpush3.msra.mxu1 %v9852_v44  ;;  %7999 = vmatprep.subr.mxu0 %v11763_v2  ;;  %v6815_v44 = vld [vmem:[%s11623_s5 + $0xf8] sm:$0xff] }
 0x1da   : > { %8042 = vmatprep.subr.mxu1 %v9868_v3  ;;  %8000 = vmatpush3.msra.mxu0 %v11763_v2  ;;  %v10112_v15 = vand.u32 4294901760, %v6815_v44  ;;  %v3119_v2 = vsub.f32 %v10220_v19, %v10232_v22 }
 0x1db   : > { %8043 = vmatpush3.msra.mxu1 %v9868_v3  ;;  %8001 = vmatprep.subr.mxu0 %v11764_v13  ;;  %v6814_v3 = vld [vmem:[%s11623_s5 + $0xf0] sm:$0xff] }
 0x1dc   : > { %8044 = vmatprep.subr.mxu1 %v9879_v16  ;;  %8002 = vmatpush3.msra.mxu0 %v11764_v13  ;;  %v10120_v23 = vand.u32 4294901760, %v6814_v3  ;;  %v10247_v13 = vand.u32 4294901760, %v10235_v27 }
 0x1dd   : > { %8045 = vmatpush3.msra.mxu1 %v9879_v16  ;;  %8003 = vmatprep.subr.mxu0 %v11765_v61  ;;  %v10118_v16 = vsub.f32 %v6815_v44, %v10112_v15 }
 0x1de   : > { %8046 = vmatprep.subr.mxu1 %v9894_v45  ;;  %8004 = vmatpush3.msra.mxu0 %v11765_v61  ;;  %11773 = vst [vmem:[#allocation19_spill] sm:$0xff] %v10247_v13  ;;  %v10249_v61 = vand.u32 4294901760, %v6805_v53 }
 0x1df   : > { %8047 = vmatpush3.msra.mxu1 %v9894_v45  ;;  %8005 = vmatprep.subr.mxu0 %v11766_v37  ;;  %v6813_v45 = vld [vmem:[%s11623_s5 + $0xe8] sm:$0xff] }
 0x1e0   : > { %8048 = vmatprep.subr.mxu1 %v9910_v28  ;;  %8006 = vmatpush3.msra.mxu0 %v11766_v37  ;;  %v10133_v9 = vand.u32 4294901760, %v6813_v45  ;;  %v10253_v37 = vsub.f32 %v6806_v41, %v10238_v43 }
 0x1e1   : > { %8049 = vmatpush3.msra.mxu1 %v9910_v28  ;;  %8007 = vmatprep.subr.mxu0 %v11767_v6  ;;  %v10128_v28 = vand.u32 4294901760, %v10118_v16 }
 0x1e2   : > { %8050 = vmatprep.subr.mxu1 %v9927_v50  ;;  %8008 = vmatpush3.msra.mxu0 %v11767_v6  ;;  %v10146_v33 = vsub.f32 %v6813_v45, %v10133_v9  ;;  %v6804_v6 = vld [vmem:[%s11623_s5 + $0xa0] sm:$0xff]  ;;  %v10268_v44 = vand.u32 4294901760, %v10253_v37 }
 0x1e3   : > { %8051 = vmatpush3.msra.mxu1 %v9927_v50  ;;  %8009 = vmatprep.subr.mxu0 %v11768_v47  ;;  %v10131_v50 = vsub.f32 %v6814_v3, %v10120_v23  ;;  %v3070_v46 = vsub.f32 %v10118_v16, %v10128_v28  ;;  %v6803_v3 = vld [vmem:[%s11623_s5 + $0x98] sm:$0xff] }
 0x1e4   : > { %8053 = vmatmul.mubr.f32.vlgmr.msra.gmra.mxu1 %v9962_v0  ;;  %8010 = vmatpush3.msra.mxu0 %v11768_v47  ;;  %v10158_v58 = vand.u32 4294901760, %v10146_v33  ;;  %v3120_v47 = vand.u32 4294901760, %v3119_v2  ;;  %11774 = vst [vmem:[#allocation21_spill] sm:$0xff] %v10268_v44  ;;  %v10280_v29 = vand.u32 4294901760, %v6803_v3 }
 0x1e5   : > { %8011 = vmatprep.subr.mxu0 %v11769_v1  ;;  %v10143_v17 = vand.u32 4294901760, %v10131_v50  ;;  %v3071_v35 = vand.u32 4294901760, %v3070_v46 }
 0x1e6   : > { %8012 = vmatpush3.msra.mxu0 %v11769_v1  ;;  %v3084_v59 = vsub.f32 %v10146_v33, %v10158_v58  ;;  %v3126_v1 = vsub.f32 %v10235_v27, %v10247_v13 }
 0x1e7   : > { %8013 = vmatprep.subr.mxu0 %v11770_v7  ;;  %v3077_v51 = vsub.f32 %v10131_v50, %v10143_v17  ;;  %8090 = vmatprep.subr.mxu1 %v3071_v35 }
 0x1e8   : > { %8014 = vmatpush3.msra.mxu0 %v11770_v7  ;;  %8091 = vmatpush3.msra.mxu1 %v3071_v35  ;;  %v3085_v49 = vand.u32 4294901760, %v3084_v59  ;;  %v10262_v7 = vsub.f32 %v6805_v53, %v10249_v61  ;;  %v3127_v45 = vand.u32 4294901760, %v3126_v1  ;;  %v3133_v35 = vsub.f32 %v10253_v37, %v10268_v44 }
 0x1e9   : > { %8015 = vmatprep.subr.mxu0 %v11771_v42  ;;  %v3078_v14 = vand.u32 4294901760, %v3077_v51  ;;  %v6802_v51 = vld [vmem:[%s11623_s5 + $0x90] sm:$0xff]  ;;  %v10295_v59 = vsub.f32 %v6803_v3, %v10280_v29 }
 0x1ea   : > { %8016 = vmatpush3.msra.mxu0 %v11771_v42  ;;  %v10264_v42 = vand.u32 4294901760, %v6804_v6  ;;  %v10275_v24 = vand.u32 4294901760, %v10262_v7  ;;  %v10297_v20 = vand.u32 4294901760, %v6802_v51 }
 0x1eb   : > { %8018 = vmatmul.mubr.f32.vlgmr.msra.gmra.mxu0 %v9962_v0  ;;  %8055 = vmatprep.subr.mxu0 %v10112_v15  ;;  %v10193_v0 = vand.u32 4294901760, %v10178_v25 }
 0x1ec   : > { %8056 = vmatpush3.msra.mxu0 %v10112_v15  ;;  %8092 = vmatprep.subr.mxu1 %v3078_v14  ;;  %11775 = vst [vmem:[#allocation23_spill] sm:$0xff] %v10275_v24  ;;  %v10278_v46 = vsub.f32 %v6804_v6, %v10264_v42  ;;  %v3140_v30 = vsub.f32 %v10262_v7, %v10275_v24 }
 0x1ed   : > { %8057 = vmatprep.subr.mxu0 %v10120_v23  ;;  %8093 = vmatpush3.msra.mxu1 %v3078_v14  ;;  %v3098_v48 = vsub.f32 %v10178_v25, %v10193_v0  ;;  %v10310_v62 = vsub.f32 %v6802_v51, %v10297_v20 }
 0x1ee   : > { %8058 = vmatpush3.msra.mxu0 %v10120_v23  ;;  %8094 = vmatprep.subr.mxu1 %v3085_v49  ;;  %v10292_v14 = vand.u32 4294901760, %v10278_v46  ;;  %v3141_v12 = vand.u32 4294901760, %v3140_v30 }
 0x1ef   : > { %8059 = vmatprep.subr.mxu0 %v10133_v9  ;;  %8095 = vmatpush3.msra.mxu1 %v3085_v49  ;;  %v3099_v26 = vand.u32 4294901760, %v3098_v48  ;;  %v3134_v49 = vand.u32 4294901760, %v3133_v35  ;;  %v10307_v48 = vand.u32 4294901760, %v10295_v59  ;;  %v10322_v11 = vand.u32 4294901760, %v10310_v62 }
 0x1f0   : > { %8060 = vmatpush3.msra.mxu0 %v10133_v9  ;;  %8096 = vmatprep.subr.mxu1 %v3092_v39  ;;  %11776 = vst [vmem:[#allocation5_spill] sm:$0xff] %v10292_v14 }
 0x1f1   : > { %8061 = vmatprep.subr.mxu0 %v10148_v8  ;;  %8097 = vmatpush3.msra.mxu1 %v3092_v39  ;;  %v3147_v39 = vsub.f32 %v10278_v46, %v10292_v14  ;;  %11777 = vst [vmem:[#allocation6_spill] sm:$0xff] %v10307_v48  ;;  %11778 = vst [vmem:[#allocation7_spill] sm:$0xff] %v10322_v11  ;;  %v3161_v6 = vsub.f32 %v10310_v62, %v10322_v11 }
 0x1f2   : > { %8062 = vmatpush3.msra.mxu0 %v10148_v8  ;;  %8098 = vmatprep.subr.mxu1 %v3099_v26 }
 0x1f3   : > { %8063 = vmatprep.subr.mxu0 %v10164_v60  ;;  %8099 = vmatpush3.msra.mxu1 %v3099_v26  ;;  %v6800_v26 = vld [vmem:[%s11623_s5 + $0x80] sm:$0xff]  ;;  %v3148_v41 = vand.u32 4294901760, %v3147_v39  ;;  %v3162_v3 = vand.u32 4294901760, %v3161_v6 }
 0x1f4   : > { %8064 = vmatpush3.msra.mxu0 %v10164_v60  ;;  %8100 = vmatprep.subr.mxu1 %v3106_v10  ;;  %v10324_v53 = vand.u32 4294901760, %v6800_v26 }
 0x1f5   : > { %8065 = vmatprep.subr.mxu0 %v10175_v32  ;;  %8101 = vmatpush3.msra.mxu1 %v3106_v10  ;;  %v3154_v10 = vsub.f32 %v10295_v59, %v10307_v48 }
 0x1f6   : > { %8066 = vmatpush3.msra.mxu0 %v10175_v32  ;;  %8102 = vmatprep.subr.mxu1 %v3113_v57 }
 0x1f7   : > { %8067 = vmatprep.subr.mxu0 %v10189_v56  ;;  %8103 = vmatpush3.msra.mxu1 %v3113_v57  ;;  %v10328_v57 = vsub.f32 %v6801_v38, %v10313_v5  ;;  %v3155_v2 = vand.u32 4294901760, %v3154_v10  ;;  %v11690_v38 = vsub.s32 1, %v9951_v31 }
 0x1f8   : > { %8068 = vmatpush3.msra.mxu0 %v10189_v56  ;;  %8104 = vmatprep.subr.mxu1 %v3120_v47 }
 0x1f9   : > { %8069 = vmatprep.subr.mxu0 %v10205_v34  ;;  %8105 = vmatpush3.msra.mxu1 %v3120_v47  ;;  %v10334_v47 = vsub.f32 %v6800_v26, %v10324_v53  ;;  %v10338_v1 = vand.u32 4294901760, %v10328_v57  ;;  %v2245_v39 = vrot.slane %v9957_v54, %v11690_v38 }
 0x1fa   : > { %8070 = vmatpush3.msra.mxu0 %v10205_v34  ;;  %8106 = vmatprep.subr.mxu1 %v3127_v45 }
 0x1fb   : > { %8071 = vmatprep.subr.mxu0 %v10222_v21  ;;  %8107 = vmatpush3.msra.mxu1 %v3127_v45  ;;  %11779 = vst [vmem:[#allocation8_spill] sm:$0xff] %v10338_v1  ;;  %v10342_v45 = vand.u32 4294901760, %v10334_v47  ;;  %v3168_v35 = vsub.f32 %v10328_v57, %v10338_v1 }
 0x1fc   : > { %8072 = vmatpush3.msra.mxu0 %v10222_v21  ;;  %8108 = vmatprep.subr.mxu1 %v3134_v49 }
 0x1fd   : > { %8073 = vmatprep.subr.mxu0 %v10238_v43  ;;  %8109 = vmatpush3.msra.mxu1 %v3134_v49  ;;  %11780 = vst [vmem:[#allocation9_spill] sm:$0xff] %v10342_v45  ;;  %v3175_v51 = vsub.f32 %v10334_v47, %v10342_v45  ;;  %v3169_v30 = vand.u32 4294901760, %v3168_v35 }
 0x1fe   : > { %8074 = vmatpush3.msra.mxu0 %v10238_v43  ;;  %8110 = vmatprep.subr.mxu1 %v3141_v12 }
 0x1ff   : > { %8075 = vmatprep.subr.mxu0 %v10249_v61  ;;  %8111 = vmatpush3.msra.mxu1 %v3141_v12  ;;  %v3176_v49 = vand.u32 4294901760, %v3175_v51 }
 0x200   : > { %8076 = vmatpush3.msra.mxu0 %v10249_v61  ;;  %8112 = vmatprep.subr.mxu1 %v3148_v41 }
 0x201   : > { %8077 = vmatprep.subr.mxu0 %v10264_v42  ;;  %8113 = vmatpush3.msra.mxu1 %v3148_v41 }
 0x202   : > { %8078 = vmatpush3.msra.mxu0 %v10264_v42  ;;  %8114 = vmatprep.subr.mxu1 %v3155_v2 }
 0x203   : > { %8079 = vmatprep.subr.mxu0 %v10280_v29  ;;  %8115 = vmatpush3.msra.mxu1 %v3155_v2 }
 0x204   : > { %8080 = vmatpush3.msra.mxu0 %v10280_v29  ;;  %8116 = vmatprep.subr.mxu1 %v3162_v3 }
 0x205   : > { %8081 = vmatprep.subr.mxu0 %v10297_v20  ;;  %8117 = vmatpush3.msra.mxu1 %v3162_v3 }
 0x206   : > { %8082 = vmatpush3.msra.mxu0 %v10297_v20  ;;  %8118 = vmatprep.subr.mxu1 %v3169_v30 }
 0x207   : > { %8083 = vmatprep.subr.mxu0 %v10313_v5  ;;  %8119 = vmatpush3.msra.mxu1 %v3169_v30 }
 0x208   : > { %8084 = vmatpush3.msra.mxu0 %v10313_v5  ;;  %8120 = vmatprep.subr.mxu1 %v3176_v49 }
 0x209   : > { %8085 = vmatprep.subr.mxu0 %v10324_v53  ;;  %8121 = vmatpush3.msra.mxu1 %v3176_v49 }
 0x20a   : > { %8086 = vmatpush3.msra.mxu0 %v10324_v53  ;;  %8160 = vmatprep.subr.mxu1 %v10112_v15 }
 0x20b   : > { %8125 = vmatprep.subr.mxu0 %v10118_v16 }
 0x261   : > { %v7914_v26 = vpop.f32.mrf.mxu1 }
 0x263   : > { %v2494_v3 = vpop.f32.mrf.mxu1 }
 0x269   : > { %v7879_v12 = vpop.f32.mrf.mxu0 }
 0x26a   : > { %v2344_v10 = vadd.f32 %v7879_v12, %v2245_v39 }
 0x26b   : > { %v2333_v41 = vpop.f32.mrf.mxu0 }
 0x26c   : > { %v2334_v6 = vadd.f32 %v2333_v41, %v2245_v39  ;;  %v2501_v35 = vadd.f32 %v7914_v26, %v2344_v10 }
 0x26e   : > { %v2495_v49 = vadd.f32 %v2494_v3, %v2334_v6 }
 0x282   : > { %v7984_v51 = vpop.f32.mrf.mxu1 }
 0x284   : > { %v2700_v1 = vpop.f32.mrf.mxu1 }
 0x28a   : > { %v7949_v2 = vpop.f32.mrf.mxu0 }
 0x28b   : > { %v2612_v63 = vadd.f32 %v7949_v2, %v2501_v35 }
 0x28c   : > { %v2604_v30 = vpop.f32.mrf.mxu0 }
 0x28d   : > { %v2605_v45 = vadd.f32 %v2604_v30, %v2495_v49  ;;  %v2709_v11 = vadd.f32 %v7984_v51, %v2612_v63  ;;  %v3671_v30 = vld [vmem:[%s11624_s6 + $0x40] sm:$0xff] }
 0x28f   : > { %v2701_v31 = vadd.f32 %v2700_v1, %v2605_v45 }
 0x2a4   : > { %v8054_v48 = vpop.f32.mrf.mxu1 }
 0x2a6   : > { %v2920_v13 = vpop.f32.mrf.mxu1 }
 0x2ab   : > { %v8019_v14 = vpop.f32.mrf.mxu0 }
 0x2ac   : > { %v2834_v24 = vadd.f32 %v8019_v14, %v2709_v11 }
 0x2ad   : > { %v2827_v44 = vpop.f32.mrf.mxu0 }
 0x2ae   : > { %v2927_v54 = vadd.f32 %v8054_v48, %v2834_v24  ;;  %v2828_v38 = vadd.f32 %v2827_v44, %v2701_v31 }
 0x2b0   : > { %v6799_v12 = vmul.f32 -1.442695, %v2927_v54  ;;  %v2921_v22 = vadd.f32 %v2920_v13, %v2828_v38 }
 0x2b2   : > { %8909 = vpow2.f32 %v6799_v12  ;;  %v6798_v39 = vmul.f32 -1.442695, %v2921_v22 }
 0x2b4   : > { %8911 = vpow2.f32 %v6798_v39  ;;  %v10613_v39 = vand.u32 4294901760, %v3671_v30 }
 0x2bf   : > { %v8910_v26 = vpop.eup %8909 }
 0x2c0   : > { %v2937_v41 = vadd.f32 1.0, %v8910_v26 }
 0x2c1   : > { %v8912_v10 = vpop.eup %8911 }
 0x2c2   : > { %8913 = vrcp.f32 %v2937_v41  ;;  %v2936_v2 = vadd.f32 1.0, %v8912_v10  ;;  %v3670_v41 = vld [vmem:[%s11624_s6 + $0x38] sm:$0xff] }
 0x2c4   : > { %8915 = vrcp.f32 %v2936_v2 }
 0x2cf   : > { %v8914_v63 = vpop.eup %8913 }
 0x2d0   : > { %v2943_v6 = vmul.f32 %v8914_v63, %v2927_v54  ;;  %v10628_v63 = vsub.f32 %v3671_v30, %v10613_v39 }
 0x2d1   : > { %v8916_v3 = vpop.eup %8915 }
 0x2d2   : > { %v10355_v14 = vand.u32 4294901760, %v2943_v6  ;;  %v2942_v11 = vmul.f32 %v8916_v3, %v2921_v22 }
 0x2d4   : > { %11781 = vst [vmem:[#allocation10_spill] sm:$0xff] %v10355_v14  ;;  %v10358_v31 = vsub.f32 %v2943_v6, %v10355_v14  ;;  %v10360_v44 = vand.u32 4294901760, %v2942_v11  ;;  %v10630_v6 = vand.u32 4294901760, %v3670_v41 }
 0x2d6   : > { %11782 = vst [vmem:[#allocation11_spill] sm:$0xff] %v10358_v31  ;;  %11783 = vst [vmem:[#allocation12_spill] sm:$0xff] %v10360_v44  ;;  %v10363_v13 = vsub.f32 %v2942_v11, %v10360_v44  ;;  %8122 = vmatprep.mubr.f32.mxu1 %v10360_v44  ;;  %v10367_v24 = vand.u32 4294901760, %v10358_v31  ;;  %v3669_v11 = vld [vmem:[%s11624_s6 + $0x30] sm:$0xff] }
 0x2d7   : > { %8123 = vmatmul.mubr.f32.vlgmr.msra.gmra.mxu1 %v10355_v14 }
 0x2d8   : > { %11784 = vst [vmem:[#allocation13_spill] sm:$0xff] %v10363_v13  ;;  %11785 = vst [vmem:[#allocation14_spill] sm:$0xff] %v10367_v24  ;;  %8161 = vmatpush3.msra.mxu1 %v10112_v15  ;;  %v10372_v48 = vand.u32 4294901760, %v10363_v13  ;;  %v3059_v22 = vsub.f32 %v10358_v31, %v10367_v24 }
 0x2d9   : > { %8162 = vmatprep.subr.mxu1 %v10120_v23 }
 0x2da   : > { %11786 = vst [vmem:[#allocation15_spill] sm:$0xff] %v10372_v48  ;;  %8163 = vmatpush3.msra.mxu1 %v10120_v23  ;;  %8192 = vmatprep.mubr.f32.mxu1 %v10372_v48  ;;  %v3049_v1 = vsub.f32 %v10363_v13, %v10372_v48  ;;  %v10386_v38 = vand.u32 4294901760, %v3059_v22 }
 0x2db   : > { %8164 = vmatprep.subr.mxu1 %v10133_v9 }
 0x2dc   : > { %8165 = vmatpush3.msra.mxu1 %v10133_v9  ;;  %v10383_v45 = vand.u32 4294901760, %v3049_v1  ;;  %11788 = vst [vmem:[#allocation18_spill] sm:$0xff] %v10386_v38 }
 0x2dd   : > { %8166 = vmatprep.subr.mxu1 %v10148_v8 }
 0x2de   : > { %11787 = vst [vmem:[#allocation17_spill] sm:$0xff] %v10383_v45  ;;  %8167 = vmatpush3.msra.mxu1 %v10148_v8  ;;  %8087 = vmatprep.mubr.f32.mxu0 %v10383_v45 }
 0x2df   : > { %8168 = vmatprep.subr.mxu1 %v10164_v60  ;;  %8088 = vmatmul.mubr.f32.vlgmr.msra.gmra.mxu0 %v10386_v38 }
 0x2e0   : > { %8126 = vmatpush3.msra.mxu0 %v10118_v16  ;;  %8169 = vmatpush3.msra.mxu1 %v10164_v60  ;;  %v11790_v16 = vld [vmem:[#allocation19_spill] sm:$0xff] }
 0x2e1   : > { %8127 = vmatprep.subr.mxu0 %v10131_v50  ;;  %8157 = vmatprep.mubr.f32.mxu0 %v10363_v13 }
 0x2e2   : > { %8170 = vmatprep.subr.mxu1 %v10175_v32  ;;  %8128 = vmatpush3.msra.mxu0 %v10131_v50  ;;  %v11793_v50 = vld [vmem:[#allocation5_spill] sm:$0xff] }
 0x2e3   : > { %8171 = vmatpush3.msra.mxu1 %v10175_v32  ;;  %8129 = vmatprep.subr.mxu0 %v10146_v33 }
 0x2e4   : > { %8172 = vmatprep.subr.mxu1 %v10189_v56  ;;  %8130 = vmatpush3.msra.mxu0 %v10146_v33  ;;  %v11796_v33 = vld [vmem:[#allocation8_spill] sm:$0xff] }
 0x2e5   : > { %8173 = vmatpush3.msra.mxu1 %v10189_v56  ;;  %8131 = vmatprep.subr.mxu0 %v10161_v40 }
 0x2e6   : > { %8174 = vmatprep.subr.mxu1 %v10205_v34  ;;  %8132 = vmatpush3.msra.mxu0 %v10161_v40 }
 0x2e7   : > { %8175 = vmatpush3.msra.mxu1 %v10205_v34  ;;  %8133 = vmatprep.subr.mxu0 %v10178_v25 }
 0x2e8   : > { %8176 = vmatprep.subr.mxu1 %v10222_v21  ;;  %8134 = vmatpush3.msra.mxu0 %v10178_v25  ;;  %v3676_v25 = vld [vmem:[%s11624_s6 + $0x68] sm:$0xff] }
 0x2e9   : > { %8177 = vmatpush3.msra.mxu1 %v10222_v21  ;;  %8135 = vmatprep.subr.mxu0 %v10187_v52 }
 0x2ea   : > { %8178 = vmatprep.subr.mxu1 %v10238_v43  ;;  %8136 = vmatpush3.msra.mxu0 %v10187_v52 }
 0x2eb   : > { %8179 = vmatpush3.msra.mxu1 %v10238_v43  ;;  %8137 = vmatprep.subr.mxu0 %v10203_v55 }
 0x2ec   : > { %8180 = vmatprep.subr.mxu1 %v10249_v61  ;;  %8138 = vmatpush3.msra.mxu0 %v10203_v55 }
 0x2ed   : > { %8181 = vmatpush3.msra.mxu1 %v10249_v61  ;;  %8139 = vmatprep.subr.mxu0 %v10220_v19 }
 0x2ee   : > { %8182 = vmatprep.subr.mxu1 %v10264_v42  ;;  %8140 = vmatpush3.msra.mxu0 %v10220_v19 }
 0x2ef   : > { %8183 = vmatpush3.msra.mxu1 %v10264_v42  ;;  %8141 = vmatprep.subr.mxu0 %v10235_v27 }
 0x2f0   : > { %8184 = vmatprep.subr.mxu1 %v10280_v29  ;;  %8142 = vmatpush3.msra.mxu0 %v10235_v27 }
 0x2f1   : > { %8185 = vmatpush3.msra.mxu1 %v10280_v29  ;;  %8143 = vmatprep.subr.mxu0 %v10253_v37 }
 0x2f2   : > { %8186 = vmatprep.subr.mxu1 %v10297_v20  ;;  %8144 = vmatpush3.msra.mxu0 %v10253_v37 }
 0x2f3   : > { %8187 = vmatpush3.msra.mxu1 %v10297_v20  ;;  %8145 = vmatprep.subr.mxu0 %v10262_v7 }
 0x2f4   : > { %8188 = vmatprep.subr.mxu1 %v10313_v5  ;;  %8146 = vmatpush3.msra.mxu0 %v10262_v7 }
 0x2f5   : > { %8189 = vmatpush3.msra.mxu1 %v10313_v5  ;;  %8147 = vmatprep.subr.mxu0 %v10278_v46 }
 0x2f6   : > { %8190 = vmatprep.subr.mxu1 %v10324_v53  ;;  %8148 = vmatpush3.msra.mxu0 %v10278_v46 }
 0x2f7   : > { %8191 = vmatpush3.msra.mxu1 %v10324_v53  ;;  %8149 = vmatprep.subr.mxu0 %v10295_v59 }
 0x2f8   : > { %8193 = vmatmul.mubr.f32.vlgmr.msra.gmra.mxu1 %v10367_v24  ;;  %8230 = vmatprep.subr.mxu1 %v10112_v15 }
 0x2f9   : > { %8150 = vmatpush3.msra.mxu0 %v10295_v59  ;;  %8231 = vmatpush3.msra.mxu1 %v10112_v15  ;;  %v11789_v15 = vld [vmem:[#allocation16_spill] sm:$0xff] }
 0x2fa   : > { %8262 = vmatprep.mubr.f32.mxu1 %v10360_v44  ;;  %8151 = vmatprep.subr.mxu0 %v10310_v62 }
 0x2fb   : > { %8232 = vmatprep.subr.mxu1 %v10120_v23  ;;  %8152 = vmatpush3.msra.mxu0 %v10310_v62 }
 0x2fc   : > { %8233 = vmatpush3.msra.mxu1 %v10120_v23  ;;  %8153 = vmatprep.subr.mxu0 %v10328_v57  ;;  %v11791_v23 = vld [vmem:[#allocation21_spill] sm:$0xff] }
 0x2fd   : > { %8234 = vmatprep.subr.mxu1 %v10133_v9  ;;  %8154 = vmatpush3.msra.mxu0 %v10328_v57 }
 0x2fe   : > { %8235 = vmatpush3.msra.mxu1 %v10133_v9  ;;  %8155 = vmatprep.subr.mxu0 %v10334_v47  ;;  %v11794_v9 = vld [vmem:[#allocation6_spill] sm:$0xff] }
 0x2ff   : > { %8236 = vmatprep.subr.mxu1 %v10148_v8  ;;  %8156 = vmatpush3.msra.mxu0 %v10334_v47 }
 0x300   : > { %8237 = vmatpush3.msra.mxu1 %v10148_v8  ;;  %8158 = vmatmul.mubr.f32.vlgmr.msra.gmra.mxu0 %v10358_v31  ;;  %v11797_v8 = vld [vmem:[#allocation9_spill] sm:$0xff] }
 0x301   : > { %8195 = vmatprep.subr.mxu0 %v10128_v28  ;;  %8238 = vmatprep.subr.mxu1 %v10164_v60 }
 0x302   : > { %8196 = vmatpush3.msra.mxu0 %v10128_v28  ;;  %8227 = vmatprep.mubr.f32.mxu0 %v10360_v44  ;;  %v11792_v28 = vld [vmem:[#allocation23_spill] sm:$0xff] }
 0x303   : > { %8239 = vmatpush3.msra.mxu1 %v10164_v60  ;;  %8197 = vmatprep.subr.mxu0 %v10143_v17  ;;  %v3677_v60 = vld [vmem:[%s11624_s6 + $0x70] sm:$0xff] }
 0x304   : > { %8240 = vmatprep.subr.mxu1 %v10175_v32  ;;  %8198 = vmatpush3.msra.mxu0 %v10143_v17  ;;  %v11795_v17 = vld [vmem:[#allocation7_spill] sm:$0xff] }
 0x305   : > { %8241 = vmatpush3.msra.mxu1 %v10175_v32  ;;  %8199 = vmatprep.subr.mxu0 %v10158_v58  ;;  %v10528_v32 = vand.u32 4294901760, %v3677_v60 }
 0x306   : > { %8242 = vmatprep.subr.mxu1 %v10189_v56  ;;  %8200 = vmatpush3.msra.mxu0 %v10158_v58  ;;  %v3678_v58 = vld [vmem:[%s11624_s6 + $0x78] sm:$0xff] }
 0x307   : > { %8243 = vmatpush3.msra.mxu1 %v10189_v56  ;;  %8201 = vmatprep.subr.mxu0 %v10173_v36  ;;  %v10520_v40 = vand.u32 4294901760, %v3678_v58  ;;  %v10539_v56 = vsub.f32 %v3677_v60, %v10528_v32 }
 0x308   : > { %8244 = vmatprep.subr.mxu1 %v10205_v34  ;;  %8202 = vmatpush3.msra.mxu0 %v10173_v36 }
 0x309   : > { %8245 = vmatpush3.msra.mxu1 %v10205_v34  ;;  %8203 = vmatprep.subr.mxu0 %v10193_v0  ;;  %v10526_v36 = vsub.f32 %v3678_v58, %v10520_v40  ;;  %v10551_v34 = vand.u32 4294901760, %v10539_v56  ;;  %v3667_v58 = vld [vmem:[%s11624_s6 + $0x20] sm:$0xff] }
 0x30a   : > { %8246 = vmatprep.subr.mxu1 %v10222_v21  ;;  %8204 = vmatpush3.msra.mxu0 %v10193_v0  ;;  %v10541_v0 = vand.u32 4294901760, %v3676_v25 }
 0x30b   : > { %8247 = vmatpush3.msra.mxu1 %v10222_v21  ;;  %8205 = vmatprep.subr.mxu0 %v10200_v18  ;;  %v10536_v52 = vand.u32 4294901760, %v10526_v36  ;;  %v3674_v21 = vld [vmem:[%s11624_s6 + $0x58] sm:$0xff] }
 0x30c   : > { %8248 = vmatprep.subr.mxu1 %v10238_v43  ;;  %8206 = vmatpush3.msra.mxu0 %v10200_v18  ;;  %v3675_v18 = vld [vmem:[%s11624_s6 + $0x60] sm:$0xff]  ;;  %v10572_v7 = vand.u32 4294901760, %v3674_v21 }
 0x30d   : > { %8249 = vmatpush3.msra.mxu1 %v10238_v43  ;;  %8207 = vmatprep.subr.mxu0 %v10217_v4  ;;  %v3784_v55 = vsub.f32 %v10526_v36, %v10536_v52  ;;  %v10556_v19 = vand.u32 4294901760, %v3675_v18  ;;  %v3791_v43 = vsub.f32 %v10539_v56, %v10551_v34 }
 0x30e   : > { %8250 = vmatprep.subr.mxu1 %v10249_v61  ;;  %8208 = vmatpush3.msra.mxu0 %v10217_v4  ;;  %v10554_v4 = vsub.f32 %v3676_v25, %v10541_v0  ;;  %v10586_v62 = vsub.f32 %v3674_v21, %v10572_v7 }
 0x30f   : > { %8251 = vmatpush3.msra.mxu1 %v10249_v61  ;;  %8209 = vmatprep.subr.mxu0 %v11789_v15  ;;  %v3785_v27 = vand.u32 4294901760, %v3784_v55  ;;  %v10569_v37 = vsub.f32 %v3675_v18, %v10556_v19  ;;  %v3792_v46 = vand.u32 4294901760, %v3791_v43  ;;  %v10672_v55 = vand.u32 4294901760, %v3667_v58 }
 0x310   : > { %8252 = vmatprep.subr.mxu1 %v10264_v42  ;;  %8210 = vmatpush3.msra.mxu0 %v11789_v15  ;;  %v10566_v61 = vand.u32 4294901760, %v10554_v4  ;;  %v10601_v51 = vand.u32 4294901760, %v10586_v62  ;;  %v10640_v15 = vand.u32 4294901760, %v10628_v63 }
 0x311   : > { %8253 = vmatpush3.msra.mxu1 %v10264_v42  ;;  %8211 = vmatprep.subr.mxu0 %v11790_v16  ;;  %v3673_v42 = vld [vmem:[%s11624_s6 + $0x50] sm:$0xff]  ;;  %v10581_v59 = vand.u32 4294901760, %v10569_v37 }
 0x312   : > { %8254 = vmatprep.subr.mxu1 %v10280_v29  ;;  %8212 = vmatpush3.msra.mxu0 %v11790_v16  ;;  %v3812_v26 = vsub.f32 %v10586_v62, %v10601_v51  ;;  %11798 = vst [vmem:[#allocation20_spill] sm:$0xff] %v10640_v15  ;;  %v10643_v16 = vsub.f32 %v3670_v41, %v10630_v6 }
 0x313   : > { %8255 = vmatpush3.msra.mxu1 %v10280_v29  ;;  %8213 = vmatprep.subr.mxu0 %v11791_v23  ;;  %v3798_v29 = vsub.f32 %v10554_v4, %v10566_v61  ;;  %v3805_v57 = vsub.f32 %v10569_v37, %v10581_v59 }
 0x314   : > { %8256 = vmatprep.subr.mxu1 %v10297_v20  ;;  %8214 = vmatpush3.msra.mxu0 %v11791_v23  ;;  %v3813_v3 = vand.u32 4294901760, %v3812_v26  ;;  %v10646_v23 = vand.u32 4294901760, %v3669_v11 }
 0x315   : > { %8257 = vmatpush3.msra.mxu1 %v10297_v20  ;;  %8215 = vmatprep.subr.mxu0 %v11792_v28  ;;  %v10583_v20 = vand.u32 4294901760, %v3673_v42  ;;  %v3806_v49 = vand.u32 4294901760, %v3805_v57 }
 0x316   : > { %8258 = vmatprep.subr.mxu1 %v10313_v5  ;;  %8216 = vmatpush3.msra.mxu0 %v11792_v28  ;;  %v3668_v28 = vld [vmem:[%s11624_s6 + $0x28] sm:$0xff] }
 0x317   : > { %8259 = vmatpush3.msra.mxu1 %v10313_v5  ;;  %8217 = vmatprep.subr.mxu0 %v11793_v50  ;;  %v3672_v5 = vld [vmem:[%s11624_s6 + $0x48] sm:$0xff]  ;;  %v10595_v47 = vsub.f32 %v3673_v42, %v10583_v20 }
 0x318   : > { %8260 = vmatprep.subr.mxu1 %v10324_v53  ;;  %8218 = vmatpush3.msra.mxu0 %v11793_v50  ;;  %v10597_v35 = vand.u32 4294901760, %v3672_v5 }
 0x319   : > { %8261 = vmatpush3.msra.mxu1 %v10324_v53  ;;  %8219 = vmatprep.subr.mxu0 %v11794_v9  ;;  %v3799_v53 = vand.u32 4294901760, %v3798_v29  ;;  %v10608_v54 = vand.u32 4294901760, %v10595_v47 }
 0x31a   : > { %8263 = vmatmul.mubr.f32.vlgmr.msra.gmra.mxu1 %v10355_v14  ;;  %8220 = vmatpush3.msra.mxu0 %v11794_v9  ;;  %v10611_v12 = vsub.f32 %v3672_v5, %v10597_v35  ;;  %v3833_v9 = vsub.f32 %v10628_v63, %v10640_v15 }
 0x31b   : > { %8221 = vmatprep.subr.mxu0 %v11795_v17  ;;  %8300 = vmatprep.subr.mxu1 %v3785_v27  ;;  %v3819_v10 = vsub.f32 %v10595_v47, %v10608_v54 }
 0x31c   : > { %8222 = vmatpush3.msra.mxu0 %v11795_v17  ;;  %8301 = vmatpush3.msra.mxu1 %v3785_v27  ;;  %v10625_v2 = vand.u32 4294901760, %v10611_v12  ;;  %v10655_v17 = vand.u32 4294901760, %v10643_v16  ;;  %v3834_v60 = vand.u32 4294901760, %v3833_v9  ;;  %v3666_v27 = vld [vmem:[%s11624_s6 + $0x18] sm:$0xff] }
 0x31d   : > { %8223 = vmatprep.subr.mxu0 %v11796_v33  ;;  %8302 = vmatprep.subr.mxu1 %v3792_v46  ;;  %v3820_v22 = vand.u32 4294901760, %v3819_v10  ;;  %v10688_v29 = vand.u32 4294901760, %v3666_v27  ;;  %v3664_v10 = vld [vmem:[%s11624_s6 + $0x8] sm:$0xff] }
 0x31e   : > { %8224 = vmatpush3.msra.mxu0 %v11796_v33  ;;  %8303 = vmatpush3.msra.mxu1 %v3792_v46  ;;  %v3826_v1 = vsub.f32 %v10611_v12, %v10625_v2  ;;  %11799 = vst [vmem:[#allocation22_spill] sm:$0xff] %v10655_v17  ;;  %v10657_v33 = vand.u32 4294901760, %v3668_v28  ;;  %v3840_v25 = vsub.f32 %v10643_v16, %v10655_v17 }
 0x31f   : > { %8225 = vmatprep.subr.mxu0 %v11797_v8  ;;  %8304 = vmatprep.subr.mxu1 %v3799_v53  ;;  %v10686_v46 = vsub.f32 %v3667_v58, %v10672_v55 }
 0x320   : > { %8226 = vmatpush3.msra.mxu0 %v11797_v8  ;;  %8305 = vmatpush3.msra.mxu1 %v3799_v53  ;;  %v3827_v50 = vand.u32 4294901760, %v3826_v1  ;;  %v10661_v8 = vsub.f32 %v3669_v11, %v10646_v23  ;;  %v10670_v18 = vsub.f32 %v3668_v28, %v10657_v33  ;;  %v3841_v43 = vand.u32 4294901760, %v3840_v25  ;;  %v3665_v53 = vld [vmem:[%s11624_s6 + $0x10] sm:$0xff] }
 0x321   : > { %8228 = vmatmul.mubr.f32.vlgmr.msra.gmra.mxu0 %v10355_v14  ;;  %8265 = vmatprep.subr.mxu0 %v10520_v40  ;;  %v10700_v30 = vand.u32 4294901760, %v10686_v46  ;;  %v10705_v26 = vand.u32 4294901760, %v3665_v53  ;;  %v10721_v28 = vand.u32 4294901760, %v3664_v10 }
 0x322   : > { %8266 = vmatpush3.msra.mxu0 %v10520_v40  ;;  %8306 = vmatprep.subr.mxu1 %v3806_v49  ;;  %v10676_v21 = vand.u32 4294901760, %v10661_v8  ;;  %v10683_v42 = vand.u32 4294901760, %v10670_v18 }
 0x323   : > { %8267 = vmatprep.subr.mxu0 %v10528_v32  ;;  %8307 = vmatpush3.msra.mxu1 %v3806_v49  ;;  %11802 = vst [vmem:[#allocation19_spill] sm:$0xff] %v10700_v30  ;;  %v10703_v49 = vsub.f32 %v3666_v27, %v10688_v29  ;;  %v3861_v11 = vsub.f32 %v10686_v46, %v10700_v30 }
 0x324   : > { %8268 = vmatpush3.msra.mxu0 %v10528_v32  ;;  %8308 = vmatprep.subr.mxu1 %v3813_v3  ;;  %11800 = vst [vmem:[#allocation24_spill] sm:$0xff] %v10676_v21  ;;  %11801 = vst [vmem:[#allocation16_spill] sm:$0xff] %v10683_v42  ;;  %v3847_v5 = vsub.f32 %v10661_v8, %v10676_v21  ;;  %v3854_v57 = vsub.f32 %v10670_v18, %v10683_v42 }
 0x325   : > { %8269 = vmatprep.subr.mxu0 %v10541_v0  ;;  %8309 = vmatpush3.msra.mxu1 %v3813_v3  ;;  %v10718_v1 = vsub.f32 %v3665_v53, %v10705_v26  ;;  %v3862_v9 = vand.u32 4294901760, %v3861_v11  ;;  %v10736_v27 = vsub.f32 %v3664_v10, %v10721_v28 }
 0x326   : > { %8270 = vmatpush3.msra.mxu0 %v10541_v0  ;;  %8310 = vmatprep.subr.mxu1 %v3820_v22  ;;  %v3848_v41 = vand.u32 4294901760, %v3847_v5  ;;  %v3855_v3 = vand.u32 4294901760, %v3854_v57 }
 0x327   : > { %8271 = vmatprep.subr.mxu0 %v10556_v19  ;;  %8311 = vmatpush3.msra.mxu1 %v3820_v22  ;;  %v10715_v22 = vand.u32 4294901760, %v10703_v49  ;;  %v10746_v57 = vand.u32 4294901760, %v10736_v27 }
 0x328   : > { %8272 = vmatpush3.msra.mxu0 %v10556_v19  ;;  %8312 = vmatprep.subr.mxu1 %v3827_v50 }
 0x329   : > { %8273 = vmatprep.subr.mxu0 %v10572_v7  ;;  %8313 = vmatpush3.msra.mxu1 %v3827_v50  ;;  %11803 = vst [vmem:[#allocation21_spill] sm:$0xff] %v10715_v22  ;;  %v3663_v50 = vld [vmem:[%s11624_s6] sm:$0xff]  ;;  %v3868_v58 = vsub.f32 %v10703_v49, %v10715_v22  ;;  %11805 = vst [vmem:[#allocation5_spill] sm:$0xff] %v10746_v57 }
 0x32a   : > { %8274 = vmatpush3.msra.mxu0 %v10572_v7  ;;  %8314 = vmatprep.subr.mxu1 %v3834_v60  ;;  %v10732_v25 = vand.u32 4294901760, %v3663_v50 }
 0x32b   : > { %8275 = vmatprep.subr.mxu0 %v10583_v20  ;;  %8315 = vmatpush3.msra.mxu1 %v3834_v60  ;;  %v10730_v60 = vand.u32 4294901760, %v10718_v1 }
 0x32c   : > { %8276 = vmatpush3.msra.mxu0 %v10583_v20  ;;  %8316 = vmatprep.subr.mxu1 %v3841_v43  ;;  %v10742_v53 = vsub.f32 %v3663_v50, %v10732_v25 }
 0x32d   : > { %8277 = vmatprep.subr.mxu0 %v10597_v35  ;;  %8317 = vmatpush3.msra.mxu1 %v3841_v43  ;;  %11804 = vst [vmem:[#allocation23_spill] sm:$0xff] %v10730_v60  ;;  %v3869_v43 = vand.u32 4294901760, %v3868_v58  ;;  %v3875_v5 = vsub.f32 %v10718_v1, %v10730_v60  ;;  %v11807_v58 = vld [vmem:[#allocation25_spill] sm:$0xff] }
 0x32e   : > { %8278 = vmatpush3.msra.mxu0 %v10597_v35  ;;  %8318 = vmatprep.subr.mxu1 %v3848_v41  ;;  %v10750_v10 = vand.u32 4294901760, %v10742_v53 }
 0x32f   : > { %8279 = vmatprep.subr.mxu0 %v10613_v39  ;;  %8319 = vmatpush3.msra.mxu1 %v3848_v41  ;;  %v3876_v41 = vand.u32 4294901760, %v3875_v5  ;;  %v2963_v5 = vsub.s32 2, %v11807_v58 }
 0x330   : > { %8280 = vmatpush3.msra.mxu0 %v10613_v39  ;;  %8320 = vmatprep.subr.mxu1 %v3855_v3  ;;  %11806 = vst [vmem:[#allocation6_spill] sm:$0xff] %v10750_v10  ;;  %v3889_v11 = vsub.f32 %v10742_v53, %v10750_v10 }
 0x331   : > { %8281 = vmatprep.subr.mxu0 %v10630_v6  ;;  %8321 = vmatpush3.msra.mxu1 %v3855_v3  ;;  %v3882_v3 = vsub.f32 %v10736_v27, %v10746_v57 }
 0x332   : > { %8282 = vmatpush3.msra.mxu0 %v10630_v6  ;;  %8322 = vmatprep.subr.mxu1 %v3862_v9 }
 0x333   : > { %8283 = vmatprep.subr.mxu0 %v10646_v23  ;;  %8323 = vmatpush3.msra.mxu1 %v3862_v9  ;;  %v3883_v50 = vand.u32 4294901760, %v3882_v3  ;;  %v3890_v9 = vand.u32 4294901760, %v3889_v11 }
 0x334   : > { %8284 = vmatpush3.msra.mxu0 %v10646_v23  ;;  %8324 = vmatprep.subr.mxu1 %v3869_v43 }
 0x335   : > { %8285 = vmatprep.subr.mxu0 %v10657_v33  ;;  %8325 = vmatpush3.msra.mxu1 %v3869_v43  ;;  %v8933_v43 = vld [vmem:[%s11628_s10] sm:$0x7] }
 0x336   : > { %8286 = vmatpush3.msra.mxu0 %v10657_v33  ;;  %8326 = vmatprep.subr.mxu1 %v3876_v41  ;;  %v2964_v24 = vrot.slane %v8933_v43, %v2963_v5 }
 0x337   : > { %8287 = vmatprep.subr.mxu0 %v10672_v55  ;;  %8327 = vmatpush3.msra.mxu1 %v3876_v41 }
 0x338   : > { %8288 = vmatpush3.msra.mxu0 %v10672_v55  ;;  %8328 = vmatprep.subr.mxu1 %v3883_v50 }
 0x339   : > { %8289 = vmatprep.subr.mxu0 %v10688_v29  ;;  %8329 = vmatpush3.msra.mxu1 %v3883_v50 }
 0x33a   : > { %8290 = vmatpush3.msra.mxu0 %v10688_v29  ;;  %8330 = vmatprep.subr.mxu1 %v3890_v9 }
 0x33b   : > { %8291 = vmatprep.subr.mxu0 %v10705_v26  ;;  %8331 = vmatpush3.msra.mxu1 %v3890_v9 }
 0x33c   : > { %8292 = vmatpush3.msra.mxu0 %v10705_v26  ;;  %8370 = vmatprep.subr.mxu1 %v10520_v40 }
 0x33d   : > { %8293 = vmatprep.subr.mxu0 %v10721_v28 }
 0x33e   : > { %8294 = vmatpush3.msra.mxu0 %v10721_v28 }
 0x33f   : > { %8295 = vmatprep.subr.mxu0 %v10732_v25 }
 0x340   : > { %8296 = vmatpush3.msra.mxu0 %v10732_v25 }
 0x341   : > { %8335 = vmatprep.subr.mxu0 %v10526_v36 }
 0x397   : > { %v8124_v13 = vpop.f32.mrf.mxu1 }
 0x399   : > { %v3213_v11 = vpop.f32.mrf.mxu1 }
 0x39f   : > { %v8089_v31 = vpop.f32.mrf.mxu0 }
 0x3a0   : > { %v3063_v48 = vadd.f32 %v8089_v31, %v2964_v24 }
 0x3a1   : > { %v3052_v38 = vpop.f32.mrf.mxu0 }
 0x3a2   : > { %v3053_v41 = vadd.f32 %v3052_v38, %v2964_v24  ;;  %v3220_v14 = vadd.f32 %v8124_v13, %v3063_v48 }
 0x3a4   : > { %v3214_v44 = vadd.f32 %v3213_v11, %v3053_v41 }
 0x3b8   : > { %v8194_v50 = vpop.f32.mrf.mxu1 }
 0x3ba   : > { %v3419_v57 = vpop.f32.mrf.mxu1 }
 0x3c0   : > { %v8159_v3 = vpop.f32.mrf.mxu0 }
 0x3c1   : > { %v3331_v9 = vadd.f32 %v8159_v3, %v3220_v14 }
 0x3c2   : > { %v3323_v45 = vpop.f32.mrf.mxu0 }
 0x3c3   : > { %v3324_v10 = vadd.f32 %v3323_v45, %v3214_v44  ;;  %v3428_v58 = vadd.f32 %v8194_v50, %v3331_v9  ;;  %v4892_v9 = vld [vmem:[%s11626_s8 + $0x70] sm:$0xff] }
 0x3c5   : > { %v3420_v42 = vadd.f32 %v3419_v57, %v3324_v10 }
 0x3da   : > { %v8264_v60 = vpop.f32.mrf.mxu1 }
 0x3dc   : > { %v3639_v17 = vpop.f32.mrf.mxu1 }
 0x3e1   : > { %v8229_v22 = vpop.f32.mrf.mxu0 }
 0x3e2   : > { %v3553_v30 = vadd.f32 %v8229_v22, %v3428_v58 }
 0x3e3   : > { %v3546_v21 = vpop.f32.mrf.mxu0 }
 0x3e4   : > { %v3646_v5 = vadd.f32 %v8264_v60, %v3553_v30  ;;  %v3547_v43 = vadd.f32 %v3546_v21, %v3420_v42 }
 0x3e6   : > { %v6817_v31 = vmul.f32 -1.442695, %v3646_v5  ;;  %v3640_v15 = vadd.f32 %v3639_v17, %v3547_v43 }
 0x3e8   : > { %8917 = vpow2.f32 %v6817_v31  ;;  %v6816_v24 = vmul.f32 -1.442695, %v3640_v15 }
 0x3ea   : > { %8919 = vpow2.f32 %v6816_v24 }
 0x3f5   : > { %v8918_v13 = vpop.eup %8917 }
 0x3f6   : > { %v3656_v48 = vadd.f32 1.0, %v8918_v13  ;;  %v10951_v13 = vand.u32 4294901760, %v4892_v9 }
 0x3f7   : > { %v8920_v14 = vpop.eup %8919 }
 0x3f8   : > { %8921 = vrcp.f32 %v3656_v48  ;;  %v3655_v44 = vadd.f32 1.0, %v8920_v14  ;;  %v4891_v48 = vld [vmem:[%s11626_s8 + $0x68] sm:$0xff]  ;;  %v8934_v14 = vld [vmem:[%s9231_s16 + $0x18] sm:$0xff] }
 0x3fa   : > { %8923 = vrcp.f32 %v3655_v44 }
 0x405   : > { %v8922_v45 = vpop.eup %8921 }
 0x406   : > { %v3662_v38 = vmul.f32 %v8922_v45, %v3646_v5 }
 0x407   : > { %v8924_v3 = vpop.eup %8923 }
 0x408   : > { %v10763_v22 = vand.u32 4294901760, %v3662_v38  ;;  %v3661_v57 = vmul.f32 %v8924_v3, %v3640_v15 }
 0x40a   : > { %v10766_v21 = vsub.f32 %v3662_v38, %v10763_v22  ;;  %v10768_v42 = vand.u32 4294901760, %v3661_v57 }
 0x40c   : > { %v3761_v17 = vsub.f32 %v3661_v57, %v10768_v42  ;;  %8332 = vmatprep.mubr.f32.mxu1 %v10768_v42  ;;  %v3772_v30 = vand.u32 4294901760, %v10766_v21 }
 0x40d   : > { %8333 = vmatmul.mubr.f32.vlgmr.msra.gmra.mxu1 %v10763_v22 }
 0x40e   : > { %8371 = vmatpush3.msra.mxu1 %v10520_v40  ;;  %v3762_v60 = vand.u32 4294901760, %v3761_v17  ;;  %v3773_v15 = vsub.f32 %v10766_v21, %v3772_v30 }
 0x40f   : > { %8372 = vmatprep.subr.mxu1 %v10528_v32 }
 0x410   : > { %8373 = vmatpush3.msra.mxu1 %v10528_v32  ;;  %8402 = vmatprep.mubr.f32.mxu1 %v3762_v60  ;;  %v3763_v10 = vsub.f32 %v3761_v17, %v3762_v60  ;;  %v3774_v41 = vand.u32 4294901760, %v3773_v15 }
 0x411   : > { %8374 = vmatprep.subr.mxu1 %v10541_v0 }
 0x412   : > { %8375 = vmatpush3.msra.mxu1 %v10541_v0  ;;  %v3764_v58 = vand.u32 4294901760, %v3763_v10  ;;  %v4889_v10 = vld [vmem:[%s11626_s8 + $0x58] sm:$0xff] }
 0x413   : > { %8376 = vmatprep.subr.mxu1 %v10556_v19 }
 0x414   : > { %8377 = vmatpush3.msra.mxu1 %v10556_v19  ;;  %8297 = vmatprep.mubr.f32.mxu0 %v3764_v58 }
 0x415   : > { %8378 = vmatprep.subr.mxu1 %v10572_v7  ;;  %8298 = vmatmul.mubr.f32.vlgmr.msra.gmra.mxu0 %v3774_v41 }
 0x416   : > { %8336 = vmatpush3.msra.mxu0 %v10526_v36  ;;  %8379 = vmatpush3.msra.mxu1 %v10572_v7  ;;  %v11809_v36 = vld [vmem:[#allocation22_spill] sm:$0xff] }
 0x417   : > { %8337 = vmatprep.subr.mxu0 %v10539_v56  ;;  %8367 = vmatprep.mubr.f32.mxu0 %v3761_v17 }
 0x418   : > { %8380 = vmatprep.subr.mxu1 %v10583_v20  ;;  %8338 = vmatpush3.msra.mxu0 %v10539_v56  ;;  %v11812_v56 = vld [vmem:[#allocation19_spill] sm:$0xff] }
 0x419   : > { %8381 = vmatpush3.msra.mxu1 %v10583_v20  ;;  %8339 = vmatprep.subr.mxu0 %v10554_v4 }
 0x41a   : > { %8382 = vmatprep.subr.mxu1 %v10597_v35  ;;  %8340 = vmatpush3.msra.mxu0 %v10554_v4  ;;  %v11815_v4 = vld [vmem:[#allocation5_spill] sm:$0xff] }
 0x41b   : > { %8383 = vmatpush3.msra.mxu1 %v10597_v35  ;;  %8341 = vmatprep.subr.mxu0 %v10569_v37 }
 0x41c   : > { %8384 = vmatprep.subr.mxu1 %v10613_v39  ;;  %8342 = vmatpush3.msra.mxu0 %v10569_v37 }
 0x41d   : > { %8385 = vmatpush3.msra.mxu1 %v10613_v39  ;;  %8343 = vmatprep.subr.mxu0 %v10586_v62 }
 0x41e   : > { %8386 = vmatprep.subr.mxu1 %v10630_v6  ;;  %8344 = vmatpush3.msra.mxu0 %v10586_v62 }
 0x41f   : > { %8387 = vmatpush3.msra.mxu1 %v10630_v6  ;;  %8345 = vmatprep.subr.mxu0 %v10595_v47 }
 0x420   : > { %8388 = vmatprep.subr.mxu1 %v10646_v23  ;;  %8346 = vmatpush3.msra.mxu0 %v10595_v47 }
 0x421   : > { %8389 = vmatpush3.msra.mxu1 %v10646_v23  ;;  %8347 = vmatprep.subr.mxu0 %v10611_v12 }
 0x422   : > { %8390 = vmatprep.subr.mxu1 %v10657_v33  ;;  %8348 = vmatpush3.msra.mxu0 %v10611_v12 }
 0x423   : > { %8391 = vmatpush3.msra.mxu1 %v10657_v33  ;;  %8349 = vmatprep.subr.mxu0 %v10628_v63 }
 0x424   : > { %8392 = vmatprep.subr.mxu1 %v10672_v55  ;;  %8350 = vmatpush3.msra.mxu0 %v10628_v63 }
 0x425   : > { %8393 = vmatpush3.msra.mxu1 %v10672_v55  ;;  %8351 = vmatprep.subr.mxu0 %v10643_v16 }
 0x426   : > { %8394 = vmatprep.subr.mxu1 %v10688_v29  ;;  %8352 = vmatpush3.msra.mxu0 %v10643_v16 }
 0x427   : > { %8395 = vmatpush3.msra.mxu1 %v10688_v29  ;;  %8353 = vmatprep.subr.mxu0 %v10661_v8 }
 0x428   : > { %8396 = vmatprep.subr.mxu1 %v10705_v26  ;;  %8354 = vmatpush3.msra.mxu0 %v10661_v8 }
 0x429   : > { %8397 = vmatpush3.msra.mxu1 %v10705_v26  ;;  %8355 = vmatprep.subr.mxu0 %v10670_v18 }
 0x42a   : > { %8398 = vmatprep.subr.mxu1 %v10721_v28  ;;  %8356 = vmatpush3.msra.mxu0 %v10670_v18 }
 0x42b   : > { %8399 = vmatpush3.msra.mxu1 %v10721_v28  ;;  %8357 = vmatprep.subr.mxu0 %v10686_v46 }
 0x42c   : > { %8400 = vmatprep.subr.mxu1 %v10732_v25  ;;  %8358 = vmatpush3.msra.mxu0 %v10686_v46 }
 0x42d   : > { %8401 = vmatpush3.msra.mxu1 %v10732_v25  ;;  %8359 = vmatprep.subr.mxu0 %v10703_v49 }
 0x42e   : > { %8403 = vmatmul.mubr.f32.vlgmr.msra.gmra.mxu1 %v3772_v30  ;;  %8440 = vmatprep.subr.mxu1 %v10520_v40  ;;  %v10970_v30 = vsub.f32 %v4892_v9, %v10951_v13 }
 0x42f   : > { %8360 = vmatpush3.msra.mxu0 %v10703_v49  ;;  %8441 = vmatpush3.msra.mxu1 %v10520_v40  ;;  %v11808_v40 = vld [vmem:[#allocation20_spill] sm:$0xff] }
 0x430   : > { %8472 = vmatprep.mubr.f32.mxu1 %v10768_v42  ;;  %8361 = vmatprep.subr.mxu0 %v10718_v1 }
 0x431   : > { %8442 = vmatprep.subr.mxu1 %v10528_v32  ;;  %8362 = vmatpush3.msra.mxu0 %v10718_v1  ;;  %v4893_v1 = vld [vmem:[%s11626_s8 + $0x78] sm:$0xff] }
 0x432   : > { %8443 = vmatpush3.msra.mxu1 %v10528_v32  ;;  %8363 = vmatprep.subr.mxu0 %v10736_v27  ;;  %v11810_v32 = vld [vmem:[#allocation24_spill] sm:$0xff]  ;;  %v10946_v50 = vand.u32 4294901760, %v4893_v1 }
 0x433   : > { %8444 = vmatprep.subr.mxu1 %v10541_v0  ;;  %8364 = vmatpush3.msra.mxu0 %v10736_v27 }
 0x434   : > { %8445 = vmatpush3.msra.mxu1 %v10541_v0  ;;  %8365 = vmatprep.subr.mxu0 %v10742_v53  ;;  %v11813_v0 = vld [vmem:[#allocation21_spill] sm:$0xff]  ;;  %v10958_v38 = vsub.f32 %v4893_v1, %v10946_v50 }
 0x435   : > { %8446 = vmatprep.subr.mxu1 %v10556_v19  ;;  %8366 = vmatpush3.msra.mxu0 %v10742_v53 }
 0x436   : > { %8447 = vmatpush3.msra.mxu1 %v10556_v19  ;;  %8368 = vmatmul.mubr.f32.vlgmr.msra.gmra.mxu0 %v10766_v21  ;;  %v11816_v19 = vld [vmem:[#allocation6_spill] sm:$0xff]  ;;  %v10962_v21 = vand.u32 4294901760, %v4891_v48  ;;  %v10974_v15 = vand.u32 4294901760, %v10958_v38 }
 0x437   : > { %8405 = vmatprep.subr.mxu0 %v10536_v52  ;;  %8448 = vmatprep.subr.mxu1 %v10572_v7 }
 0x438   : > { %8406 = vmatpush3.msra.mxu0 %v10536_v52  ;;  %8437 = vmatprep.mubr.f32.mxu0 %v10768_v42  ;;  %v11811_v52 = vld [vmem:[#allocation16_spill] sm:$0xff]  ;;  %v4890_v42 = vld [vmem:[%s11626_s8 + $0x60] sm:$0xff] }
 0x439   : > { %8449 = vmatpush3.msra.mxu1 %v10572_v7  ;;  %8407 = vmatprep.subr.mxu0 %v10551_v34 }
 0x43a   : > { %8450 = vmatprep.subr.mxu1 %v10583_v20  ;;  %8408 = vmatpush3.msra.mxu0 %v10551_v34  ;;  %v11814_v34 = vld [vmem:[#allocation23_spill] sm:$0xff] }
 0x43b   : > { %8451 = vmatpush3.msra.mxu1 %v10583_v20  ;;  %8409 = vmatprep.subr.mxu0 %v10566_v61 }
 0x43c   : > { %8452 = vmatprep.subr.mxu1 %v10597_v35  ;;  %8410 = vmatpush3.msra.mxu0 %v10566_v61  ;;  %v4366_v61 = vld [vmem:[%s11625_s7 + $0x8] sm:$0xf] }
 0x43d   : > { %8453 = vmatpush3.msra.mxu1 %v10597_v35  ;;  %8411 = vmatprep.subr.mxu0 %v10581_v59  ;;  %v4374_v37 = vsel %vm1698_vm2, %v4366_v61, 0 }
 0x43e   : > { %8454 = vmatprep.subr.mxu1 %v10613_v39  ;;  %8412 = vmatpush3.msra.mxu0 %v10581_v59  ;;  %v10914_v7 = vand.u32 4294901760, %v4374_v37  ;;  %v4365_v59 = vld [vmem:[%s11625_s7] sm:$0xff] }
 0x43f   : > { %8455 = vmatpush3.msra.mxu1 %v10613_v39  ;;  %8413 = vmatprep.subr.mxu0 %v10601_v51  ;;  %v10922_v62 = vand.u32 4294901760, %v4365_v59 }
 0x440   : > { %8456 = vmatprep.subr.mxu1 %v10630_v6  ;;  %8414 = vmatpush3.msra.mxu0 %v10601_v51  ;;  %v10920_v20 = vsub.f32 %v4374_v37, %v10914_v7 }
 0x441   : > { %8457 = vmatpush3.msra.mxu1 %v10630_v6  ;;  %8415 = vmatprep.subr.mxu0 %v10608_v54  ;;  %v10930_v35 = vsub.f32 %v4365_v59, %v10922_v62 }
 0x442   : > { %8458 = vmatprep.subr.mxu1 %v10646_v23  ;;  %8416 = vmatpush3.msra.mxu0 %v10608_v54  ;;  %v10927_v47 = vand.u32 4294901760, %v10920_v20 }
 0x443   : > { %8459 = vmatpush3.msra.mxu1 %v10646_v23  ;;  %8417 = vmatprep.subr.mxu0 %v10625_v2  ;;  %v10937_v54 = vand.u32 4294901760, %v10930_v35 }
 0x444   : > { %8460 = vmatprep.subr.mxu1 %v10657_v33  ;;  %8418 = vmatpush3.msra.mxu0 %v10625_v2  ;;  %v4495_v51 = vsub.f32 %v10920_v20, %v10927_v47 }
 0x445   : > { %8461 = vmatpush3.msra.mxu1 %v10657_v33  ;;  %8419 = vmatprep.subr.mxu0 %v11808_v40  ;;  %v4502_v39 = vsub.f32 %v10930_v35, %v10937_v54 }
 0x446   : > { %8462 = vmatprep.subr.mxu1 %v10672_v55  ;;  %8420 = vmatpush3.msra.mxu0 %v11808_v40  ;;  %v4496_v12 = vand.u32 4294901760, %v4495_v51  ;;  %v10984_v40 = vand.u32 4294901760, %v4890_v42 }
 0x447   : > { %8463 = vmatpush3.msra.mxu1 %v10672_v55  ;;  %8421 = vmatprep.subr.mxu0 %v11809_v36  ;;  %v4503_v2 = vand.u32 4294901760, %v4502_v39  ;;  %v4886_v39 = vld [vmem:[%s11626_s8 + $0x40] sm:$0xff] }
 0x448   : > { %8464 = vmatprep.subr.mxu1 %v10688_v29  ;;  %8422 = vmatpush3.msra.mxu0 %v11809_v36  ;;  %v10987_v36 = vsub.f32 %v4891_v48, %v10962_v21  ;;  %v11008_v37 = vsub.f32 %v4890_v42, %v10984_v40 }
 0x449   : > { %8465 = vmatpush3.msra.mxu1 %v10688_v29  ;;  %8423 = vmatprep.subr.mxu0 %v11810_v32 }
 0x44a   : > { %8466 = vmatprep.subr.mxu1 %v10705_v26  ;;  %8424 = vmatpush3.msra.mxu0 %v11810_v32  ;;  %v11013_v51 = vand.u32 4294901760, %v10987_v36 }
 0x44b   : > { %8467 = vmatpush3.msra.mxu1 %v10705_v26  ;;  %8425 = vmatprep.subr.mxu0 %v11811_v52 }
 0x44c   : > { %8468 = vmatprep.subr.mxu1 %v10721_v28  ;;  %8426 = vmatpush3.msra.mxu0 %v11811_v52 }
 0x44d   : > { %8469 = vmatpush3.msra.mxu1 %v10721_v28  ;;  %8427 = vmatprep.subr.mxu0 %v11812_v56 }
 0x44e   : > { %8470 = vmatprep.subr.mxu1 %v10732_v25  ;;  %8428 = vmatpush3.msra.mxu0 %v11812_v56  ;;  %v10993_v56 = vand.u32 4294901760, %v10970_v30 }
 0x44f   : > { %8471 = vmatpush3.msra.mxu1 %v10732_v25  ;;  %8429 = vmatprep.subr.mxu0 %v11813_v0 }
 0x450   : > { %8473 = vmatmul.mubr.f32.vlgmr.msra.gmra.mxu1 %v10763_v22  ;;  %8430 = vmatpush3.msra.mxu0 %v11813_v0  ;;  %v10995_v0 = vand.u32 4294901760, %v4889_v10 }
 0x451   : > { %8431 = vmatprep.subr.mxu0 %v11814_v34  ;;  %8482 = vmatprep.subr.mxu1 %v4496_v12 }
 0x452   : > { %8432 = vmatpush3.msra.mxu0 %v11814_v34  ;;  %8483 = vmatpush3.msra.mxu1 %v4496_v12  ;;  %v4888_v34 = vld [vmem:[%s11626_s8 + $0x50] sm:$0xff] }
 0x453   : > { %8433 = vmatprep.subr.mxu0 %v11815_v4  ;;  %8484 = vmatprep.subr.mxu1 %v4503_v2  ;;  %v11015_v12 = vand.u32 4294901760, %v4888_v34 }
 0x454   : > { %8434 = vmatpush3.msra.mxu0 %v11815_v4  ;;  %8485 = vmatpush3.msra.mxu1 %v4503_v2  ;;  %v4999_v4 = vsub.f32 %v10958_v38, %v10974_v15 }
 0x455   : > { %8435 = vmatprep.subr.mxu0 %v11816_v19  ;;  %8496 = vmatprep.subr.mxu1 %v10914_v7 }
 0x456   : > { %8436 = vmatpush3.msra.mxu0 %v11816_v19  ;;  %v4887_v19 = vld [vmem:[%s11626_s8 + $0x48] sm:$0xff] }
 0x457   : > { %8438 = vmatmul.mubr.f32.vlgmr.msra.gmra.mxu0 %v10763_v22  ;;  %8475 = vmatprep.subr.mxu0 %v10914_v7  ;;  %v8935_v22 = vld [vmem:[%s9231_s16 + $0x8] sm:$0xff]  ;;  %s11573_s16 = scalar_lea.hbm %s11630_s12, %s6830_s18  ;;  %s8942_s18 = sshll.u32 %s9001_s17, 4  ;;  %s8943_s18 = int_to_ptr.vmem [resolvable:$false] %s8942_s18 }
 0x458   : > { %8476 = vmatpush3.msra.mxu0 %v10914_v7  ;;  %p8945_p0 = scmp.lt.s32.totalorder %s11575_s20, %s8943_s18 }
 0x459   : > { %8477 = vmatprep.subr.mxu0 %v10922_v62 }
 0x45a   : > { %8478 = vmatpush3.msra.mxu0 %v10922_v62 }
 0x45b   : > { %8489 = vmatprep.subr.mxu0 %v10920_v20 }
 0x4cd   : > { %v8334_v6 = vpop.f32.mrf.mxu1 }
 0x4cf   : > { %v3927_v33 = vpop.f32.mrf.mxu1 }
 0x4d5   : > { %v8299_v63 = vpop.f32.mrf.mxu0 }
 0x4d6   : > { %v3934_v8 = vadd.f32 %v8334_v6, %v8299_v63  ;;  %v5006_v63 = vsub.f32 %v10970_v30, %v10993_v56  ;;  %v11024_v6 = vsub.f32 %v4889_v10, %v10995_v0  ;;  %v4880_v10 = vld [vmem:[%s11626_s8 + $0x10] sm:$0xff] }
 0x4d7   : > { %v3766_v16 = vpop.f32.mrf.mxu0 }
 0x4d8   : > { %v3928_v46 = vadd.f32 %v3927_v33, %v3766_v16  ;;  %v11026_v16 = vand.u32 4294901760, %v4887_v19 }
 0x4da   : > { %v11050_v1 = vsub.f32 %v4887_v19, %v11026_v16 }
 0x4ee   : > { %v8404_v18 = vpop.f32.mrf.mxu1 }
 0x4f0   : > { %v4133_v26 = vpop.f32.mrf.mxu1 }
 0x4f6   : > { %v8369_v23 = vpop.f32.mrf.mxu0 }
 0x4f7   : > { %v4045_v29 = vadd.f32 %v8369_v23, %v3934_v8  ;;  %v5000_v23 = vand.u32 4294901760, %v4999_v4  ;;  %v11032_v8 = vand.u32 4294901760, %v11008_v37 }
 0x4f8   : > { %v4037_v55 = vpop.f32.mrf.mxu0 }
 0x4f9   : > { %v4038_v49 = vadd.f32 %v4037_v55, %v3928_v46  ;;  %v4142_v28 = vadd.f32 %v8404_v18, %v4045_v29  ;;  %v11034_v18 = vand.u32 4294901760, %v4886_v39  ;;  %v4885_v55 = vld [vmem:[%s11626_s8 + $0x38] sm:$0xff]  ;;  %v5013_v29 = vsub.f32 %v10987_v36, %v11013_v51 }
 0x4fb   : > { %v4134_v11 = vadd.f32 %v4133_v26, %v4038_v49  ;;  %v5007_v49 = vand.u32 4294901760, %v5006_v63  ;;  %v11047_v26 = vand.u32 4294901760, %v11024_v6 }
 0x510   : > { %v8474_v25 = vpop.f32.mrf.mxu1 }
 0x512   : > { %v4353_v24 = vpop.f32.mrf.mxu1 }
 0x517   : > { %v8439_v27 = vpop.f32.mrf.mxu0 }
 0x518   : > { %v4267_v53 = vadd.f32 %v8439_v27, %v4142_v28  ;;  %v4884_v28 = vld [vmem:[%s11626_s8 + $0x30] sm:$0xff]  ;;  %v11062_v27 = vsub.f32 %v4886_v39, %v11034_v18 }
 0x519   : > { %v4260_v5 = vpop.f32.mrf.mxu0 }
 0x51a   : > { %v4360_v43 = vadd.f32 %v8474_v25, %v4267_v53  ;;  %v4261_v31 = vadd.f32 %v4260_v5, %v4134_v11  ;;  %v11055_v25 = vand.u32 4294901760, %v4885_v55  ;;  %v4883_v53 = vld [vmem:[%s11626_s8 + $0x28] sm:$0xff]  ;;  %v5014_v11 = vand.u32 4294901760, %v5013_v29 }
 0x51b   : > { %v5027_v5 = vsub.f32 %v11024_v6, %v11047_v26 }
 0x51c   : > { %v4364_v44 = vmul.f32 %v8934_v14, %v4360_v43  ;;  %v4354_v45 = vadd.f32 %v4353_v24, %v4261_v31  ;;  %v11076_v43 = vand.u32 4294901760, %v11050_v1  ;;  %v4882_v31 = vld [vmem:[%s11626_s8 + $0x20] sm:$0xff]  ;;  %v11817_v24 = vld [vmem:[#allocation12_spill] sm:$0xff]  ;;  %v11084_v48 = vsub.f32 %v4885_v55, %v11055_v25 }
 0x51d   : > { %v11086_v14 = vand.u32 4294901760, %v4883_v53  ;;  %v5028_v42 = vand.u32 4294901760, %v5027_v5 }
 0x51e   : > { %v4371_v3 = vsel %vm1691_vm1, %v4364_v44, 0  ;;  %v4363_v57 = vmul.f32 %v8935_v22, %v4354_v45  ;;  %v11090_v45 = vand.u32 4294901760, %v11062_v27 }
 0x51f   : > { %v10967_v17 = vand.u32 4294901760, %v4371_v3 }
 0x520   : > { %v4368_v60 = vsel %vm1691_vm1, %v4363_v57, 0  ;;  %v11101_v57 = vand.u32 4294901760, %v4882_v31 }
 0x521   : > { %v10980_v58 = vsub.f32 %v4371_v3, %v10967_v17  ;;  %v10982_v41 = vand.u32 4294901760, %v4368_v60  ;;  %v4881_v3 = vld [vmem:[%s11626_s8 + $0x18] sm:$0xff] }
 0x522   : > { %v11130_v19 = vsub.f32 %v4882_v31, %v11101_v57 }
 0x523   : > { %v4444_v32 = vsub.f32 %v4368_v60, %v10982_v41  ;;  %8486 = vmatprep.mubr.f32.mxu1 %v10982_v41  ;;  %v4455_v52 = vand.u32 4294901760, %v10980_v58  ;;  %v5041_v60 = vsub.f32 %v11050_v1, %v11076_v43 }
 0x524   : > { %8487 = vmatmul.mubr.f32.vlgmr.msra.gmra.mxu1 %v10967_v17 }
 0x525   : > { %8497 = vmatpush3.msra.mxu1 %v10914_v7  ;;  %v4445_v61 = vand.u32 4294901760, %v4444_v32  ;;  %v4456_v59 = vsub.f32 %v10980_v58, %v4455_v52 }
 0x526   : > { %8498 = vmatprep.subr.mxu1 %v10922_v62 }
 0x527   : > { %8499 = vmatpush3.msra.mxu1 %v10922_v62  ;;  %8500 = vmatprep.mubr.f32.mxu1 %v4445_v61  ;;  %v4446_v2 = vsub.f32 %v4444_v32, %v4445_v61  ;;  %v4457_v46 = vand.u32 4294901760, %v4456_v59  ;;  %v11132_v61 = vand.u32 4294901760, %v4880_v10  ;;  %v4878_v59 = vld [vmem:[%s11626_s8] sm:$0xff] }
 0x528   : > { %8510 = vmatprep.subr.mxu1 %v10914_v7  ;;  %8501 = vmatmul.mubr.f32.vlgmr.msra.gmra.mxu1 %v4455_v52  ;;  %v5048_v52 = vsub.f32 %v11062_v27, %v11090_v45 }
 0x529   : > { %8511 = vmatpush3.msra.mxu1 %v10914_v7  ;;  %8514 = vmatprep.mubr.f32.mxu1 %v10982_v41  ;;  %v4447_v33 = vand.u32 4294901760, %v4446_v2  ;;  %v11043_v7 = vsub.f32 %v4888_v34, %v11015_v12  ;;  %v4879_v34 = vld [vmem:[%s11626_s8 + $0x8] sm:$0xff]  ;;  %v11158_v29 = vsub.f32 %v4880_v10, %v11132_v61 }
 0x52a   : > { %8512 = vmatprep.subr.mxu1 %v10922_v62 }
 0x52b   : > { %8513 = vmatpush3.msra.mxu1 %v10922_v62  ;;  %8479 = vmatprep.mubr.f32.mxu0 %v4447_v33  ;;  %v5020_v62 = vsub.f32 %v11008_v37, %v11032_v8  ;;  %v11069_v9 = vand.u32 4294901760, %v11043_v7  ;;  %v5049_v33 = vand.u32 4294901760, %v5048_v52 }
 0x52c   : > { %8552 = vmatprep.subr.mxu1 %v5000_v23  ;;  %8480 = vmatmul.mubr.f32.vlgmr.msra.gmra.mxu0 %v4457_v46  ;;  %v11155_v46 = vand.u32 4294901760, %v11130_v19 }
 0x52d   : > { %8490 = vmatpush3.msra.mxu0 %v10920_v20  ;;  %8515 = vmatmul.mubr.f32.vlgmr.msra.gmra.mxu1 %v10967_v17  ;;  %v11071_v20 = vand.u32 4294901760, %v4884_v28  ;;  %v5021_v44 = vand.u32 4294901760, %v5020_v62 }
 0x52e   : > { %8553 = vmatpush3.msra.mxu1 %v5000_v23  ;;  %8491 = vmatprep.subr.mxu0 %v10930_v35  ;;  %v11147_v23 = vand.u32 4294901760, %v4879_v34  ;;  %v5076_v31 = vsub.f32 %v11130_v19, %v11155_v46 }
 0x52f   : > { %8493 = vmatprep.mubr.f32.mxu0 %v4444_v32  ;;  %8554 = vmatprep.subr.mxu1 %v5007_v49  ;;  %v11099_v22 = vsub.f32 %v4884_v28, %v11071_v20  ;;  %v11115_v32 = vsub.f32 %v4883_v53, %v11086_v14 }
 0x530   : > { %8584 = vmatprep.mubr.f32.mxu1 %v11817_v24  ;;  %8492 = vmatpush3.msra.mxu0 %v10930_v35  ;;  %v5034_v35 = vsub.f32 %v11043_v7, %v11069_v9  ;;  %v5077_v10 = vand.u32 4294901760, %v5076_v31 }
 0x531   : > { %8555 = vmatpush3.msra.mxu1 %v5007_v49  ;;  %8503 = vmatprep.subr.mxu0 %v10927_v47  ;;  %v11127_v4 = vand.u32 4294901760, %v11099_v22  ;;  %v11142_v2 = vand.u32 4294901760, %v11115_v32  ;;  %v11160_v49 = vand.u32 4294901760, %v4878_v59 }
 0x532   : > { %8556 = vmatprep.subr.mxu1 %v5014_v11  ;;  %8494 = vmatmul.mubr.f32.vlgmr.msra.gmra.mxu0 %v10980_v58  ;;  %v11112_v58 = vand.u32 4294901760, %v11084_v48 }
 0x533   : > { %8504 = vmatpush3.msra.mxu0 %v10927_v47  ;;  %8557 = vmatpush3.msra.mxu1 %v5014_v11  ;;  %v11117_v47 = vand.u32 4294901760, %v4881_v3  ;;  %v5062_v55 = vsub.f32 %v11099_v22, %v11127_v4  ;;  %v5069_v62 = vsub.f32 %v11115_v32, %v11142_v2  ;;  %v11170_v11 = vsub.f32 %v4879_v34, %v11147_v23 }
 0x534   : > { %8505 = vmatprep.subr.mxu0 %v10937_v54  ;;  %8507 = vmatprep.mubr.f32.mxu0 %v10982_v41  ;;  %v5035_v41 = vand.u32 4294901760, %v5034_v35  ;;  %v5055_v39 = vsub.f32 %v11084_v48, %v11112_v58 }
 0x535   : > { %8558 = vmatprep.subr.mxu1 %v5021_v44  ;;  %8506 = vmatpush3.msra.mxu0 %v10937_v54  ;;  %v5042_v54 = vand.u32 4294901760, %v5041_v60  ;;  %v11145_v63 = vsub.f32 %v4881_v3, %v11117_v47  ;;  %v5063_v5 = vand.u32 4294901760, %v5062_v55  ;;  %v11180_v3 = vsub.f32 %v4878_v59, %v11160_v49  ;;  %v11819_v55 = vld [vmem:[#allocation10_spill] sm:$0xff] }
 0x536   : > { %8559 = vmatpush3.msra.mxu1 %v5021_v44  ;;  %8517 = vmatprep.subr.mxu0 %v10946_v50  ;;  %v5056_v28 = vand.u32 4294901760, %v5055_v39  ;;  %v11177_v44 = vand.u32 4294901760, %v11158_v29  ;;  %v5070_v35 = vand.u32 4294901760, %v5069_v62  ;;  %v11187_v60 = vand.u32 4294901760, %v11170_v11  ;;  %v11821_v62 = vld [vmem:[#allocation18_spill] sm:$0xff] }
 0x537   : > { %8560 = vmatprep.subr.mxu1 %v5028_v42  ;;  %8508 = vmatmul.mubr.f32.vlgmr.msra.gmra.mxu0 %v10967_v17  ;;  %v11818_v17 = vld [vmem:[#allocation17_spill] sm:$0xff]  ;;  %v11167_v53 = vand.u32 4294901760, %v11145_v63  ;;  %v11194_v34 = vand.u32 4294901760, %v11180_v3 }
 0x538   : > { %8518 = vmatpush3.msra.mxu0 %v10946_v50  ;;  %8561 = vmatpush3.msra.mxu1 %v5028_v42  ;;  %v5090_v52 = vsub.f32 %v11158_v29, %v11177_v44 }
 0x539   : > { %8519 = vmatprep.subr.mxu0 %v10951_v13  ;;  %8549 = vmatprep.mubr.f32.mxu0 %v11818_v17  ;;  %v5083_v42 = vsub.f32 %v11145_v63, %v11167_v53  ;;  %v5104_v39 = vsub.f32 %v11180_v3, %v11194_v34 }
 0x53a   : > { %8562 = vmatprep.subr.mxu1 %v5035_v41  ;;  %8520 = vmatpush3.msra.mxu0 %v10951_v13  ;;  %v5091_v59 = vand.u32 4294901760, %v5090_v52 }
 0x53b   : > { %8563 = vmatpush3.msra.mxu1 %v5035_v41  ;;  %8521 = vmatprep.subr.mxu0 %v10962_v21  ;;  %v5084_v41 = vand.u32 4294901760, %v5083_v42 }
 0x53c   : > { %8564 = vmatprep.subr.mxu1 %v5042_v54  ;;  %8522 = vmatpush3.msra.mxu0 %v10962_v21 }
 0x53d   : > { %8565 = vmatpush3.msra.mxu1 %v5042_v54  ;;  %8523 = vmatprep.subr.mxu0 %v10984_v40  ;;  %v5097_v54 = vsub.f32 %v11170_v11, %v11187_v60 }
 0x53e   : > { %8566 = vmatprep.subr.mxu1 %v5049_v33  ;;  %8524 = vmatpush3.msra.mxu0 %v10984_v40 }
 0x53f   : > { %8567 = vmatpush3.msra.mxu1 %v5049_v33  ;;  %8525 = vmatprep.subr.mxu0 %v10995_v0  ;;  %v5098_v17 = vand.u32 4294901760, %v5097_v54  ;;  %v5105_v33 = vand.u32 4294901760, %v5104_v39 }
 0x540   : > { %8568 = vmatprep.subr.mxu1 %v5056_v28  ;;  %8526 = vmatpush3.msra.mxu0 %v10995_v0 }
 0x541   : > { %8569 = vmatpush3.msra.mxu1 %v5056_v28  ;;  %8527 = vmatprep.subr.mxu0 %v11015_v12  ;;  %v11820_v28 = vld [vmem:[#allocation15_spill] sm:$0xff] }
 0x542   : > { %8570 = vmatprep.subr.mxu1 %v5063_v5  ;;  %8528 = vmatpush3.msra.mxu0 %v11015_v12 }
 0x543   : > { %8571 = vmatpush3.msra.mxu1 %v5063_v5  ;;  %8529 = vmatprep.subr.mxu0 %v11026_v16  ;;  %v11822_v5 = vld [vmem:[#allocation13_spill] sm:$0xff] }
 0x544   : > { %8572 = vmatprep.subr.mxu1 %v5070_v35  ;;  %8530 = vmatpush3.msra.mxu0 %v11026_v16 }
 0x545   : > { %8573 = vmatpush3.msra.mxu1 %v5070_v35  ;;  %8531 = vmatprep.subr.mxu0 %v11034_v18 }
 0x546   : > { %8574 = vmatprep.subr.mxu1 %v5077_v10  ;;  %8532 = vmatpush3.msra.mxu0 %v11034_v18 }
 0x547   : > { %8575 = vmatpush3.msra.mxu1 %v5077_v10  ;;  %8533 = vmatprep.subr.mxu0 %v11055_v25 }
 0x548   : > { %8576 = vmatprep.subr.mxu1 %v5084_v41  ;;  %8534 = vmatpush3.msra.mxu0 %v11055_v25 }
 0x549   : > { %8577 = vmatpush3.msra.mxu1 %v5084_v41  ;;  %8535 = vmatprep.subr.mxu0 %v11071_v20 }
 0x54a   : > { %8578 = vmatprep.subr.mxu1 %v5091_v59  ;;  %8536 = vmatpush3.msra.mxu0 %v11071_v20 }
 0x54b   : > { %8579 = vmatpush3.msra.mxu1 %v5091_v59  ;;  %8537 = vmatprep.subr.mxu0 %v11086_v14 }
 0x54c   : > { %8580 = vmatprep.subr.mxu1 %v5098_v17  ;;  %8538 = vmatpush3.msra.mxu0 %v11086_v14 }
 0x54d   : > { %8581 = vmatpush3.msra.mxu1 %v5098_v17  ;;  %8539 = vmatprep.subr.mxu0 %v11101_v57 }
 0x54e   : > { %8582 = vmatprep.subr.mxu1 %v5105_v33  ;;  %8540 = vmatpush3.msra.mxu0 %v11101_v57 }
 0x54f   : > { %8583 = vmatpush3.msra.mxu1 %v5105_v33  ;;  %8541 = vmatprep.subr.mxu0 %v11117_v47 }
 0x550   : > { %8585 = vmatmul.mubr.f32.vlgmr.msra.gmra.mxu1 %v11819_v55  ;;  %8622 = vmatprep.subr.mxu1 %v10946_v50 }
 0x551   : > { %8542 = vmatpush3.msra.mxu0 %v11117_v47  ;;  %8623 = vmatpush3.msra.mxu1 %v10946_v50 }
 0x552   : > { %8654 = vmatprep.mubr.f32.mxu1 %v11820_v28  ;;  %8543 = vmatprep.subr.mxu0 %v11132_v61 }
 0x553   : > { %8624 = vmatprep.subr.mxu1 %v10951_v13  ;;  %8544 = vmatpush3.msra.mxu0 %v11132_v61 }
 0x554   : > { %8625 = vmatpush3.msra.mxu1 %v10951_v13  ;;  %8545 = vmatprep.subr.mxu0 %v11147_v23 }
 0x555   : > { %8626 = vmatprep.subr.mxu1 %v10962_v21  ;;  %8546 = vmatpush3.msra.mxu0 %v11147_v23 }
 0x556   : > { %8627 = vmatpush3.msra.mxu1 %v10962_v21  ;;  %8547 = vmatprep.subr.mxu0 %v11160_v49 }
 0x557   : > { %8628 = vmatprep.subr.mxu1 %v10984_v40  ;;  %8548 = vmatpush3.msra.mxu0 %v11160_v49 }
 0x558   : > { %8629 = vmatpush3.msra.mxu1 %v10984_v40  ;;  %8550 = vmatmul.mubr.f32.vlgmr.msra.gmra.mxu0 %v11821_v62 }
 0x559   : > { %8587 = vmatprep.subr.mxu0 %v10958_v38  ;;  %8630 = vmatprep.subr.mxu1 %v10995_v0 }
 0x55a   : > { %8588 = vmatpush3.msra.mxu0 %v10958_v38  ;;  %8619 = vmatprep.mubr.f32.mxu0 %v11822_v5  ;;  %v11823_v38 = vld [vmem:[#allocation14_spill] sm:$0xff] }
 0x55b   : > { %8631 = vmatpush3.msra.mxu1 %v10995_v0  ;;  %8589 = vmatprep.subr.mxu0 %v10970_v30 }
 0x55c   : > { %8632 = vmatprep.subr.mxu1 %v11015_v12  ;;  %8590 = vmatpush3.msra.mxu0 %v10970_v30  ;;  %v5580_v30 = vld [vmem:[%s11627_s9 + $0x10] sm:$0xff] }
 0x55d   : > { %8633 = vmatpush3.msra.mxu1 %v11015_v12  ;;  %8591 = vmatprep.subr.mxu0 %v10987_v36 }
 0x55e   : > { %8634 = vmatprep.subr.mxu1 %v11026_v16  ;;  %8592 = vmatpush3.msra.mxu0 %v10987_v36  ;;  %v5579_v36 = vld [vmem:[%s11627_s9 + $0x8] sm:$0xff] }
 0x55f   : > { %8635 = vmatpush3.msra.mxu1 %v11026_v16  ;;  %8593 = vmatprep.subr.mxu0 %v11008_v37 }
 0x560   : > { %8636 = vmatprep.subr.mxu1 %v11034_v18  ;;  %8594 = vmatpush3.msra.mxu0 %v11008_v37  ;;  %v11382_v37 = vand.u32 4294901760, %v5579_v36 }
 0x561   : > { %8637 = vmatpush3.msra.mxu1 %v11034_v18  ;;  %8595 = vmatprep.subr.mxu0 %v11024_v6 }
 0x562   : > { %8638 = vmatprep.subr.mxu1 %v11055_v25  ;;  %8596 = vmatpush3.msra.mxu0 %v11024_v6 }
 0x563   : > { %8639 = vmatpush3.msra.mxu1 %v11055_v25  ;;  %8597 = vmatprep.subr.mxu0 %v11043_v7 }
 0x564   : > { %8640 = vmatprep.subr.mxu1 %v11071_v20  ;;  %8598 = vmatpush3.msra.mxu0 %v11043_v7 }
 0x565   : > { %8641 = vmatpush3.msra.mxu1 %v11071_v20  ;;  %8599 = vmatprep.subr.mxu0 %v11050_v1 }
 0x566   : > { %8642 = vmatprep.subr.mxu1 %v11086_v14  ;;  %8600 = vmatpush3.msra.mxu0 %v11050_v1 }
 0x567   : > { %8643 = vmatpush3.msra.mxu1 %v11086_v14  ;;  %8601 = vmatprep.subr.mxu0 %v11062_v27 }
 0x568   : > { %8644 = vmatprep.subr.mxu1 %v11101_v57  ;;  %8602 = vmatpush3.msra.mxu0 %v11062_v27 }
 0x569   : > { %8645 = vmatpush3.msra.mxu1 %v11101_v57  ;;  %8603 = vmatprep.subr.mxu0 %v11084_v48 }
 0x56a   : > { %8646 = vmatprep.subr.mxu1 %v11117_v47  ;;  %8604 = vmatpush3.msra.mxu0 %v11084_v48 }
 0x56b   : > { %8647 = vmatpush3.msra.mxu1 %v11117_v47  ;;  %8605 = vmatprep.subr.mxu0 %v11099_v22 }
 0x56c   : > { %8648 = vmatprep.subr.mxu1 %v11132_v61  ;;  %8606 = vmatpush3.msra.mxu0 %v11099_v22 }
 0x56d   : > { %8649 = vmatpush3.msra.mxu1 %v11132_v61  ;;  %8607 = vmatprep.subr.mxu0 %v11115_v32 }
 0x56e   : > { %8650 = vmatprep.subr.mxu1 %v11147_v23  ;;  %8608 = vmatpush3.msra.mxu0 %v11115_v32 }
 0x56f   : > { %8651 = vmatpush3.msra.mxu1 %v11147_v23  ;;  %8609 = vmatprep.subr.mxu0 %v11130_v19 }
 0x570   : > { %8652 = vmatprep.subr.mxu1 %v11160_v49  ;;  %8610 = vmatpush3.msra.mxu0 %v11130_v19 }
 0x571   : > { %8653 = vmatpush3.msra.mxu1 %v11160_v49  ;;  %8611 = vmatprep.subr.mxu0 %v11145_v63 }
 0x572   : > { %8655 = vmatmul.mubr.f32.vlgmr.msra.gmra.mxu1 %v11823_v38  ;;  %8692 = vmatprep.subr.mxu1 %v10946_v50 }
 0x573   : > { %8612 = vmatpush3.msra.mxu0 %v11145_v63  ;;  %8693 = vmatpush3.msra.mxu1 %v10946_v50  ;;  %v11824_v50 = vld [vmem:[#allocation11_spill] sm:$0xff] }
 0x574   : > { %8724 = vmatprep.mubr.f32.mxu1 %v11817_v24  ;;  %8613 = vmatprep.subr.mxu0 %v11158_v29 }
 0x575   : > { %8694 = vmatprep.subr.mxu1 %v10951_v13  ;;  %8614 = vmatpush3.msra.mxu0 %v11158_v29 }
 0x576   : > { %8695 = vmatpush3.msra.mxu1 %v10951_v13  ;;  %8615 = vmatprep.subr.mxu0 %v11170_v11  ;;  %v5581_v13 = vld [vmem:[%s11627_s9 + $0x18] sm:$0xff] }
 0x577   : > { %8696 = vmatprep.subr.mxu1 %v10962_v21  ;;  %8616 = vmatpush3.msra.mxu0 %v11170_v11 }
 0x578   : > { %8697 = vmatpush3.msra.mxu1 %v10962_v21  ;;  %8617 = vmatprep.subr.mxu0 %v11180_v3  ;;  %v11361_v21 = vand.u32 4294901760, %v5581_v13 }
 0x579   : > { %8698 = vmatprep.subr.mxu1 %v10984_v40  ;;  %8618 = vmatpush3.msra.mxu0 %v11180_v3 }
 0x57a   : > { %8699 = vmatpush3.msra.mxu1 %v10984_v40  ;;  %8620 = vmatmul.mubr.f32.vlgmr.msra.gmra.mxu0 %v11824_v50  ;;  %v11369_v40 = vand.u32 4294901760, %v5580_v30 }
 0x57b   : > { %8657 = vmatprep.subr.mxu0 %v10974_v15  ;;  %8700 = vmatprep.subr.mxu1 %v10995_v0 }
 0x57c   : > { %8658 = vmatpush3.msra.mxu0 %v10974_v15  ;;  %8689 = vmatprep.mubr.f32.mxu0 %v11817_v24  ;;  %v11367_v15 = vsub.f32 %v5581_v13, %v11361_v21 }
 0x57d   : > { %8701 = vmatpush3.msra.mxu1 %v10995_v0  ;;  %8659 = vmatprep.subr.mxu0 %v10993_v56  ;;  %v11380_v0 = vsub.f32 %v5580_v30, %v11369_v40 }
 0x57e   : > { %8702 = vmatprep.subr.mxu1 %v11015_v12  ;;  %8660 = vmatpush3.msra.mxu0 %v10993_v56  ;;  %v11377_v56 = vand.u32 4294901760, %v11367_v15 }
 0x57f   : > { %8703 = vmatpush3.msra.mxu1 %v11015_v12  ;;  %8661 = vmatprep.subr.mxu0 %v11013_v51  ;;  %v11392_v6 = vand.u32 4294901760, %v11380_v0 }
 0x580   : > { %8704 = vmatprep.subr.mxu1 %v11026_v16  ;;  %8662 = vmatpush3.msra.mxu0 %v11013_v51  ;;  %v5578_v51 = vld [vmem:[%s11627_s9] sm:$0xff]  ;;  %v5709_v12 = vsub.f32 %v11367_v15, %v11377_v56 }
 0x581   : > { %8705 = vmatpush3.msra.mxu1 %v11026_v16  ;;  %8663 = vmatprep.subr.mxu0 %v11032_v8  ;;  %v11395_v16 = vsub.f32 %v5579_v36, %v11382_v37  ;;  %v5716_v7 = vsub.f32 %v11380_v0, %v11392_v6 }
 0x582   : > { %8706 = vmatprep.subr.mxu1 %v11034_v18  ;;  %8664 = vmatpush3.msra.mxu0 %v11032_v8  ;;  %v11397_v8 = vand.u32 4294901760, %v5578_v51 }
 0x583   : > { %8707 = vmatpush3.msra.mxu1 %v11034_v18  ;;  %8665 = vmatprep.subr.mxu0 %v11047_v26  ;;  %v5710_v18 = vand.u32 4294901760, %v5709_v12 }
 0x584   : > { %8708 = vmatprep.subr.mxu1 %v11055_v25  ;;  %8666 = vmatpush3.msra.mxu0 %v11047_v26  ;;  %v11404_v26 = vand.u32 4294901760, %v11395_v16  ;;  %v11407_v1 = vsub.f32 %v5578_v51, %v11397_v8 }
 0x585   : > { %8709 = vmatpush3.msra.mxu1 %v11055_v25  ;;  %8667 = vmatprep.subr.mxu0 %v11069_v9  ;;  %v5717_v25 = vand.u32 4294901760, %v5716_v7 }
 0x586   : > { %8710 = vmatprep.subr.mxu1 %v11071_v20  ;;  %8668 = vmatpush3.msra.mxu0 %v11069_v9  ;;  %v5723_v27 = vsub.f32 %v11395_v16, %v11404_v26  ;;  %v11414_v9 = vand.u32 4294901760, %v11407_v1 }
 0x587   : > { %8711 = vmatpush3.msra.mxu1 %v11071_v20  ;;  %8669 = vmatprep.subr.mxu0 %v11076_v43 }
 0x588   : > { %8712 = vmatprep.subr.mxu1 %v11086_v14  ;;  %8670 = vmatpush3.msra.mxu0 %v11076_v43  ;;  %v5724_v20 = vand.u32 4294901760, %v5723_v27  ;;  %v5730_v43 = vsub.f32 %v11407_v1, %v11414_v9 }
 0x589   : > { %8713 = vmatpush3.msra.mxu1 %v11086_v14  ;;  %8671 = vmatprep.subr.mxu0 %v11090_v45 }
 0x58a   : > { %8714 = vmatprep.subr.mxu1 %v11101_v57  ;;  %8672 = vmatpush3.msra.mxu0 %v11090_v45  ;;  %v5731_v24 = vand.u32 4294901760, %v5730_v43 }
 0x58b   : > { %8715 = vmatpush3.msra.mxu1 %v11101_v57  ;;  %8673 = vmatprep.subr.mxu0 %v11112_v58 }
 0x58c   : > { %8716 = vmatprep.subr.mxu1 %v11117_v47  ;;  %8674 = vmatpush3.msra.mxu0 %v11112_v58 }
 0x58d   : > { %8717 = vmatpush3.msra.mxu1 %v11117_v47  ;;  %8675 = vmatprep.subr.mxu0 %v11127_v4 }
 0x58e   : > { %8718 = vmatprep.subr.mxu1 %v11132_v61  ;;  %8676 = vmatpush3.msra.mxu0 %v11127_v4 }
 0x58f   : > { %8719 = vmatpush3.msra.mxu1 %v11132_v61  ;;  %8677 = vmatprep.subr.mxu0 %v11142_v2 }
 0x590   : > { %8720 = vmatprep.subr.mxu1 %v11147_v23  ;;  %8678 = vmatpush3.msra.mxu0 %v11142_v2 }
 0x591   : > { %8721 = vmatpush3.msra.mxu1 %v11147_v23  ;;  %8679 = vmatprep.subr.mxu0 %v11155_v46 }
 0x592   : > { %8722 = vmatprep.subr.mxu1 %v11160_v49  ;;  %8680 = vmatpush3.msra.mxu0 %v11155_v46 }
 0x593   : > { %8723 = vmatpush3.msra.mxu1 %v11160_v49  ;;  %8681 = vmatprep.subr.mxu0 %v11167_v53 }
 0x594   : > { %8725 = vmatmul.mubr.f32.vlgmr.msra.gmra.mxu1 %v11819_v55  ;;  %8682 = vmatpush3.msra.mxu0 %v11167_v53 }
 0x595   : > { %8683 = vmatprep.subr.mxu0 %v11177_v44  ;;  %8738 = vmatprep.subr.mxu1 %v5710_v18 }
 0x596   : > { %8684 = vmatpush3.msra.mxu0 %v11177_v44  ;;  %8739 = vmatpush3.msra.mxu1 %v5710_v18 }
 0x597   : > { %8685 = vmatprep.subr.mxu0 %v11187_v60  ;;  %8740 = vmatprep.subr.mxu1 %v5717_v25 }
 0x598   : > { %8686 = vmatpush3.msra.mxu0 %v11187_v60  ;;  %8741 = vmatpush3.msra.mxu1 %v5717_v25 }
 0x599   : > { %8687 = vmatprep.subr.mxu0 %v11194_v34  ;;  %8742 = vmatprep.subr.mxu1 %v5724_v20 }
 0x59a   : > { %8688 = vmatpush3.msra.mxu0 %v11194_v34  ;;  %8743 = vmatpush3.msra.mxu1 %v5724_v20 }
 0x59b   : > { %8690 = vmatmul.mubr.f32.vlgmr.msra.gmra.mxu0 %v11819_v55  ;;  %8727 = vmatprep.subr.mxu0 %v11361_v21 }
 0x59c   : > { %8728 = vmatpush3.msra.mxu0 %v11361_v21  ;;  %8744 = vmatprep.subr.mxu1 %v5731_v24 }
 0x59d   : > { %8729 = vmatprep.subr.mxu0 %v11369_v40  ;;  %8745 = vmatpush3.msra.mxu1 %v5731_v24 }
 0x59e   : > { %8730 = vmatpush3.msra.mxu0 %v11369_v40  ;;  %8760 = vmatprep.subr.mxu1 %v11361_v21 }
 0x59f   : > { %8731 = vmatprep.subr.mxu0 %v11382_v37 }
 0x5a0   : > { %8732 = vmatpush3.msra.mxu0 %v11382_v37 }
 0x5a1   : > { %8733 = vmatprep.subr.mxu0 %v11397_v8 }
 0x5a2   : > { %8734 = vmatpush3.msra.mxu0 %v11397_v8 }
 0x5a3   : > { %8749 = vmatprep.subr.mxu0 %v11367_v15 }
 0x5e4   : > { %v8488_v48 = vpop.f32.mrf.mxu1 }
 0x5e6   : > { %v4540_v14 = vpop.f32.mrf.mxu1 }
 0x5e8   : > { %v8502_v57 = vpop.f32.mrf.mxu1 }
 0x5ea   : > { %v4704_v47 = vpop.f32.mrf.mxu1 }
 0x5ec   : > { %v8481_v45 = vpop.f32.mrf.mxu0 }
 0x5ed   : > { %v4547_v58 = vadd.f32 %v8488_v48, %v8481_v45  ;;  %v8516_v63 = vpop.f32.mrf.mxu1 }
 0x5ee   : > { %v4449_v22 = vpop.f32.mrf.mxu0 }
 0x5ef   : > { %v4541_v4 = vadd.f32 %v4540_v14, %v4449_v22  ;;  %v4868_v11 = vpop.f32.mrf.mxu1 }
 0x5f2   : > { %v8495_v32 = vpop.f32.mrf.mxu0 }
 0x5f3   : > { %v4630_v19 = vadd.f32 %v8495_v32, %v4547_v58 }
 0x5f4   : > { %v4622_v61 = vpop.f32.mrf.mxu0 }
 0x5f5   : > { %v4623_v2 = vadd.f32 %v4622_v61, %v4541_v4  ;;  %v4713_v29 = vadd.f32 %v8502_v57, %v4630_v19 }
 0x5f7   : > { %v8509_v23 = vpop.f32.mrf.mxu0  ;;  %v4705_v46 = vadd.f32 %v4704_v47, %v4623_v2 }
 0x5f8   : > { %v4796_v31 = vadd.f32 %v8509_v23, %v4713_v29 }
 0x5f9   : > { %v4789_v49 = vpop.f32.mrf.mxu0 }
 0x5fa   : > { %v4790_v53 = vadd.f32 %v4789_v49, %v4705_v46  ;;  %v4875_v3 = vadd.f32 %v8516_v63, %v4796_v31  ;;  %v11523_v49 = vld [vmem:[%s11629_s11] sm:$0x3] }
 0x5fc   : > { %v4869_v44 = vadd.f32 %v4868_v11, %v4790_v53  ;;  %v11825_v11 = vld [vmem:[#allocation25_spill] sm:$0xff] }
 0x5fd   : > { %v11826_v31 = vsub.s32 0, %v11825_v11 }
 0x5fe   : > { %6683 = vrot.lane.b32.xlu0 %v4869_v44, %s9000_s28 }
 0x5ff   : > { %v5585_v44 = vrot.slane %v11523_v49, %v11826_v31 }
 0x602   : > { %6685 = vrot.lane.b32.xlu0 %v4875_v3, %s9000_s28  ;;  %s8944_s28 = scalar_lea.vmem %s8943_s18, 512 }
 0x610   : > { %v8586_v42 = vpop.f32.mrf.mxu1 }
 0x612   : > { %v5142_v52 = vpop.f32.mrf.mxu1 }
 0x618   : > { %v8551_v35 = vpop.f32.mrf.mxu0 }
 0x619   : > { %v5149_v34 = vadd.f32 %v8586_v42, %v8551_v35 }
 0x61a   : > { %v4981_v60 = vpop.f32.mrf.mxu0 }
 0x61b   : > { %v5143_v59 = vadd.f32 %v5142_v52, %v4981_v60 }
 0x632   : > { %v8656_v41 = vpop.f32.mrf.mxu1 }
 0x634   : > { %v5348_v33 = vpop.f32.mrf.mxu1 }
 0x63a   : > { %v8621_v10 = vpop.f32.mrf.mxu0 }
 0x63b   : > { %v5260_v39 = vadd.f32 %v8621_v10, %v5149_v34 }
 0x63c   : > { %v5252_v54 = vpop.f32.mrf.mxu0 }
 0x63d   : > { %v5253_v17 = vadd.f32 %v5252_v54, %v5143_v59  ;;  %v5357_v55 = vadd.f32 %v8656_v41, %v5260_v39 }
 0x63f   : > { %v5349_v38 = vadd.f32 %v5348_v33, %v5253_v17 }
 0x654   : > { %v8726_v28 = vpop.f32.mrf.mxu1 }
 0x656   : > { %v5568_v36 = vpop.f32.mrf.mxu1 }
 0x65b   : > { %v8691_v62 = vpop.f32.mrf.mxu0 }
 0x65c   : > { %v5482_v5 = vadd.f32 %v8691_v62, %v5357_v55 }
 0x65d   : > { %v5475_v50 = vpop.f32.mrf.mxu0 }
 0x65e   : > { %v11420_v13 = vadd.f32 %v8726_v28, %v5482_v5  ;;  %v5476_v30 = vadd.f32 %v5475_v50, %v5349_v38 }
 0x660   : > { %v5590_v51 = vsel %vm1152_vm0, %v11420_v13, 0  ;;  %v11424_v12 = vadd.f32 %v5568_v36, %v5476_v30 }
 0x661   : > { %v5671_v18 = vand.u32 4294901760, %v5590_v51 }
 0x662   : > { %v5587_v7 = vsel %vm1152_vm0, %v11424_v12, 0 }
 0x663   : > { %v5672_v25 = vsub.f32 %v5590_v51, %v5671_v18  ;;  %v5661_v27 = vand.u32 4294901760, %v5587_v7 }
 0x665   : > { %v5662_v20 = vsub.f32 %v5587_v7, %v5661_v27  ;;  %8746 = vmatprep.mubr.f32.mxu1 %v5661_v27  ;;  %v5673_v43 = vand.u32 4294901760, %v5672_v25 }
 0x666   : > { %8747 = vmatmul.mubr.f32.vlgmr.msra.gmra.mxu1 %v5671_v18 }
 0x667   : > { %8761 = vmatpush3.msra.mxu1 %v11361_v21  ;;  %v5663_v24 = vand.u32 4294901760, %v5662_v20  ;;  %v5674_v14 = vsub.f32 %v5672_v25, %v5673_v43 }
 0x668   : > { %8762 = vmatprep.subr.mxu1 %v11369_v40 }
 0x669   : > { %8763 = vmatpush3.msra.mxu1 %v11369_v40  ;;  %8768 = vmatprep.mubr.f32.mxu1 %v5663_v24  ;;  %v5664_v48 = vsub.f32 %v5662_v20, %v5663_v24  ;;  %v5675_v22 = vand.u32 4294901760, %v5674_v14 }
 0x66a   : > { %8764 = vmatprep.subr.mxu1 %v11382_v37 }
 0x66b   : > { %8765 = vmatpush3.msra.mxu1 %v11382_v37  ;;  %v5665_v45 = vand.u32 4294901760, %v5664_v48 }
 0x66c   : > { %8766 = vmatprep.subr.mxu1 %v11397_v8 }
 0x66d   : > { %8767 = vmatpush3.msra.mxu1 %v11397_v8  ;;  %8735 = vmatprep.mubr.f32.mxu0 %v5665_v45 }
 0x66e   : > { %8769 = vmatmul.mubr.f32.vlgmr.msra.gmra.mxu1 %v5673_v43  ;;  %8782 = vmatprep.subr.mxu1 %v11361_v21 }
 0x66f   : > { %8736 = vmatmul.mubr.f32.vlgmr.msra.gmra.mxu0 %v5675_v22  ;;  %8783 = vmatpush3.msra.mxu1 %v11361_v21  ;;  %v6821_v21 = vld [vmem:[%s11627_s9 + $0x38] sm:$0xff] }
 0x670   : > { %8750 = vmatpush3.msra.mxu0 %v11367_v15  ;;  %8790 = vmatprep.mubr.f32.mxu1 %v5661_v27  ;;  %v11461_v15 = vand.u32 4294901760, %v6821_v21 }
 0x671   : > { %8751 = vmatprep.subr.mxu0 %v11380_v0  ;;  %8757 = vmatprep.mubr.f32.mxu0 %v5662_v20 }
 0x672   : > { %8784 = vmatprep.subr.mxu1 %v11369_v40  ;;  %8752 = vmatpush3.msra.mxu0 %v11380_v0 }
 0x673   : > { %8785 = vmatpush3.msra.mxu1 %v11369_v40  ;;  %8753 = vmatprep.subr.mxu0 %v11395_v16  ;;  %v6820_v40 = vld [vmem:[%s11627_s9 + $0x30] sm:$0xff] }
 0x674   : > { %8786 = vmatprep.subr.mxu1 %v11382_v37  ;;  %8754 = vmatpush3.msra.mxu0 %v11395_v16  ;;  %v11469_v0 = vand.u32 4294901760, %v6820_v40 }
 0x675   : > { %8787 = vmatpush3.msra.mxu1 %v11382_v37  ;;  %8755 = vmatprep.subr.mxu0 %v11407_v1  ;;  %v6819_v37 = vld [vmem:[%s11627_s9 + $0x28] sm:$0xff] }
 0x676   : > { %8788 = vmatprep.subr.mxu1 %v11397_v8  ;;  %8756 = vmatpush3.msra.mxu0 %v11407_v1  ;;  %v11480_v16 = vsub.f32 %v6820_v40, %v11469_v0 }
 0x677   : > { %8789 = vmatpush3.msra.mxu1 %v11397_v8  ;;  %8758 = vmatmul.mubr.f32.vlgmr.msra.gmra.mxu0 %v5672_v25  ;;  %v11482_v8 = vand.u32 4294901760, %v6819_v37 }
 0x678   : > { %8771 = vmatprep.subr.mxu0 %v11377_v56  ;;  %8791 = vmatmul.mubr.f32.vlgmr.msra.gmra.mxu1 %v5671_v18 }
 0x679   : > { %8772 = vmatpush3.msra.mxu0 %v11377_v56  ;;  %8779 = vmatprep.mubr.f32.mxu0 %v5661_v27  ;;  %v11467_v56 = vsub.f32 %v6821_v21, %v11461_v15  ;;  %v11495_v57 = vsub.f32 %v6819_v37, %v11482_v8 }
 0x67a   : > { %8773 = vmatprep.subr.mxu0 %v11392_v6 }
 0x67b   : > { %8774 = vmatpush3.msra.mxu0 %v11392_v6  ;;  %v11477_v6 = vand.u32 4294901760, %v11467_v56  ;;  %v11504_v4 = vand.u32 4294901760, %v11495_v57 }
 0x67c   : > { %8775 = vmatprep.subr.mxu0 %v11404_v26 }
 0x67d   : > { %8776 = vmatpush3.msra.mxu0 %v11404_v26  ;;  %v6818_v26 = vld [vmem:[%s11627_s9 + $0x20] sm:$0xff]  ;;  %v6254_v1 = vsub.f32 %v11467_v56, %v11477_v6  ;;  %v6268_v2 = vsub.f32 %v11495_v57, %v11504_v4 }
 0x67e   : > { %8777 = vmatprep.subr.mxu0 %v11414_v9  ;;  %v11497_v58 = vand.u32 4294901760, %v6818_v26 }
 0x67f   : > { %8778 = vmatpush3.msra.mxu0 %v11414_v9  ;;  %v11492_v9 = vand.u32 4294901760, %v11480_v16  ;;  %v6255_v32 = vand.u32 4294901760, %v6254_v1  ;;  %v6269_v23 = vand.u32 4294901760, %v6268_v2 }
 0x680   : > { %8780 = vmatmul.mubr.f32.vlgmr.msra.gmra.mxu0 %v5671_v18  ;;  %8793 = vmatprep.subr.mxu0 %v11461_v15  ;;  %v11507_v19 = vsub.f32 %v6818_v26, %v11497_v58 }
 0x681   : > { %8794 = vmatpush3.msra.mxu0 %v11461_v15  ;;  %v6261_v47 = vsub.f32 %v11480_v16, %v11492_v9  ;;  %8804 = vmatprep.subr.mxu1 %v6255_v32 }
 0x682   : > { %8795 = vmatprep.subr.mxu0 %v11469_v0  ;;  %v11514_v63 = vand.u32 4294901760, %v11507_v19  ;;  %8805 = vmatpush3.msra.mxu1 %v6255_v32 }
 0x683   : > { %8796 = vmatpush3.msra.mxu0 %v11469_v0  ;;  %v6262_v61 = vand.u32 4294901760, %v6261_v47 }
 0x684   : > { %8797 = vmatprep.subr.mxu0 %v11482_v8  ;;  %v6275_v46 = vsub.f32 %v11507_v19, %v11514_v63 }
 0x685   : > { %8798 = vmatpush3.msra.mxu0 %v11482_v8  ;;  %8806 = vmatprep.subr.mxu1 %v6262_v61 }
 0x686   : > { %8799 = vmatprep.subr.mxu0 %v11497_v58  ;;  %8807 = vmatpush3.msra.mxu1 %v6262_v61  ;;  %v6276_v29 = vand.u32 4294901760, %v6275_v46 }
 0x687   : > { %8800 = vmatpush3.msra.mxu0 %v11497_v58  ;;  %8808 = vmatprep.subr.mxu1 %v6269_v23 }
 0x688   : > { %8815 = vmatprep.subr.mxu0 %v11467_v56  ;;  %8809 = vmatpush3.msra.mxu1 %v6269_v23 }
 0x689   : > { %8810 = vmatprep.subr.mxu1 %v6276_v29 }
 0x68a   : > { %8811 = vmatpush3.msra.mxu1 %v6276_v29 }
 0x68b   : > { %8826 = vmatprep.subr.mxu1 %v11461_v15 }
 0x726   : > { %v8748_v3 = vpop.f32.mrf.mxu1 }
 0x728   : > { %v5768_v52 = vpop.f32.mrf.mxu1 }
 0x72e   : > { %v8770_v41 = vpop.f32.mrf.mxu1 }
 0x72f   : > { %v8737_v53 = vpop.f32.mrf.mxu0 }
 0x730   : > { %v5678_v42 = vadd.f32 %v8737_v53, %v5585_v44  ;;  %v5938_v33 = vpop.f32.mrf.mxu1 }
 0x731   : > { %v5667_v35 = vpop.f32.mrf.mxu0 }
 0x732   : > { %v5668_v60 = vadd.f32 %v5667_v35, %v5585_v44  ;;  %v5775_v34 = vadd.f32 %v8748_v3, %v5678_v42 }
 0x734   : > { %v5769_v39 = vadd.f32 %v5768_v52, %v5668_v60 }
 0x737   : > { %v8759_v10 = vpop.f32.mrf.mxu0 }
 0x738   : > { %v5862_v59 = vadd.f32 %v8759_v10, %v5775_v34  ;;  %v8792_v28 = vpop.f32.mrf.mxu1 }
 0x739   : > { %v5854_v54 = vpop.f32.mrf.mxu0 }
 0x73a   : > { %v5855_v17 = vadd.f32 %v5854_v54, %v5769_v39  ;;  %v5947_v55 = vadd.f32 %v8770_v41, %v5862_v59  ;;  %v6110_v51 = vpop.f32.mrf.mxu1  ;;  %v6684_v41 = vpop.permute.xlu0 %6683 }
 0x73c   : > { %v5939_v38 = vadd.f32 %v5938_v33, %v5855_v17  ;;  %v8936_v33 = vld [vmem:[%s9482_s15 + $0x8] sm:$0xff] }
 0x73e   : > { %v6686_v59 = vpop.permute.xlu0 %6685 }
 0x740   : > { %v8781_v62 = vpop.f32.mrf.mxu0 }
 0x741   : > { %v6036_v5 = vadd.f32 %v8781_v62, %v5947_v55  ;;  %v6690_v55 = vadd.f32 %v8936_v33, %v6686_v59 }
 0x742   : > { %v6029_v50 = vpop.f32.mrf.mxu0 }
 0x743   : > { %v6117_v30 = vadd.f32 %v8792_v28, %v6036_v5  ;;  %v6030_v36 = vadd.f32 %v6029_v50, %v5939_v38  ;;  %v8937_v5 = vld [vmem:[%s9482_s15] sm:$0xff]  ;;  %s8938_s15 = scalar_lea.vmem %s11575_s20, 256 }
 0x744   : > { %v6689_v38 = vadd.f32 %v8937_v5, %v6684_v41  ;;  %p8939_p11 = scmp.ne.s32.totalorder %s11575_s20, %s8938_s15  ;;  %p8946_p1 = scmp.lt.s32.totalorder %s8944_s28, %s8938_s15 }
 0x745   : > { %v6121_v18 = vmax.f32 %v6117_v30, 0.0  ;;  %v6111_v7 = vadd.f32 %v6110_v51, %v6030_v36 }
 0x746   : > { %p8940_p12 = pnand %p8939_p11, %p9107_p5  ;;  %p8947_p2 = por %p8946_p1, %p8945_p0 }
 0x747   : > { %v6135_v25 = vsel %vm1152_vm0, %v6121_v18, 0  ;;  %v6120_v27 = vmax.f32 %v6111_v7, 0.0 }
 0x748   : > { %v6216_v20 = vand.u32 4294901760, %v6135_v25  ;;  %p8941_p13 = pneg %p8940_p12 }
 0x749   : > { %v6132_v43 = vsel %vm1152_vm0, %v6120_v27, 0 }
 0x74a   : > { %v6217_v24 = vsub.f32 %v6135_v25, %v6216_v20  ;;  %v6206_v48 = vand.u32 4294901760, %v6132_v43  ;;  %p8948_p3 = pnand %p8947_p2, %p8941_p13 }
 0x74c   : > { %v6207_v14 = vsub.f32 %v6132_v43, %v6206_v48  ;;  %8812 = vmatprep.mubr.f32.mxu1 %v6206_v48  ;;  %v6218_v45 = vand.u32 4294901760, %v6217_v24 }
 0x74d   : > { %8813 = vmatmul.mubr.f32.vlgmr.msra.gmra.mxu1 %v6216_v20 }
 0x74e   : > { %8827 = vmatpush3.msra.mxu1 %v11461_v15  ;;  %v6208_v22 = vand.u32 4294901760, %v6207_v14  ;;  %v6219_v40 = vsub.f32 %v6217_v24, %v6218_v45 }
 0x74f   : > { %8828 = vmatprep.subr.mxu1 %v11469_v0 }
 0x750   : > { %8829 = vmatpush3.msra.mxu1 %v11469_v0  ;;  %8834 = vmatprep.mubr.f32.mxu1 %v6208_v22  ;;  %v6209_v21 = vsub.f32 %v6207_v14, %v6208_v22  ;;  %v6220_v26 = vand.u32 4294901760, %v6219_v40 }
 0x751   : > { %8830 = vmatprep.subr.mxu1 %v11482_v8 }
 0x752   : > { %8831 = vmatpush3.msra.mxu1 %v11482_v8  ;;  %v6210_v37 = vand.u32 4294901760, %v6209_v21 }
 0x753   : > { %8832 = vmatprep.subr.mxu1 %v11497_v58 }
 0x754   : > { %8833 = vmatpush3.msra.mxu1 %v11497_v58  ;;  %8801 = vmatprep.mubr.f32.mxu0 %v6210_v37 }
 0x755   : > { %8835 = vmatmul.mubr.f32.vlgmr.msra.gmra.mxu1 %v6218_v45  ;;  %8848 = vmatprep.subr.mxu1 %v11461_v15 }
 0x756   : > { %8802 = vmatmul.mubr.f32.vlgmr.msra.gmra.mxu0 %v6220_v26  ;;  %8849 = vmatpush3.msra.mxu1 %v11461_v15 }
 0x757   : > { %8816 = vmatpush3.msra.mxu0 %v11467_v56  ;;  %8856 = vmatprep.mubr.f32.mxu1 %v6206_v48  ;;  %v11827_v56 = vsub.s32 1, %v11825_v11 }
 0x758   : > { %8817 = vmatprep.subr.mxu0 %v11480_v16  ;;  %8823 = vmatprep.mubr.f32.mxu0 %v6207_v14 }
 0x759   : > { %8850 = vmatprep.subr.mxu1 %v11469_v0  ;;  %8818 = vmatpush3.msra.mxu0 %v11480_v16 }
 0x75a   : > { %8851 = vmatpush3.msra.mxu1 %v11469_v0  ;;  %8819 = vmatprep.subr.mxu0 %v11495_v57  ;;  %v6130_v0 = vrot.slane %v11523_v49, %v11827_v56 }
 0x75b   : > { %8852 = vmatprep.subr.mxu1 %v11482_v8  ;;  %8820 = vmatpush3.msra.mxu0 %v11495_v57 }
 0x75c   : > { %8853 = vmatpush3.msra.mxu1 %v11482_v8  ;;  %8821 = vmatprep.subr.mxu0 %v11507_v19 }
 0x75d   : > { %8854 = vmatprep.subr.mxu1 %v11497_v58  ;;  %8822 = vmatpush3.msra.mxu0 %v11507_v19 }
 0x75e   : > { %8855 = vmatpush3.msra.mxu1 %v11497_v58  ;;  %8824 = vmatmul.mubr.f32.vlgmr.msra.gmra.mxu0 %v6217_v24 }
 0x75f   : > { %8837 = vmatprep.subr.mxu0 %v11477_v6  ;;  %8857 = vmatmul.mubr.f32.vlgmr.msra.gmra.mxu1 %v6216_v20 }
 0x760   : > { %8838 = vmatpush3.msra.mxu0 %v11477_v6  ;;  %8845 = vmatprep.mubr.f32.mxu0 %v6206_v48 }
 0x761   : > { %8839 = vmatprep.subr.mxu0 %v11492_v9 }
 0x762   : > { %8840 = vmatpush3.msra.mxu0 %v11492_v9 }
 0x763   : > { %8841 = vmatprep.subr.mxu0 %v11504_v4 }
 0x764   : > { %8842 = vmatpush3.msra.mxu0 %v11504_v4 }
 0x765   : > { %8843 = vmatprep.subr.mxu0 %v11514_v63 }
 0x766   : > { %8844 = vmatpush3.msra.mxu0 %v11514_v63 }
 0x767   : > { %8846 = vmatmul.mubr.f32.vlgmr.msra.gmra.mxu0 %v6216_v20 }
 0x80d   : > { %v8814_v6 = vpop.f32.mrf.mxu1 }
 0x80f   : > { %v6313_v9 = vpop.f32.mrf.mxu1 }
 0x815   : > { %v8836_v32 = vpop.f32.mrf.mxu1 }
 0x816   : > { %v8803_v15 = vpop.f32.mrf.mxu0 }
 0x817   : > { %v6223_v8 = vadd.f32 %v8803_v15, %v6130_v0  ;;  %v6483_v2 = vpop.f32.mrf.mxu1 }
 0x818   : > { %v6212_v16 = vpop.f32.mrf.mxu0 }
 0x819   : > { %v6213_v1 = vadd.f32 %v6212_v16, %v6130_v0  ;;  %v6320_v58 = vadd.f32 %v8814_v6, %v6223_v8 }
 0x81b   : > { %v6314_v19 = vadd.f32 %v6313_v9, %v6213_v1 }
 0x81e   : > { %v8825_v57 = vpop.f32.mrf.mxu0 }
 0x81f   : > { %v6407_v4 = vadd.f32 %v8825_v57, %v6320_v58  ;;  %v8858_v23 = vpop.f32.mrf.mxu1 }
 0x820   : > { %v6399_v47 = vpop.f32.mrf.mxu0 }
 0x821   : > { %v6400_v61 = vadd.f32 %v6399_v47, %v6314_v19  ;;  %v6492_v63 = vadd.f32 %v8836_v32, %v6407_v4  ;;  %v6655_v44 = vpop.f32.mrf.mxu1 }
 0x823   : > { %v6484_v53 = vadd.f32 %v6483_v2, %v6400_v61 }
 0x827   : > { %v8847_v46 = vpop.f32.mrf.mxu0 }
 0x828   : > { %v6581_v29 = vadd.f32 %v8847_v46, %v6492_v63 }
 0x829   : > { %v6574_v11 = vpop.f32.mrf.mxu0 }
 0x82a   : > { %v6662_v49 = vadd.f32 %v8858_v23, %v6581_v29  ;;  %v6575_v31 = vadd.f32 %v6574_v11, %v6484_v53 }
 0x82c   : > { %v6823_v3 = vmul.f32 -1.442695, %v6662_v49  ;;  %v6656_v35 = vadd.f32 %v6655_v44, %v6575_v31 }
 0x82e   : > { %8925 = vpow2.f32 %v6823_v3  ;;  %v6822_v42 = vmul.f32 -1.442695, %v6656_v35 }
 0x830   : > { %8927 = vpow2.f32 %v6822_v42 }
 0x83b   : > { %v8926_v60 = vpop.eup %8925 }
 0x83c   : > { %v6672_v10 = vadd.f32 1.0, %v8926_v60 }
 0x83d   : > { %v8928_v52 = vpop.eup %8927 }
 0x83e   : > { %8929 = vrcp.f32 %v6672_v10  ;;  %v6671_v34 = vadd.f32 1.0, %v8928_v52 }
 0x840   : > { %8931 = vrcp.f32 %v6671_v34 }
 0x84b   : > { %v8930_v54 = vpop.eup %8929 }
 0x84c   : > { %v6678_v39 = vmul.f32 %v8930_v54, %v11420_v13 }
 0x84d   : > { %v8932_v17 = vpop.eup %8931 }
 0x84e   : > { %v6677_v28 = vmul.f32 %v8932_v17, %v11424_v12  ;;  %v6680_v62 = vadd.f32 %v8936_v33, %v6678_v39 }
 0x850   : > { %v6679_v50 = vadd.f32 %v8937_v5, %v6677_v28  ;;  %v6692_v30 = vsel %vm1152_vm0, %v6680_v62, %v6690_v55 }
 0x851   : > { %v6695_v36 = vsel %vm6693_vm3, %v6692_v30, 0.0 }
 0x852   : > { %v6691_v13 = vsel %vm1152_vm0, %v6679_v50, %v6689_v38  ;;  %6697 = vst [vmem:[%s425_s19 + $0x8] sm:$0xff] %v6695_v36 }
 0x853   : > { %v6694_v12 = vsel %vm6693_vm3, %v6691_v13, 0.0 }
 0x854   : > { %6696 = vst [vmem:[%s425_s19] sm:$0xff] %v6694_v12 }
 0x855   : > { %8951 = shalt.err (!%p8948_p3)
}
 0x856   : > { %s8952_s26 = scalar_lea.hbm %s11573_s16, 256  ;;  %s8956_s17 = scalar_lea.hbm %s11630_s12, 2048 }
 0x857   : > { %p8953_p4 = scmp.ne.s32.totalorder %s11573_s16, %s8952_s26  ;;  %p8957_p9 = scmp.lt.s32.totalorder %s11573_s16, %s11630_s12 }
 0x858   : > { %p8958_p10 = scmp.lt.s32.totalorder %s8956_s17, %s8952_s26 }
 0x859   : > { %p8954_p7 = pnand %p8953_p4, %p9107_p5 }
 0x85a   : > { %p8959_p11 = por %p8958_p10, %p8957_p9 }
 0x85b   : > { %p8955_p8 = pneg %p8954_p7 }
 0x85d   : > { %p8960_p12 = pnand %p8959_p11, %p8955_p8 }
 0x85f   : > { %8963 = shalt.err (!%p8960_p12)
}
 0x860   : > { %s9002_s15 = smov 128   ;;  %s9003_s18 = smov 8  }
 0x861   : > { %8859 = dma.vmem_to_hbm [thread:$0]  (%p9107_p5), %s11575_s20, 256, %s11573_s16, %s11578_s25, %s9002_s15, %s9002_s15, %s9003_s18  }
 0x862 PF: > { %p8865_p13 = scmp.ge.s32.totalorder %s8998_s24, 2  ;;  %s6727_s28 = sand.u32 1, %s8986_s21  }
 0x863   : > { %s6728_s0 = scalar_lea.sflag [#allocation3], %s6727_s28 }
 0x864   : > { %p8862_p0 = pnand %p8865_p13, %p9111_p6 }
 0x866   : > { %p8863_p1 = pneg %p8862_p0 }
 0x868   : > { %8981 = dma.done.wait (%p8863_p1), %s6728_s0, 256  }
 0x869   : > { %8983 = vsyncadd (%p8863_p1), %s6728_s0, 4294967040  ;;  %p22_p2 = scmp.ge.s32.totalorder %s9094_s27, 10   ;;  %s11828_s21 = smov %s8990_s22 }
 0x86a   : > { %s11829_s22 = smov %s8994_s23  ;;  %s11830_s23 = smov %s9105_s30 }
 0x86b   : > { %s11831_s24 = smov %s9094_s27  ;;  %24 = sbr.rel (!%p22_p2) target bundleno = 6 (0x6), region = 108 }
 0x870   :  { %6733 = vsyncpa [#allocation3], 1 }
 0x871   :  { %6735 = vsyncpa [#allocation3 + $0x1], 1 }

</bundles_post_ra>
